<compile_context>
chip_gen: v5e
topology: v5e:2x2
jax: 0.10.0
libtpu: 0.0.40
codegen_flags: <defaults>
</compile_context>

<pallas_src>
import functools

import jax
import jax.numpy as jnp
from jax import lax
from jax.experimental import pallas as pl
from jax.experimental.pallas import tpu as pltpu


def _round_up(x, m):
    return (x + m - 1) // m * m


# ----------------------------- Pallas kernel ------------------------------ #

def _fused_matmul_kernel(x_ref, w_ref, scale_ref, shift_ref, o_ref, *, activation):
    # bf16 x bf16 -> f32 accumulate on the MXU; f32 affine + activation epilogue.
    acc = jnp.dot(x_ref[...], w_ref[...], preferred_element_type=jnp.float32)
    y = acc * scale_ref[...] + shift_ref[...]
    if activation == "relu":
        y = jnp.maximum(y, 0.0)
    elif activation == "tanh":
        y = jnp.tanh(y)
    o_ref[...] = y.astype(o_ref.dtype)


def _pick_tm(M, tm_max=512):
    """Row tile: >= 2 grid steps when possible (v7x megacore), capped at 512."""
    Mr = _round_up(M, 16)
    if Mr <= 32:
        return Mr
    return min(_round_up((Mr + 1) // 2, 16), tm_max)


def fused_matmul(x, layer, activation):
    """act((x @ W) * scale + shift) using a prepared (padded, bf16) layer."""
    M, K = x.shape
    assert K == layer["k"], (K, layer["k"])
    Kp, Np = layer["w"].shape                      # both multiples of 128
    tm = _pick_tm(M)
    Mp = _round_up(M, tm)
    x_p = jnp.pad(x, ((0, Mp - M), (0, Kp - K))).astype(jnp.bfloat16)

    out = pl.pallas_call(
        functools.partial(_fused_matmul_kernel, activation=activation),
        out_shape=jax.ShapeDtypeStruct((Mp, Np), layer["out_dtype"]),
        grid=(Mp // tm,),
        in_specs=[
            pl.BlockSpec((tm, Kp), lambda i: (i, 0)),
            pl.BlockSpec((Kp, Np), lambda i: (0, 0)),
            pl.BlockSpec((1, Np), lambda i: (0, 0)),
            pl.BlockSpec((1, Np), lambda i: (0, 0)),
        ],
        out_specs=pl.BlockSpec((tm, Np), lambda i: (i, 0)),
        compiler_params=pltpu.CompilerParams(
            dimension_semantics=("parallel",),
        ),
    )(x_p, layer["w"], layer["scale"], layer["shift"])
    return out[:M, :layer["n"]]


# ------------------------------- Glue / layers ----------------------------- #

def bn_fold(gamma, beta, mean, var, eps=1e-5):
    scale = gamma / jnp.sqrt(var + eps)
    shift = beta - mean * scale
    return scale, shift


def _make_layer(wmat, scale, shift, cout, out_dtype):
    """Pad K/N to multiples of 128, cast weight to bf16, record true sizes."""
    K, N = wmat.shape
    Kp, Np = _round_up(K, 128), _round_up(N, 128)
    w = jnp.pad(wmat, ((0, Kp - K), (0, Np - N))).astype(jnp.bfloat16)
    sc = jnp.pad(scale.astype(jnp.float32), (0, Np - N)).reshape(1, Np)
    sh = jnp.pad(shift.astype(jnp.float32), (0, Np - N)).reshape(1, Np)
    return dict(w=w, scale=sc, shift=sh, k=K, n=N, cout=cout, out_dtype=out_dtype)


def prepare_params(p):
    """One-time weight prep: BN fold, fc1+tconv2 fold, polyphase weights, bf16."""
    k = 4
    # tconv2 (1x1 input, stride 1, pad 0) == matmul with columns (kh, kw, cout).
    w2m = jnp.transpose(p["w2"], (0, 2, 3, 1)).reshape(384, k * k * 192)
    s2, t2 = bn_fold(p["g2"], p["b2"], p["m2"], p["v2"])
    scale2 = jnp.tile(s2, k * k)
    shift2 = jnp.tile(t2, k * k)
    # Fold fc1 (linear, no activation in between) into the tconv2 matmul:
    #   ((x @ W1^T + b1) @ W2) * s + t  ==  (x @ (W1^T @ W2)) * s + (b1 @ W2) * s + t
    hp = lax.Precision.HIGHEST
    wc = jnp.dot(p["fc1_w"].T, w2m, precision=hp)                  # (in, 3072)
    shiftc = shift2 + jnp.dot(p["fc1_b"], w2m, precision=hp) * scale2
    l2 = _make_layer(wc, scale2, shiftc, 192, jnp.bfloat16)

    def poly(w):
        # Polyphase weight for ConvTranspose2d(k=4, s=2, p=1):
        #   W_poly[(pr, qc, cin), (r, c, cout)] = w[cin, cout, 3-2*pr-r, 3-2*qc-c]
        parts = []
        for pr in range(2):
            for qc in range(2):
                blocks = [w[:, :, 3 - 2 * pr - r, 3 - 2 * qc - c]
                          for r in range(2) for c in range(2)]      # (Cin, Cout)
                parts.append(jnp.concatenate(blocks, axis=1))        # (Cin, 4*Cout)
        return jnp.concatenate(parts, axis=0)                        # (4*Cin, 4*Cout)

    s3, t3 = bn_fold(p["g3"], p["b3"], p["m3"], p["v3"])
    l3 = _make_layer(poly(p["w3"]), jnp.tile(s3, 4), jnp.tile(t3, 4), 96, jnp.bfloat16)
    s4, t4 = bn_fold(p["g4"], p["b4"], p["m4"], p["v4"])
    l4 = _make_layer(poly(p["w4"]), jnp.tile(s4, 4), jnp.tile(t4, 4), 48, jnp.bfloat16)
    C = p["w5"].shape[1]
    l5 = _make_layer(poly(p["w5"]), jnp.ones((4 * C,), jnp.float32),
                     jnp.zeros((4 * C,), jnp.float32), C, jnp.float32)
    return dict(l2=l2, l3=l3, l4=l4, l5=l5)


def tconv_s2_poly(x, layer, activation):
    """ConvTranspose2d(k=4, s=2, p=1, bias=False) + per-channel affine + act.

    Polyphase form: every output phase (r, c) in {0,1}^2 is a dense 2x2-tap
    conv of x; all four phases come from one matmul (K = 4*Cin, N = 4*Cout),
    then a shifted pixel-shuffle assembles the (2H, 2W) output.
    """
    B, H, W, Cin = x.shape
    cout = layer["cout"]
    assert layer["k"] == 4 * Cin
    xp = jnp.pad(x, ((0, 0), (1, 1), (1, 1), (0, 0)))
    # 2x2 patches at all (H+1) x (W+1) positions, feature order (pr, qc, cin).
    cols = [xp[:, pr:pr + H + 1, qc:qc + W + 1, :]
            for pr in range(2) for qc in range(2)]
    patches = jnp.concatenate(cols, axis=-1).reshape(B * (H + 1) * (W + 1), 4 * Cin)
    z = fused_matmul(patches, layer, activation)
    z = z.reshape(B, H + 1, W + 1, 2, 2, cout)          # (..., r, c, cout)
    # y[2i+r, 2j+c] = z[i+r, j+c, r, c]
    y00 = z[:, 0:H,     0:W,     0, 0, :]
    y01 = z[:, 0:H,     1:W + 1, 0, 1, :]
    y10 = z[:, 1:H + 1, 0:W,     1, 0, :]
    y11 = z[:, 1:H + 1, 1:W + 1, 1, 1, :]
    row0 = jnp.stack([y00, y01], axis=-2)               # (B, H, W, 2[c], cout)
    row1 = jnp.stack([y10, y11], axis=-2)
    y = jnp.stack([row0, row1], axis=3)                 # (B, H, W, 2[r], 2[c], cout)
    y = jnp.transpose(y, (0, 1, 3, 2, 4, 5)).reshape(B, 2 * H, 2 * W, cout)
    return y


def acgan_generator_forward(noise, onehot, params):
    B = noise.shape[0]
    x = jnp.concatenate([noise, onehot], axis=1)
    # fc1 -> tconv2(1x1) -> BN2 -> ReLU, folded into a single fused matmul.
    h = fused_matmul(x, params["l2"], "relu")           # (B, 4*4*192) in (kh, kw, cout)
    h = h.reshape(B, 4, 4, 192)                         # NHWC
    h = tconv_s2_poly(h, params["l3"], "relu")          # (B, 8, 8, 96)
    h = tconv_s2_poly(h, params["l4"], "relu")          # (B, 16, 16, 48)
    h = tconv_s2_poly(h, params["l5"], "tanh")          # (B, 32, 32, C)
    return jnp.transpose(h, (0, 3, 1, 2))               # NCHW


# ---------------------------- Pure-JAX reference --------------------------- #

def ref_forward(noise, onehot, p):
    eps = 1e-5
    hp = lax.Precision.HIGHEST
    x = jnp.concatenate([noise, onehot], axis=1)
    h = jnp.dot(x, p["fc1_w"].T, precision=hp) + p["fc1_b"]
    h = h.reshape(-1, 384, 1, 1)

    def tconv(h, w, s, pad):
        k = w.shape[-1]
        wf = jnp.transpose(w[:, :, ::-1, ::-1], (1, 0, 2, 3))   # (Cout, Cin, kh, kw)
        return lax.conv_general_dilated(
            h, wf, window_strides=(1, 1),
            padding=[(k - 1 - pad, k - 1 - pad)] * 2,
            lhs_dilation=(s, s),
            dimension_numbers=("NCHW", "OIHW", "NCHW"),
            precision=hp)

    def bn(h, g, b, m, v):
        return (g[None, :, None, None] * (h - m[None, :, None, None])
                / jnp.sqrt(v[None, :, None, None] + eps) + b[None, :, None, None])

    h = jax.nn.relu(bn(tconv(h, p["w2"], 1, 0), p["g2"], p["b2"], p["m2"], p["v2"]))
    h = jax.nn.relu(bn(tconv(h, p["w3"], 2, 1), p["g3"], p["b3"], p["m3"], p["v3"]))
    h = jax.nn.relu(bn(tconv(h, p["w4"], 2, 1), p["g4"], p["b4"], p["m4"], p["v4"]))
    h = jnp.tanh(tconv(h, p["w5"], 2, 1))
    return h


# --------------------------------- Params ---------------------------------- #

def init_params(key, n_classes, noise_size, num_channels):
    input_size = n_classes + noise_size
    keys = iter(jax.random.split(key, 24))

    def nrm(shape, scale=0.05):
        return scale * jax.random.normal(next(keys), shape, jnp.float32)

    p = {
        "fc1_w": nrm((384, input_size)),
        "fc1_b": nrm((384,)),
        "w2": nrm((384, 192, 4, 4)),
        "w3": nrm((192, 96, 4, 4)),
        "w4": nrm((96, 48, 4, 4)),
        "w5": nrm((48, num_channels, 4, 4)),
    }
    for tag, c in (("2", 192), ("3", 96), ("4", 48)):
        p["g" + tag] = 1.0 + nrm((c,), 0.1)
        p["b" + tag] = nrm((c,), 0.1)
        p["m" + tag] = nrm((c,), 0.1)
        p["v" + tag] = 1.0 + jnp.abs(nrm((c,), 0.1))
    return p


# ---------------------------------- Main ----------------------------------- #

if __name__ == "__main__":
    B, n_classes, noise_size, num_channels = 2, 10, 100, 3
    key = jax.random.PRNGKey(0)
    kp, kn, kl = jax.random.split(key, 3)

    params = init_params(kp, n_classes, noise_size, num_channels)
    noise = jax.random.normal(kn, (B, noise_size), jnp.float32)
    labels = jax.random.randint(kl, (B,), 0, n_classes)
    onehot = jax.nn.one_hot(labels, n_classes, dtype=jnp.float32)

    # One-time weight preparation (BN fold, fc1+tconv2 fold, polyphase, bf16).
    prepared = prepare_params(params)
    fwd = jax.jit(functools.partial(acgan_generator_forward, params=prepared))

    out = jax.block_until_ready(fwd(noise, onehot))
    assert out.shape == (B, num_channels, 32, 32), out.shape

    ref = jax.block_until_ready(ref_forward(noise, onehot, params))
    max_err = float(jnp.max(jnp.abs(out.astype(jnp.float32) - ref)))
    assert max_err < 2e-2, max_err   # bf16 MXU operands, f32 accumulation

    print("KERNEL_OK")
</pallas_src>

<mosaic_0001>
module attributes {stable_mosaic.version = 11 : i64} {
  func.func @_fused_matmul_kernel(%arg0: i32, %arg1: memref<16x128xbf16, #tpu.memory_space<vmem>>, %arg2: memref<128x3072xbf16, #tpu.memory_space<vmem>>, %arg3: memref<1x3072xf32, #tpu.memory_space<vmem>>, %arg4: memref<1x3072xf32, #tpu.memory_space<vmem>>, %arg5: memref<16x3072xbf16, #tpu.memory_space<vmem>>) attributes {dimension_semantics = [#tpu.dimension_semantics<parallel>], iteration_bounds = array<i64: 1>, scalar_prefetch = 0 : i64, scratch_operands = 0 : i64, tpu.core_type = #tpu.core_type<tc>, window_params = [{transform_indices = @transform_0, window_bounds = array<i64: 16, 128>}, {pipeline_mode = #tpu.pipeline_mode<synchronous>, transform_indices = @transform_1, window_bounds = array<i64: 128, 3072>}, {pipeline_mode = #tpu.pipeline_mode<synchronous>, transform_indices = @transform_2, window_bounds = array<i64: 1, 3072>}, {pipeline_mode = #tpu.pipeline_mode<synchronous>, transform_indices = @transform_3, window_bounds = array<i64: 1, 3072>}, {transform_indices = @transform_4, window_bounds = array<i64: 16, 3072>}]} {
    %c0 = arith.constant 0 : index
    %c0_0 = arith.constant 0 : index
    %0 = vector.load %arg1[%c0, %c0_0] : memref<16x128xbf16, #tpu.memory_space<vmem>>, vector<16x128xbf16>
    %c0_1 = arith.constant 0 : index
    %c0_2 = arith.constant 0 : index
    %1 = vector.load %arg2[%c0_1, %c0_2] : memref<128x3072xbf16, #tpu.memory_space<vmem>>, vector<128x3072xbf16>
    %cst = arith.constant dense<0.000000e+00> : vector<16x3072xf32>
    %2 = tpu.matmul %0, %1, %cst {dimension_numbers = #tpu.dot_dimension_numbers<[1], [0], [0], [1], [0, 0, 1, 1], [], []>} : vector<16x128xbf16>, vector<128x3072xbf16>, vector<16x3072xf32> -> vector<16x3072xf32>
    %c0_3 = arith.constant 0 : index
    %c0_4 = arith.constant 0 : index
    %3 = vector.load %arg3[%c0_3, %c0_4] : memref<1x3072xf32, #tpu.memory_space<vmem>>, vector<1x3072xf32>
    %4 = vector.broadcast %3 : vector<1x3072xf32> to vector<16x3072xf32>
    %5 = arith.mulf %2, %4 : vector<16x3072xf32>
    %c0_5 = arith.constant 0 : index
    %c0_6 = arith.constant 0 : index
    %6 = vector.load %arg4[%c0_5, %c0_6] : memref<1x3072xf32, #tpu.memory_space<vmem>>, vector<1x3072xf32>
    %7 = vector.broadcast %6 : vector<1x3072xf32> to vector<16x3072xf32>
    %8 = arith.addf %5, %7 : vector<16x3072xf32>
    %cst_7 = arith.constant 0.000000e+00 : f32
    %9 = vector.broadcast %cst_7 : f32 to vector<16x3072xf32>
    %10 = arith.maximumf %8, %9 : vector<16x3072xf32>
    %11 = arith.truncf %10 : vector<16x3072xf32> to vector<16x3072xbf16>
    %c0_8 = arith.constant 0 : index
    %c0_9 = arith.constant 0 : index
    %12 = vector.load %arg5[%c0_8, %c0_9] : memref<16x3072xbf16, #tpu.memory_space<vmem>>, vector<16x3072xbf16>
    tpu.vector_store %arg5[%c0_8, %c0_9], %11 {strides = array<i32>} : memref<16x3072xbf16, #tpu.memory_space<vmem>>, vector<16x3072xbf16>,
    return
  }
  func.func @transform_0(%arg0: i32) -> (i32, i32) {
    %c0_i32 = arith.constant 0 : i32
    %c0_i32_0 = arith.constant 0 : i32
    return %arg0, %c0_i32 : i32, i32
  }
  func.func @transform_1(%arg0: i32) -> (i32, i32) {
    %c0_i32 = arith.constant 0 : i32
    %c0_i32_0 = arith.constant 0 : i32
    %c0_i32_1 = arith.constant 0 : i32
    return %c0_i32, %c0_i32_0 : i32, i32
  }
  func.func @transform_2(%arg0: i32) -> (i32, i32) {
    %c0_i32 = arith.constant 0 : i32
    %c0_i32_0 = arith.constant 0 : i32
    %c0_i32_1 = arith.constant 0 : i32
    return %c0_i32, %c0_i32_0 : i32, i32
  }
  func.func @transform_3(%arg0: i32) -> (i32, i32) {
    %c0_i32 = arith.constant 0 : i32
    %c0_i32_0 = arith.constant 0 : i32
    %c0_i32_1 = arith.constant 0 : i32
    return %c0_i32, %c0_i32_0 : i32, i32
  }
  func.func @transform_4(%arg0: i32) -> (i32, i32) {
    %c0_i32 = arith.constant 0 : i32
    %c0_i32_0 = arith.constant 0 : i32
    return %arg0, %c0_i32 : i32, i32
  }
}

module attributes {stable_mosaic.version = 11 : i64} {
  func.func @_fused_matmul_kernel(%arg0: i32, %arg1: memref<32x768xbf16, #tpu.memory_space<vmem>>, %arg2: memref<768x384xbf16, #tpu.memory_space<vmem>>, %arg3: memref<1x384xf32, #tpu.memory_space<vmem>>, %arg4: memref<1x384xf32, #tpu.memory_space<vmem>>, %arg5: memref<32x384xbf16, #tpu.memory_space<vmem>>) attributes {dimension_semantics = [#tpu.dimension_semantics<parallel>], iteration_bounds = array<i64: 2>, scalar_prefetch = 0 : i64, scratch_operands = 0 : i64, tpu.core_type = #tpu.core_type<tc>, window_params = [{transform_indices = @transform_0, window_bounds = array<i64: 32, 768>}, {pipeline_mode = #tpu.pipeline_mode<synchronous>, transform_indices = @transform_1, window_bounds = array<i64: 768, 384>}, {pipeline_mode = #tpu.pipeline_mode<synchronous>, transform_indices = @transform_2, window_bounds = array<i64: 1, 384>}, {pipeline_mode = #tpu.pipeline_mode<synchronous>, transform_indices = @transform_3, window_bounds = array<i64: 1, 384>}, {transform_indices = @transform_4, window_bounds = array<i64: 32, 384>}]} {
    %c0 = arith.constant 0 : index
    %c0_0 = arith.constant 0 : index
    %0 = vector.load %arg1[%c0, %c0_0] : memref<32x768xbf16, #tpu.memory_space<vmem>>, vector<32x768xbf16>
    %c0_1 = arith.constant 0 : index
    %c0_2 = arith.constant 0 : index
    %1 = vector.load %arg2[%c0_1, %c0_2] : memref<768x384xbf16, #tpu.memory_space<vmem>>, vector<768x384xbf16>
    %cst = arith.constant dense<0.000000e+00> : vector<32x384xf32>
    %2 = tpu.matmul %0, %1, %cst {dimension_numbers = #tpu.dot_dimension_numbers<[1], [0], [0], [1], [0, 0, 1, 1], [], []>} : vector<32x768xbf16>, vector<768x384xbf16>, vector<32x384xf32> -> vector<32x384xf32>
    %c0_3 = arith.constant 0 : index
    %c0_4 = arith.constant 0 : index
    %3 = vector.load %arg3[%c0_3, %c0_4] : memref<1x384xf32, #tpu.memory_space<vmem>>, vector<1x384xf32>
    %4 = vector.broadcast %3 : vector<1x384xf32> to vector<32x384xf32>
    %5 = arith.mulf %2, %4 : vector<32x384xf32>
    %c0_5 = arith.constant 0 : index
    %c0_6 = arith.constant 0 : index
    %6 = vector.load %arg4[%c0_5, %c0_6] : memref<1x384xf32, #tpu.memory_space<vmem>>, vector<1x384xf32>
    %7 = vector.broadcast %6 : vector<1x384xf32> to vector<32x384xf32>
    %8 = arith.addf %5, %7 : vector<32x384xf32>
    %cst_7 = arith.constant 0.000000e+00 : f32
    %9 = vector.broadcast %cst_7 : f32 to vector<32x384xf32>
    %10 = arith.maximumf %8, %9 : vector<32x384xf32>
    %11 = arith.truncf %10 : vector<32x384xf32> to vector<32x384xbf16>
    %c0_8 = arith.constant 0 : index
    %c0_9 = arith.constant 0 : index
    %12 = vector.load %arg5[%c0_8, %c0_9] : memref<32x384xbf16, #tpu.memory_space<vmem>>, vector<32x384xbf16>
    tpu.vector_store %arg5[%c0_8, %c0_9], %11 {strides = array<i32>} : memref<32x384xbf16, #tpu.memory_space<vmem>>, vector<32x384xbf16>,
    return
  }
  func.func @transform_0(%arg0: i32) -> (i32, i32) {
    %c0_i32 = arith.constant 0 : i32
    %c0_i32_0 = arith.constant 0 : i32
    return %arg0, %c0_i32 : i32, i32
  }
  func.func @transform_1(%arg0: i32) -> (i32, i32) {
    %c0_i32 = arith.constant 0 : i32
    %c0_i32_0 = arith.constant 0 : i32
    %c0_i32_1 = arith.constant 0 : i32
    return %c0_i32, %c0_i32_0 : i32, i32
  }
  func.func @transform_2(%arg0: i32) -> (i32, i32) {
    %c0_i32 = arith.constant 0 : i32
    %c0_i32_0 = arith.constant 0 : i32
    %c0_i32_1 = arith.constant 0 : i32
    return %c0_i32, %c0_i32_0 : i32, i32
  }
  func.func @transform_3(%arg0: i32) -> (i32, i32) {
    %c0_i32 = arith.constant 0 : i32
    %c0_i32_0 = arith.constant 0 : i32
    %c0_i32_1 = arith.constant 0 : i32
    return %c0_i32, %c0_i32_0 : i32, i32
  }
  func.func @transform_4(%arg0: i32) -> (i32, i32) {
    %c0_i32 = arith.constant 0 : i32
    %c0_i32_0 = arith.constant 0 : i32
    return %arg0, %c0_i32 : i32, i32
  }
}

module attributes {stable_mosaic.version = 11 : i64} {
  func.func @_fused_matmul_kernel(%arg0: i32, %arg1: memref<96x384xbf16, #tpu.memory_space<vmem>>, %arg2: memref<384x256xbf16, #tpu.memory_space<vmem>>, %arg3: memref<1x256xf32, #tpu.memory_space<vmem>>, %arg4: memref<1x256xf32, #tpu.memory_space<vmem>>, %arg5: memref<96x256xbf16, #tpu.memory_space<vmem>>) attributes {dimension_semantics = [#tpu.dimension_semantics<parallel>], iteration_bounds = array<i64: 2>, scalar_prefetch = 0 : i64, scratch_operands = 0 : i64, tpu.core_type = #tpu.core_type<tc>, window_params = [{transform_indices = @transform_0, window_bounds = array<i64: 96, 384>}, {pipeline_mode = #tpu.pipeline_mode<synchronous>, transform_indices = @transform_1, window_bounds = array<i64: 384, 256>}, {pipeline_mode = #tpu.pipeline_mode<synchronous>, transform_indices = @transform_2, window_bounds = array<i64: 1, 256>}, {pipeline_mode = #tpu.pipeline_mode<synchronous>, transform_indices = @transform_3, window_bounds = array<i64: 1, 256>}, {transform_indices = @transform_4, window_bounds = array<i64: 96, 256>}]} {
    %c0 = arith.constant 0 : index
    %c0_0 = arith.constant 0 : index
    %0 = vector.load %arg1[%c0, %c0_0] : memref<96x384xbf16, #tpu.memory_space<vmem>>, vector<96x384xbf16>
    %c0_1 = arith.constant 0 : index
    %c0_2 = arith.constant 0 : index
    %1 = vector.load %arg2[%c0_1, %c0_2] : memref<384x256xbf16, #tpu.memory_space<vmem>>, vector<384x256xbf16>
    %cst = arith.constant dense<0.000000e+00> : vector<96x256xf32>
    %2 = tpu.matmul %0, %1, %cst {dimension_numbers = #tpu.dot_dimension_numbers<[1], [0], [0], [1], [0, 0, 1, 1], [], []>} : vector<96x384xbf16>, vector<384x256xbf16>, vector<96x256xf32> -> vector<96x256xf32>
    %c0_3 = arith.constant 0 : index
    %c0_4 = arith.constant 0 : index
    %3 = vector.load %arg3[%c0_3, %c0_4] : memref<1x256xf32, #tpu.memory_space<vmem>>, vector<1x256xf32>
    %4 = vector.broadcast %3 : vector<1x256xf32> to vector<96x256xf32>
    %5 = arith.mulf %2, %4 : vector<96x256xf32>
    %c0_5 = arith.constant 0 : index
    %c0_6 = arith.constant 0 : index
    %6 = vector.load %arg4[%c0_5, %c0_6] : memref<1x256xf32, #tpu.memory_space<vmem>>, vector<1x256xf32>
    %7 = vector.broadcast %6 : vector<1x256xf32> to vector<96x256xf32>
    %8 = arith.addf %5, %7 : vector<96x256xf32>
    %cst_7 = arith.constant 0.000000e+00 : f32
    %9 = vector.broadcast %cst_7 : f32 to vector<96x256xf32>
    %10 = arith.maximumf %8, %9 : vector<96x256xf32>
    %11 = arith.truncf %10 : vector<96x256xf32> to vector<96x256xbf16>
    %c0_8 = arith.constant 0 : index
    %c0_9 = arith.constant 0 : index
    %12 = vector.load %arg5[%c0_8, %c0_9] : memref<96x256xbf16, #tpu.memory_space<vmem>>, vector<96x256xbf16>
    tpu.vector_store %arg5[%c0_8, %c0_9], %11 {strides = array<i32>} : memref<96x256xbf16, #tpu.memory_space<vmem>>, vector<96x256xbf16>,
    return
  }
  func.func @transform_0(%arg0: i32) -> (i32, i32) {
    %c0_i32 = arith.constant 0 : i32
    %c0_i32_0 = arith.constant 0 : i32
    return %arg0, %c0_i32 : i32, i32
  }
  func.func @transform_1(%arg0: i32) -> (i32, i32) {
    %c0_i32 = arith.constant 0 : i32
    %c0_i32_0 = arith.constant 0 : i32
    %c0_i32_1 = arith.constant 0 : i32
    return %c0_i32, %c0_i32_0 : i32, i32
  }
  func.func @transform_2(%arg0: i32) -> (i32, i32) {
    %c0_i32 = arith.constant 0 : i32
    %c0_i32_0 = arith.constant 0 : i32
    %c0_i32_1 = arith.constant 0 : i32
    return %c0_i32, %c0_i32_0 : i32, i32
  }
  func.func @transform_3(%arg0: i32) -> (i32, i32) {
    %c0_i32 = arith.constant 0 : i32
    %c0_i32_0 = arith.constant 0 : i32
    %c0_i32_1 = arith.constant 0 : i32
    return %c0_i32, %c0_i32_0 : i32, i32
  }
  func.func @transform_4(%arg0: i32) -> (i32, i32) {
    %c0_i32 = arith.constant 0 : i32
    %c0_i32_0 = arith.constant 0 : i32
    return %arg0, %c0_i32 : i32, i32
  }
}

module attributes {stable_mosaic.version = 11 : i64} {
  func.func @_fused_matmul_kernel(%arg0: i32, %arg1: memref<304x256xbf16, #tpu.memory_space<vmem>>, %arg2: memref<256x128xbf16, #tpu.memory_space<vmem>>, %arg3: memref<1x128xf32, #tpu.memory_space<vmem>>, %arg4: memref<1x128xf32, #tpu.memory_space<vmem>>, %arg5: memref<304x128xf32, #tpu.memory_space<vmem>>) attributes {dimension_semantics = [#tpu.dimension_semantics<parallel>], iteration_bounds = array<i64: 2>, scalar_prefetch = 0 : i64, scratch_operands = 0 : i64, tpu.core_type = #tpu.core_type<tc>, window_params = [{transform_indices = @transform_0, window_bounds = array<i64: 304, 256>}, {pipeline_mode = #tpu.pipeline_mode<synchronous>, transform_indices = @transform_1, window_bounds = array<i64: 256, 128>}, {pipeline_mode = #tpu.pipeline_mode<synchronous>, transform_indices = @transform_2, window_bounds = array<i64: 1, 128>}, {pipeline_mode = #tpu.pipeline_mode<synchronous>, transform_indices = @transform_3, window_bounds = array<i64: 1, 128>}, {transform_indices = @transform_4, window_bounds = array<i64: 304, 128>}]} {
    %c0 = arith.constant 0 : index
    %c0_0 = arith.constant 0 : index
    %0 = vector.load %arg1[%c0, %c0_0] : memref<304x256xbf16, #tpu.memory_space<vmem>>, vector<304x256xbf16>
    %c0_1 = arith.constant 0 : index
    %c0_2 = arith.constant 0 : index
    %1 = vector.load %arg2[%c0_1, %c0_2] : memref<256x128xbf16, #tpu.memory_space<vmem>>, vector<256x128xbf16>
    %cst = arith.constant dense<0.000000e+00> : vector<304x128xf32>
    %2 = tpu.matmul %0, %1, %cst {dimension_numbers = #tpu.dot_dimension_numbers<[1], [0], [0], [1], [0, 0, 1, 1], [], []>} : vector<304x256xbf16>, vector<256x128xbf16>, vector<304x128xf32> -> vector<304x128xf32>
    %c0_3 = arith.constant 0 : index
    %c0_4 = arith.constant 0 : index
    %3 = vector.load %arg3[%c0_3, %c0_4] : memref<1x128xf32, #tpu.memory_space<vmem>>, vector<1x128xf32>
    %4 = vector.broadcast %3 : vector<1x128xf32> to vector<304x128xf32>
    %5 = arith.mulf %2, %4 : vector<304x128xf32>
    %c0_5 = arith.constant 0 : index
    %c0_6 = arith.constant 0 : index
    %6 = vector.load %arg4[%c0_5, %c0_6] : memref<1x128xf32, #tpu.memory_space<vmem>>, vector<1x128xf32>
    %7 = vector.broadcast %6 : vector<1x128xf32> to vector<304x128xf32>
    %8 = arith.addf %5, %7 : vector<304x128xf32>
    %9 = math.tanh %8 : vector<304x128xf32>
    %c0_7 = arith.constant 0 : index
    %c0_8 = arith.constant 0 : index
    %10 = vector.load %arg5[%c0_7, %c0_8] : memref<304x128xf32, #tpu.memory_space<vmem>>, vector<304x128xf32>
    tpu.vector_store %arg5[%c0_7, %c0_8], %9 {strides = array<i32>} : memref<304x128xf32, #tpu.memory_space<vmem>>, vector<304x128xf32>,
    return
  }
  func.func @transform_0(%arg0: i32) -> (i32, i32) {
    %c0_i32 = arith.constant 0 : i32
    %c0_i32_0 = arith.constant 0 : i32
    return %arg0, %c0_i32 : i32, i32
  }
  func.func @transform_1(%arg0: i32) -> (i32, i32) {
    %c0_i32 = arith.constant 0 : i32
    %c0_i32_0 = arith.constant 0 : i32
    %c0_i32_1 = arith.constant 0 : i32
    return %c0_i32, %c0_i32_0 : i32, i32
  }
  func.func @transform_2(%arg0: i32) -> (i32, i32) {
    %c0_i32 = arith.constant 0 : i32
    %c0_i32_0 = arith.constant 0 : i32
    %c0_i32_1 = arith.constant 0 : i32
    return %c0_i32, %c0_i32_0 : i32, i32
  }
  func.func @transform_3(%arg0: i32) -> (i32, i32) {
    %c0_i32 = arith.constant 0 : i32
    %c0_i32_0 = arith.constant 0 : i32
    %c0_i32_1 = arith.constant 0 : i32
    return %c0_i32, %c0_i32_0 : i32, i32
  }
  func.func @transform_4(%arg0: i32) -> (i32, i32) {
    %c0_i32 = arith.constant 0 : i32
    %c0_i32_0 = arith.constant 0 : i32
    return %arg0, %c0_i32 : i32, i32
  }
}

</mosaic_0001>

<bundles_post_ra>
// kernel: acgan_generator_forward.4
= control target key start
LH: loop header
LB: loop body
LE: loop exit
PB: predicated region body
PF: predicated region fallthrough
CT: control target
= control target key end

     0   :  { %9 = vsyncpa [#allocation3], 0  ;;  %s3142_s0 = inlined_call_operand.vmem [shape: bf16[16,128], index: 0, kind: input, shape index: {}]   ;;  %s3143_s1 = inlined_call_operand.hbm [shape: bf16[128,3072], index: 1, kind: input, shape index: {}]   ;;  %s3144_s2 = inlined_call_operand.hbm [shape: f32[1,3072], index: 2, kind: input, shape index: {}]   ;;  %s3145_s3 = inlined_call_operand.hbm [shape: f32[1,3072], index: 3, kind: input, shape index: {}]   ;;  %s3146_s4 = inlined_call_operand.vmem [shape: bf16[16,3072], index: 4, kind: output, shape index: {}]  }
   0x1   :  { %10 = vsyncpa [#allocation5], 0  ;;  %s31_s17 = sshll.u32 %s3144_s2, 4  ;;  %s2909_s18 = smov [#allocation4]   ;;  %s32_s17 = int_to_ptr.hbm [resolvable:$true] %s31_s17 }
   0x2   :  { %s33_s19 = sshll.u32 %s2909_s18, 4  ;;  %s17_s22 = sshll.u32 %s3143_s1, 4  ;;  %s34_s19 = int_to_ptr.vmem [resolvable:$true] %s33_s19  ;;  %s18_s22 = int_to_ptr.hbm [resolvable:$true] %s17_s22 }
   0x3   :  { %36 = dma.hbm_to_vmem [thread:$0]  %s32_s17, 384, %s34_s19, [#allocation5]  }
   0x4   :  { %s2910_s23 = smov [#allocation2]   ;;  %s2911_s25 = smov 1536  }
   0x5   :  { %s19_s24 = sshll.u32 %s2910_s23, 4  ;;  %s2912_s26 = smov 96   ;;  %s20_s24 = int_to_ptr.vmem [resolvable:$true] %s19_s24 }
   0x6   :  { %25 = dma.hbm_to_vmem [thread:$0]  %s18_s22, 24576, %s20_s24, [#allocation3], %s2911_s25, %s2911_s25, %s2912_s26  }
   0x7   :  { %s42_s2 = sshll.u32 %s3145_s3, 4  ;;  %s2913_s29 = smov [#allocation6]   ;;  %s43_s2 = int_to_ptr.hbm [resolvable:$true] %s42_s2 }
   0x8   :  { %s44_s30 = sshll.u32 %s2913_s29, 4  ;;  %s45_s30 = int_to_ptr.vmem [resolvable:$true] %s44_s30 }
   0x9   :  { %47 = dma.hbm_to_vmem [thread:$0]  %s43_s2, 384, %s45_s30, [#allocation5]  }
   0xa   :  { %2905 = dma.done.wait [#allocation3], 24576  }
   0xb   :  { %2906 = vsyncadd [#allocation3], 4294942720 }
   0xc   :  { %2907 = dma.done.wait [#allocation5], 768  }
   0xd   :  { %2908 = vsyncadd [#allocation5], 4294966528  ;;  %v2540_v0 = vld [vmem:[#allocation2 + $0x540] sm:$0xf]  ;;  %v2803_v2 = vld [vmem:[#allocation2 + $0x544] sm:$0xf] }
   0xe   :  { %v2815_v1 = vld [vmem:[#allocation2 + $0x59c] sm:$0xf0]  ;;  %v2542_v4 = vld [vmem:[#allocation2 + $0x5a0] sm:$0xf0]  ;;  %v2548_v5 = vld [vmem:[#allocation2 + $0x548] sm:$0xf] }
   0xf   :  { %v2541_v3 = vor.u32 %v2815_v1, %v2540_v0  ;;  %v2816_v6 = vld [vmem:[#allocation2 + $0x5a4] sm:$0xf0]  ;;  %v2545_v7 = vor.u32 %v2803_v2, %v2542_v4  ;;  %v2804_v9 = vld [vmem:[#allocation2 + $0x54c] sm:$0xf]  ;;  %v2444_v11 = vld [vmem:[#allocation2 + $0x480] sm:$0xf] }
  0x10   :  { %v2549_v8 = vor.u32 %v2816_v6, %v2548_v5  ;;  %v2550_v10 = vld [vmem:[#allocation2 + $0x5a8] sm:$0xf0]  ;;  %v2791_v13 = vld [vmem:[#allocation2 + $0x4dc] sm:$0xf0]  ;;  %v2779_v14 = vld [vmem:[#allocation2 + $0x484] sm:$0xf] }
  0x11   :  { %1220 = vmatpush.bf16.msra.mxu0 %v2541_v3  ;;  %v2553_v12 = vor.u32 %v2804_v9, %v2550_v10  ;;  %v2446_v15 = vld [vmem:[#allocation2 + $0x4e0] sm:$0xf0]  ;;  %1234 = vmatpush.bf16.msra.mxu1 %v2545_v7  ;;  %v2445_v16 = vor.u32 %v2791_v13, %v2444_v11  ;;  %v2452_v18 = vld [vmem:[#allocation2 + $0x488] sm:$0xf]  ;;  %v2780_v20 = vld [vmem:[#allocation2 + $0x48c] sm:$0xf] }
  0x12   :  { %1248 = vmatpush.bf16.msra.mxu2 %v2549_v8  ;;  %v2449_v17 = vor.u32 %v2779_v14, %v2446_v15  ;;  %v2792_v19 = vld [vmem:[#allocation2 + $0x4e4] sm:$0xf0]  ;;  %v2454_v22 = vld [vmem:[#allocation2 + $0x4e8] sm:$0xf0]  ;;  %v2348_v23 = vld [vmem:[#allocation2 + $0x3c0] sm:$0xf] }
  0x13   :  { %1262 = vmatpush.bf16.msra.mxu3 %v2553_v12  ;;  %v2453_v21 = vor.u32 %v2792_v19, %v2452_v18  ;;  %v2767_v24 = vld [vmem:[#allocation2 + $0x41c] sm:$0xf0]  ;;  %v2457_v25 = vor.u32 %v2780_v20, %v2454_v22  ;;  %v2755_v26 = vld [vmem:[#allocation2 + $0x3c4] sm:$0xf]  ;;  %v2356_v28 = vld [vmem:[#allocation2 + $0x3c8] sm:$0xf] }
  0x14   :  { %v2350_v27 = vld [vmem:[#allocation2 + $0x420] sm:$0xf0]  ;;  %v2349_v29 = vor.u32 %v2767_v24, %v2348_v23  ;;  %v2768_v30 = vld [vmem:[#allocation2 + $0x424] sm:$0xf0]  ;;  %v2756_v31 = vld [vmem:[#allocation2 + $0x3cc] sm:$0xf] }
  0x15   :  { %1221 = vmatpush.bf16.msra.mxu0 %v2445_v16  ;;  %v2358_v32 = vld [vmem:[#allocation2 + $0x428] sm:$0xf0]  ;;  %1235 = vmatpush.bf16.msra.mxu1 %v2449_v17  ;;  %v2353_v33 = vor.u32 %v2755_v26, %v2350_v27  ;;  %v2357_v34 = vor.u32 %v2768_v30, %v2356_v28  ;;  %v2252_v35 = vld [vmem:[#allocation2 + $0x300] sm:$0xf]  ;;  %v2731_v37 = vld [vmem:[#allocation2 + $0x304] sm:$0xf] }
  0x16   :  { %1249 = vmatpush.bf16.msra.mxu2 %v2453_v21  ;;  %v2743_v36 = vld [vmem:[#allocation2 + $0x35c] sm:$0xf0]  ;;  %v2361_v38 = vor.u32 %v2756_v31, %v2358_v32  ;;  %v2254_v39 = vld [vmem:[#allocation2 + $0x360] sm:$0xf0]  ;;  %v2260_v40 = vld [vmem:[#allocation2 + $0x308] sm:$0xf] }
  0x17   :  { %1263 = vmatpush.bf16.msra.mxu3 %v2457_v25  ;;  %v2744_v41 = vld [vmem:[#allocation2 + $0x364] sm:$0xf0]  ;;  %v2732_v42 = vld [vmem:[#allocation2 + $0x30c] sm:$0xf]  ;;  %v2253_v44 = vor.u32 %v2743_v36, %v2252_v35  ;;  %v2257_v45 = vor.u32 %v2731_v37, %v2254_v39  ;;  %v2156_v47 = vld [vmem:[#allocation2 + $0x240] sm:$0xf] }
  0x18   :  { %v2262_v43 = vld [vmem:[#allocation2 + $0x368] sm:$0xf0]  ;;  %v2261_v46 = vor.u32 %v2744_v41, %v2260_v40  ;;  %v2719_v48 = vld [vmem:[#allocation2 + $0x29c] sm:$0xf0]  ;;  %v2707_v49 = vld [vmem:[#allocation2 + $0x244] sm:$0xf] }
  0x19   :  { %1222 = vmatpush.bf16.msra.mxu0 %v2349_v29  ;;  %1236 = vmatpush.bf16.msra.mxu1 %v2353_v33  ;;  %v2265_v50 = vor.u32 %v2732_v42, %v2262_v43  ;;  %v2158_v51 = vld [vmem:[#allocation2 + $0x2a0] sm:$0xf0]  ;;  %v2164_v52 = vld [vmem:[#allocation2 + $0x248] sm:$0xf]  ;;  %v2708_v54 = vld [vmem:[#allocation2 + $0x24c] sm:$0xf]  ;;  %v2157_v56 = vor.u32 %v2719_v48, %v2156_v47 }
  0x1a   :  { %1250 = vmatpush.bf16.msra.mxu2 %v2357_v34  ;;  %v2720_v53 = vld [vmem:[#allocation2 + $0x2a4] sm:$0xf0]  ;;  %v2166_v55 = vld [vmem:[#allocation2 + $0x2a8] sm:$0xf0]  ;;  %v2161_v57 = vor.u32 %v2707_v49, %v2158_v51  ;;  %v2060_v59 = vld [vmem:[#allocation2 + $0x180] sm:$0xf] }
  0x1b   :  { %1264 = vmatpush.bf16.msra.mxu3 %v2361_v38  ;;  %v2165_v58 = vor.u32 %v2720_v53, %v2164_v52  ;;  %v2695_v60 = vld [vmem:[#allocation2 + $0x1dc] sm:$0xf0]  ;;  %v2683_v61 = vld [vmem:[#allocation2 + $0x184] sm:$0xf]  ;;  %v2169_v62 = vor.u32 %v2708_v54, %v2166_v55  ;;  %v2068_v0 = vld [vmem:[#allocation2 + $0x188] sm:$0xf] }
  0x1c   :  { %v2062_v63 = vld [vmem:[#allocation2 + $0x1e0] sm:$0xf0]  ;;  %v2696_v1 = vld [vmem:[#allocation2 + $0x1e4] sm:$0xf0]  ;;  %v2684_v2 = vld [vmem:[#allocation2 + $0x18c] sm:$0xf]  ;;  %v2061_v4 = vor.u32 %v2695_v60, %v2060_v59 }
  0x1d   :  { %1223 = vmatpush.bf16.msra.mxu0 %v2253_v44  ;;  %1237 = vmatpush.bf16.msra.mxu1 %v2257_v45  ;;  %v2070_v3 = vld [vmem:[#allocation2 + $0x1e8] sm:$0xf0]  ;;  %v2065_v5 = vor.u32 %v2683_v61, %v2062_v63  ;;  %v2069_v6 = vor.u32 %v2696_v1, %v2068_v0  ;;  %v1964_v7 = vld [vmem:[#allocation2 + $0xc0] sm:$0xf]  ;;  %v2659_v9 = vld [vmem:[#allocation2 + $0xc4] sm:$0xf] }
  0x1e   :  { %1251 = vmatpush.bf16.msra.mxu2 %v2261_v46  ;;  %v2671_v8 = vld [vmem:[#allocation2 + $0x11c] sm:$0xf0]  ;;  %v2073_v10 = vor.u32 %v2684_v2, %v2070_v3  ;;  %v1966_v11 = vld [vmem:[#allocation2 + $0x120] sm:$0xf0]  ;;  %v1972_v12 = vld [vmem:[#allocation2 + $0xc8] sm:$0xf] }
  0x1f   :  { %1265 = vmatpush.bf16.msra.mxu3 %v2265_v50  ;;  %v2672_v13 = vld [vmem:[#allocation2 + $0x124] sm:$0xf0]  ;;  %v2660_v14 = vld [vmem:[#allocation2 + $0xcc] sm:$0xf]  ;;  %v1965_v16 = vor.u32 %v2671_v8, %v1964_v7  ;;  %v1868_v17 = vld [vmem:[#allocation2] sm:$0xf]  ;;  %v1969_v19 = vor.u32 %v2659_v9, %v1966_v11 }
  0x20   :  { %v1974_v15 = vld [vmem:[#allocation2 + $0x128] sm:$0xf0]  ;;  %v2647_v18 = vld [vmem:[#allocation2 + $0x5c] sm:$0xf0]  ;;  %v1973_v20 = vor.u32 %v2672_v13, %v1972_v12  ;;  %v2635_v21 = vld [vmem:[#allocation2 + $0x4] sm:$0xf] }
  0x21   :  { %1224 = vmatpush.bf16.msra.mxu0 %v2157_v56  ;;  %1238 = vmatpush.bf16.msra.mxu1 %v2161_v57  ;;  %v1870_v22 = vld [vmem:[#allocation2 + $0x60] sm:$0xf0]  ;;  %v1876_v23 = vld [vmem:[#allocation2 + $0x8] sm:$0xf]  ;;  %v1977_v24 = vor.u32 %v2660_v14, %v1974_v15  ;;  %v2636_v26 = vld [vmem:[#allocation2 + $0xc] sm:$0xf]  ;;  %v1869_v31 = vor.u32 %v2647_v18, %v1868_v17 }
  0x22   :  { %1252 = vmatpush.bf16.msra.mxu2 %v2165_v58  ;;  %v2648_v25 = vld [vmem:[#allocation2 + $0x64] sm:$0xf0]  ;;  %v1878_v27 = vld [vmem:[#allocation2 + $0x68] sm:$0xf0]  ;;  %v2556_v28 = vld [vmem:[#allocation2 + $0x550] sm:$0xf]  ;;  %v1873_v35 = vor.u32 %v2635_v21, %v1870_v22 }
  0x23   :  { %1266 = vmatpush.bf16.msra.mxu3 %v2169_v62  ;;  %v2817_v29 = vld [vmem:[#allocation2 + $0x5ac] sm:$0xf0]  ;;  %v2805_v30 = vld [vmem:[#allocation2 + $0x554] sm:$0xf]  ;;  %v2564_v33 = vld [vmem:[#allocation2 + $0x558] sm:$0xf]  ;;  %v1877_v36 = vor.u32 %v2648_v25, %v1876_v23  ;;  %v1881_v39 = vor.u32 %v2636_v26, %v1878_v27 }
  0x24   :  { %v2558_v32 = vld [vmem:[#allocation2 + $0x5b0] sm:$0xf0]  ;;  %v2818_v34 = vld [vmem:[#allocation2 + $0x5b4] sm:$0xf0]  ;;  %v2806_v37 = vld [vmem:[#allocation2 + $0x55c] sm:$0xf]  ;;  %v2557_v40 = vor.u32 %v2817_v29, %v2556_v28 }
  0x25   :  { %1225 = vmatpush.bf16.msra.mxu0 %v2061_v4  ;;  %1239 = vmatpush.bf16.msra.mxu1 %v2065_v5  ;;  %v2566_v38 = vld [vmem:[#allocation2 + $0x5b8] sm:$0xf0]  ;;  %v2561_v41 = vor.u32 %v2805_v30, %v2558_v32  ;;  %v2565_v42 = vor.u32 %v2818_v34, %v2564_v33  ;;  %v2460_v43 = vld [vmem:[#allocation2 + $0x490] sm:$0xf]  ;;  %v2781_v45 = vld [vmem:[#allocation2 + $0x494] sm:$0xf] }
  0x26   :  { %1253 = vmatpush.bf16.msra.mxu2 %v2069_v6  ;;  %v2793_v44 = vld [vmem:[#allocation2 + $0x4ec] sm:$0xf0]  ;;  %v2569_v46 = vor.u32 %v2806_v37, %v2566_v38  ;;  %v2462_v47 = vld [vmem:[#allocation2 + $0x4f0] sm:$0xf0]  ;;  %v2468_v48 = vld [vmem:[#allocation2 + $0x498] sm:$0xf] }
  0x27   :  { %1267 = vmatpush.bf16.msra.mxu3 %v2073_v10  ;;  %v2794_v49 = vld [vmem:[#allocation2 + $0x4f4] sm:$0xf0]  ;;  %v2782_v50 = vld [vmem:[#allocation2 + $0x49c] sm:$0xf]  ;;  %v2461_v52 = vor.u32 %v2793_v44, %v2460_v43  ;;  %v2465_v53 = vor.u32 %v2781_v45, %v2462_v47  ;;  %v2364_v55 = vld [vmem:[#allocation2 + $0x3d0] sm:$0xf] }
  0x28   :  { %v2470_v51 = vld [vmem:[#allocation2 + $0x4f8] sm:$0xf0]  ;;  %v2469_v54 = vor.u32 %v2794_v49, %v2468_v48  ;;  %v2769_v56 = vld [vmem:[#allocation2 + $0x42c] sm:$0xf0]  ;;  %v2757_v57 = vld [vmem:[#allocation2 + $0x3d4] sm:$0xf] }
  0x29   :  { %1226 = vmatpush.bf16.msra.mxu0 %v1965_v16  ;;  %1240 = vmatpush.bf16.msra.mxu1 %v1969_v19  ;;  %v2473_v58 = vor.u32 %v2782_v50, %v2470_v51  ;;  %v2366_v59 = vld [vmem:[#allocation2 + $0x430] sm:$0xf0]  ;;  %v2372_v60 = vld [vmem:[#allocation2 + $0x3d8] sm:$0xf]  ;;  %v2758_v62 = vld [vmem:[#allocation2 + $0x3dc] sm:$0xf]  ;;  %v2365_v0 = vor.u32 %v2769_v56, %v2364_v55 }
  0x2a   :  { %1254 = vmatpush.bf16.msra.mxu2 %v1973_v20  ;;  %v2770_v61 = vld [vmem:[#allocation2 + $0x434] sm:$0xf0]  ;;  %v2374_v63 = vld [vmem:[#allocation2 + $0x438] sm:$0xf0]  ;;  %v2951_v1 = vld [vmem:[%s3142_s0] sm:$0xff]  ;;  %v2369_v2 = vor.u32 %v2757_v57, %v2366_v59 }
  0x2b   :  { %1268 = vmatpush.bf16.msra.mxu3 %v1977_v24  ;;  %v2373_v3 = vor.u32 %v2770_v61, %v2372_v60  ;;  %v2268_v4 = vld [vmem:[#allocation2 + $0x310] sm:$0xf]  ;;  %v2733_v6 = vld [vmem:[#allocation2 + $0x314] sm:$0xf]  ;;  %v2377_v7 = vor.u32 %v2758_v62, %v2374_v63  ;;  %v2276_v9 = vld [vmem:[#allocation2 + $0x318] sm:$0xf] }
  0x2c   :  { %v2745_v5 = vld [vmem:[#allocation2 + $0x36c] sm:$0xf0]  ;;  %v2270_v8 = vld [vmem:[#allocation2 + $0x370] sm:$0xf0]  ;;  %v2746_v10 = vld [vmem:[#allocation2 + $0x374] sm:$0xf0] }
  0x2d   :  { %1227 = vmatpush.bf16.msra.mxu0 %v1869_v31  ;;  %1241 = vmatpush.bf16.msra.mxu1 %v1873_v35  ;;  %v2734_v11 = vld [vmem:[#allocation2 + $0x31c] sm:$0xf]  ;;  %v2269_v13 = vor.u32 %v2745_v5, %v2268_v4  ;;  %v2273_v14 = vor.u32 %v2733_v6, %v2270_v8  ;;  %v2277_v15 = vor.u32 %v2746_v10, %v2276_v9  ;;  %v2172_v16 = vld [vmem:[#allocation2 + $0x250] sm:$0xf]  ;;  %v2709_v18 = vld [vmem:[#allocation2 + $0x254] sm:$0xf] }
  0x2e   :  { %1255 = vmatpush.bf16.msra.mxu2 %v1877_v36  ;;  %v2278_v12 = vld [vmem:[#allocation2 + $0x378] sm:$0xf0]  ;;  %v2721_v17 = vld [vmem:[#allocation2 + $0x2ac] sm:$0xf0]  ;;  %v2174_v20 = vld [vmem:[#allocation2 + $0x2b0] sm:$0xf0] }
  0x2f   :  { %1269 = vmatpush.bf16.msra.mxu3 %v1881_v39  ;;  %v2281_v19 = vor.u32 %v2734_v11, %v2278_v12  ;;  %v2180_v21 = vld [vmem:[#allocation2 + $0x258] sm:$0xf]  ;;  %v2710_v23 = vld [vmem:[#allocation2 + $0x25c] sm:$0xf]  ;;  %v2173_v25 = vor.u32 %v2721_v17, %v2172_v16  ;;  %v2177_v26 = vor.u32 %v2709_v18, %v2174_v20  ;;  %v2076_v28 = vld [vmem:[#allocation2 + $0x190] sm:$0xf] }
  0x30   :  { %1228 = vmatmul.bf16.vlgmr.msra.gmra.mxu0 %v2951_v1  ;;  %1242 = vmatmul.bf16.vlgmr.msra.gmra.mxu1 %v2951_v1  ;;  %v2722_v22 = vld [vmem:[#allocation2 + $0x2b4] sm:$0xf0]  ;;  %v2182_v24 = vld [vmem:[#allocation2 + $0x2b8] sm:$0xf0]  ;;  %v2697_v29 = vld [vmem:[#allocation2 + $0x1ec] sm:$0xf0] }
  0x31   :  { %1276 = vmatpush.bf16.msrb.mxu0 %v2557_v40  ;;  %1290 = vmatpush.bf16.msrb.mxu1 %v2561_v41  ;;  %v2181_v27 = vor.u32 %v2722_v22, %v2180_v21  ;;  %v2685_v30 = vld [vmem:[#allocation2 + $0x194] sm:$0xf]  ;;  %v2185_v31 = vor.u32 %v2710_v23, %v2182_v24  ;;  %v2084_v33 = vld [vmem:[#allocation2 + $0x198] sm:$0xf]  ;;  %v2686_v35 = vld [vmem:[#allocation2 + $0x19c] sm:$0xf]  ;;  %v2077_v37 = vor.u32 %v2697_v29, %v2076_v28 }
  0x32   :  { %1304 = vmatpush.bf16.msrb.mxu2 %v2565_v42  ;;  %1270 = vmatmul.bf16.vlgmr.msra.gmra.mxu3 %v2951_v1  ;;  %v2078_v32 = vld [vmem:[#allocation2 + $0x1f0] sm:$0xf0]  ;;  %v2698_v34 = vld [vmem:[#allocation2 + $0x1f4] sm:$0xf0]  ;;  %v2086_v36 = vld [vmem:[#allocation2 + $0x1f8] sm:$0xf0] }
  0x33   :  { %1318 = vmatpush.bf16.msrb.mxu3 %v2569_v46  ;;  %1256 = vmatmul.bf16.vlgmr.msra.gmra.mxu2 %v2951_v1  ;;  %v2081_v38 = vor.u32 %v2685_v30, %v2078_v32  ;;  %v2085_v39 = vor.u32 %v2698_v34, %v2084_v33  ;;  %v1980_v40 = vld [vmem:[#allocation2 + $0xd0] sm:$0xf]  ;;  %v2661_v42 = vld [vmem:[#allocation2 + $0xd4] sm:$0xf]  ;;  %v2089_v43 = vor.u32 %v2686_v35, %v2086_v36  ;;  %v1988_v45 = vld [vmem:[#allocation2 + $0xd8] sm:$0xf] }
  0x34   :  { %v2673_v41 = vld [vmem:[#allocation2 + $0x12c] sm:$0xf0]  ;;  %v1982_v44 = vld [vmem:[#allocation2 + $0x130] sm:$0xf0]  ;;  %v2674_v46 = vld [vmem:[#allocation2 + $0x134] sm:$0xf0] }
  0x35   :  { %1277 = vmatpush.bf16.msrb.mxu0 %v2461_v52  ;;  %1291 = vmatpush.bf16.msrb.mxu1 %v2465_v53  ;;  %v2662_v47 = vld [vmem:[#allocation2 + $0xdc] sm:$0xf]  ;;  %v1981_v49 = vor.u32 %v2673_v41, %v1980_v40  ;;  %v1884_v50 = vld [vmem:[#allocation2 + $0x10] sm:$0xf]  ;;  %v1985_v52 = vor.u32 %v2661_v42, %v1982_v44  ;;  %v1989_v53 = vor.u32 %v2674_v46, %v1988_v45  ;;  %v1886_v55 = vld [vmem:[#allocation2 + $0x70] sm:$0xf0] }
  0x36   :  { %1305 = vmatpush.bf16.msrb.mxu2 %v2469_v54  ;;  %v1990_v48 = vld [vmem:[#allocation2 + $0x138] sm:$0xf0]  ;;  %v2649_v51 = vld [vmem:[#allocation2 + $0x6c] sm:$0xf0]  ;;  %v2637_v54 = vld [vmem:[#allocation2 + $0x14] sm:$0xf] }
  0x37   :  { %1319 = vmatpush.bf16.msrb.mxu3 %v2473_v58  ;;  %v1892_v56 = vld [vmem:[#allocation2 + $0x18] sm:$0xf]  ;;  %v1993_v57 = vor.u32 %v2662_v47, %v1990_v48  ;;  %v2638_v59 = vld [vmem:[#allocation2 + $0x1c] sm:$0xf]  ;;  %v2572_v61 = vld [vmem:[#allocation2 + $0x560] sm:$0xf]  ;;  %v1889_v5 = vor.u32 %v2637_v54, %v1886_v55 }
  0x38   :  { %v2650_v58 = vld [vmem:[#allocation2 + $0x74] sm:$0xf0]  ;;  %v1894_v60 = vld [vmem:[#allocation2 + $0x78] sm:$0xf0]  ;;  %v2819_v62 = vld [vmem:[#allocation2 + $0x5bc] sm:$0xf0] }
  0x39   :  { %1278 = vmatpush.bf16.msrb.mxu0 %v2365_v0  ;;  %1292 = vmatpush.bf16.msrb.mxu1 %v2369_v2  ;;  %v2807_v63 = vld [vmem:[#allocation2 + $0x564] sm:$0xf]  ;;  %v1885_v0 = vor.u32 %v2649_v51, %v1884_v50  ;;  %v2820_v4 = vld [vmem:[#allocation2 + $0x5c4] sm:$0xf0]  ;;  %v1893_v6 = vor.u32 %v2650_v58, %v1892_v56  ;;  %v2582_v8 = vld [vmem:[#allocation2 + $0x5c8] sm:$0xf0]  ;;  %v1897_v9 = vor.u32 %v2638_v59, %v1894_v60 }
  0x3a   :  { %1306 = vmatpush.bf16.msrb.mxu2 %v2373_v3  ;;  %v2574_v2 = vld [vmem:[#allocation2 + $0x5c0] sm:$0xf0]  ;;  %v2580_v3 = vld [vmem:[#allocation2 + $0x568] sm:$0xf]  ;;  %v2573_v10 = vor.u32 %v2819_v62, %v2572_v61  ;;  %v2784_v20 = vld [vmem:[#allocation2 + $0x4ac] sm:$0xf] }
  0x3b   :  { %1320 = vmatpush.bf16.msrb.mxu3 %v2377_v7  ;;  %v2808_v7 = vld [vmem:[#allocation2 + $0x56c] sm:$0xf]  ;;  %v2577_v11 = vor.u32 %v2807_v63, %v2574_v2  ;;  %v2581_v12 = vor.u32 %v2820_v4, %v2580_v3  ;;  %v2478_v17 = vld [vmem:[#allocation2 + $0x500] sm:$0xf0]  ;;  %v2484_v18 = vld [vmem:[#allocation2 + $0x4a8] sm:$0xf] }
  0x3c   :  { %v2585_v16 = vor.u32 %v2808_v7, %v2582_v8  ;;  %v2486_v21 = vld [vmem:[#allocation2 + $0x508] sm:$0xf0]  ;;  %v2382_v29 = vld [vmem:[#allocation2 + $0x440] sm:$0xf0]  ;;  %v2388_v30 = vld [vmem:[#allocation2 + $0x3e8] sm:$0xf] }
  0x3d   :  { %1279 = vmatpush.bf16.msrb.mxu0 %v2269_v13  ;;  %1293 = vmatpush.bf16.msrb.mxu1 %v2273_v14  ;;  %v2476_v13 = vld [vmem:[#allocation2 + $0x4a0] sm:$0xf]  ;;  %v2489_v28 = vor.u32 %v2784_v20, %v2486_v21  ;;  %v2760_v32 = vld [vmem:[#allocation2 + $0x3ec] sm:$0xf]  ;;  %v2286_v41 = vld [vmem:[#allocation2 + $0x380] sm:$0xf0] }
  0x3e   :  { %1307 = vmatpush.bf16.msrb.mxu2 %v2277_v15  ;;  %v2795_v14 = vld [vmem:[#allocation2 + $0x4fc] sm:$0xf0]  ;;  %v2783_v15 = vld [vmem:[#allocation2 + $0x4a4] sm:$0xf]  ;;  %v2390_v33 = vld [vmem:[#allocation2 + $0x448] sm:$0xf0] }
  0x3f   :  { %1321 = vmatpush.bf16.msrb.mxu3 %v2281_v19  ;;  %v2796_v19 = vld [vmem:[#allocation2 + $0x504] sm:$0xf0]  ;;  %v2477_v22 = vor.u32 %v2795_v14, %v2476_v13  ;;  %v2481_v23 = vor.u32 %v2783_v15, %v2478_v17  ;;  %v2393_v40 = vor.u32 %v2760_v32, %v2390_v33  ;;  %v2736_v44 = vld [vmem:[#allocation2 + $0x32c] sm:$0xf]  ;;  %v2723_v50 = vld [vmem:[#allocation2 + $0x2bc] sm:$0xf0] }
  0x40   :  { %v2485_v24 = vor.u32 %v2796_v19, %v2484_v18  ;;  %v2292_v42 = vld [vmem:[#allocation2 + $0x328] sm:$0xf]  ;;  %v2294_v45 = vld [vmem:[#allocation2 + $0x388] sm:$0xf0]  ;;  %v2711_v51 = vld [vmem:[#allocation2 + $0x264] sm:$0xf] }
  0x41   :  { %1280 = vmatpush.bf16.msrb.mxu0 %v2173_v25  ;;  %1294 = vmatpush.bf16.msrb.mxu1 %v2177_v26  ;;  %v2380_v25 = vld [vmem:[#allocation2 + $0x3e0] sm:$0xf]  ;;  %v2196_v54 = vld [vmem:[#allocation2 + $0x268] sm:$0xf]  ;;  %v2712_v56 = vld [vmem:[#allocation2 + $0x26c] sm:$0xf] }
  0x42   :  { %1308 = vmatpush.bf16.msrb.mxu2 %v2181_v27  ;;  %v2771_v26 = vld [vmem:[#allocation2 + $0x43c] sm:$0xf0]  ;;  %v2759_v27 = vld [vmem:[#allocation2 + $0x3e4] sm:$0xf]  ;;  %v2724_v55 = vld [vmem:[#allocation2 + $0x2c4] sm:$0xf0] }
  0x43   :  { %1322 = vmatpush.bf16.msrb.mxu3 %v2185_v31  ;;  %v2772_v31 = vld [vmem:[#allocation2 + $0x444] sm:$0xf0]  ;;  %v2381_v34 = vor.u32 %v2771_v26, %v2380_v25  ;;  %v2385_v35 = vor.u32 %v2759_v27, %v2382_v29  ;;  %v2197_v60 = vor.u32 %v2724_v55, %v2196_v54  ;;  %v2092_v61 = vld [vmem:[#allocation2 + $0x1a0] sm:$0xf]  ;;  %v2687_v63 = vld [vmem:[#allocation2 + $0x1a4] sm:$0xf] }
  0x44   :  { %v2389_v36 = vor.u32 %v2772_v31, %v2388_v30  ;;  %v2699_v62 = vld [vmem:[#allocation2 + $0x1fc] sm:$0xf0]  ;;  %v2094_v2 = vld [vmem:[#allocation2 + $0x200] sm:$0xf0]  ;;  %v2100_v3 = vld [vmem:[#allocation2 + $0x1a8] sm:$0xf] }
  0x45   :  { %1281 = vmatpush.bf16.msrb.mxu0 %v2077_v37  ;;  %1295 = vmatpush.bf16.msrb.mxu1 %v2081_v38  ;;  %v2284_v37 = vld [vmem:[#allocation2 + $0x320] sm:$0xf]  ;;  %v2700_v4 = vld [vmem:[#allocation2 + $0x204] sm:$0xf0]  ;;  %v2093_v7 = vor.u32 %v2699_v62, %v2092_v61  ;;  %v2097_v8 = vor.u32 %v2687_v63, %v2094_v2  ;;  %v1998_v14 = vld [vmem:[#allocation2 + $0x140] sm:$0xf0] }
  0x46   :  { %1309 = vmatpush.bf16.msrb.mxu2 %v2085_v39  ;;  %v2747_v38 = vld [vmem:[#allocation2 + $0x37c] sm:$0xf0]  ;;  %v2735_v39 = vld [vmem:[#allocation2 + $0x324] sm:$0xf]  ;;  %v2004_v15 = vld [vmem:[#allocation2 + $0xe8] sm:$0xf] }
  0x47   :  { %1323 = vmatpush.bf16.msrb.mxu3 %v2089_v43  ;;  %v2748_v43 = vld [vmem:[#allocation2 + $0x384] sm:$0xf0]  ;;  %v2285_v46 = vor.u32 %v2747_v38, %v2284_v37  ;;  %v2289_v47 = vor.u32 %v2735_v39, %v2286_v41  ;;  %v2664_v17 = vld [vmem:[#allocation2 + $0xec] sm:$0xf]  ;;  %v1900_v20 = vld [vmem:[#allocation2 + $0x20] sm:$0xf] }
  0x48   :  { %v2293_v48 = vor.u32 %v2748_v43, %v2292_v42  ;;  %v2006_v18 = vld [vmem:[#allocation2 + $0x148] sm:$0xf0]  ;;  %v2651_v21 = vld [vmem:[#allocation2 + $0x7c] sm:$0xf0]  ;;  %v1902_v25 = vld [vmem:[#allocation2 + $0x80] sm:$0xf0] }
  0x49   :  { %1282 = vmatpush.bf16.msrb.mxu0 %v1981_v49  ;;  %1296 = vmatpush.bf16.msrb.mxu1 %v1985_v52  ;;  %v2188_v49 = vld [vmem:[#allocation2 + $0x260] sm:$0xf]  ;;  %v2297_v52 = vor.u32 %v2736_v44, %v2294_v45  ;;  %v1908_v26 = vld [vmem:[#allocation2 + $0x28] sm:$0xf]  ;;  %v2009_v27 = vor.u32 %v2664_v17, %v2006_v18  ;;  %v2640_v29 = vld [vmem:[#allocation2 + $0x2c] sm:$0xf] }
  0x4a   :  { %1310 = vmatpush.bf16.msrb.mxu2 %v1989_v53  ;;  %v2190_v53 = vld [vmem:[#allocation2 + $0x2c0] sm:$0xf0]  ;;  %v2189_v58 = vor.u32 %v2723_v50, %v2188_v49  ;;  %v1910_v30 = vld [vmem:[#allocation2 + $0x88] sm:$0xf0]  ;;  %v2588_v31 = vld [vmem:[#allocation2 + $0x570] sm:$0xf] }
  0x4b   :  { %1324 = vmatpush.bf16.msrb.mxu3 %v1993_v57  ;;  %v2198_v57 = vld [vmem:[#allocation2 + $0x2c8] sm:$0xf0]  ;;  %v2193_v59 = vor.u32 %v2711_v51, %v2190_v53  ;;  %v2821_v32 = vld [vmem:[#allocation2 + $0x5cc] sm:$0xf0]  ;;  %v2809_v33 = vld [vmem:[#allocation2 + $0x574] sm:$0xf]  ;;  %v1913_v42 = vor.u32 %v2640_v29, %v1910_v30 }
  0x4c   :  { %v2822_v37 = vld [vmem:[#allocation2 + $0x5d4] sm:$0xf0]  ;;  %v2598_v41 = vld [vmem:[#allocation2 + $0x5d8] sm:$0xf0]  ;;  %v2589_v43 = vor.u32 %v2821_v32, %v2588_v31  ;;  %v2494_v50 = vld [vmem:[#allocation2 + $0x510] sm:$0xf0] }
  0x4d   :  { %1283 = vmatpush.bf16.msrb.mxu0 %v1885_v0  ;;  %1297 = vmatpush.bf16.msrb.mxu1 %v1889_v5  ;;  %v2201_v0 = vor.u32 %v2712_v56, %v2198_v57  ;;  %v2688_v5 = vld [vmem:[#allocation2 + $0x1ac] sm:$0xf]  ;;  %v2500_v51 = vld [vmem:[#allocation2 + $0x4b8] sm:$0xf]  ;;  %v2786_v53 = vld [vmem:[#allocation2 + $0x4bc] sm:$0xf] }
  0x4e   :  { %1311 = vmatpush.bf16.msrb.mxu2 %v1893_v6  ;;  %v2102_v6 = vld [vmem:[#allocation2 + $0x208] sm:$0xf0]  ;;  %v2502_v54 = vld [vmem:[#allocation2 + $0x518] sm:$0xf0]  ;;  %v2398_v62 = vld [vmem:[#allocation2 + $0x450] sm:$0xf0] }
  0x4f   :  { %1325 = vmatpush.bf16.msrb.mxu3 %v1897_v9  ;;  %v2101_v9 = vor.u32 %v2700_v4, %v2100_v3  ;;  %v2105_v13 = vor.u32 %v2688_v5, %v2102_v6  ;;  %v2505_v61 = vor.u32 %v2786_v53, %v2502_v54  ;;  %v2404_v63 = vld [vmem:[#allocation2 + $0x3f8] sm:$0xf]  ;;  %v2762_v2 = vld [vmem:[#allocation2 + $0x3fc] sm:$0xf]  ;;  %v2108_v31 = vld [vmem:[#allocation2 + $0x1b0] sm:$0xf] }
  0x50   :  { %1284 = vmatmul.bf16.vlgmr.msrb.gmra.mxu0 %v2951_v1  ;;  %1298 = vmatmul.bf16.vlgmr.msrb.gmra.mxu1 %v2951_v1  ;;  %v2406_v3 = vld [vmem:[#allocation2 + $0x458] sm:$0xf0]  ;;  %v2701_v32 = vld [vmem:[#allocation2 + $0x20c] sm:$0xf0] }
  0x51   :  { %1332 = vmatpush.bf16.msra.mxu0 %v2573_v10  ;;  %1346 = vmatpush.bf16.msra.mxu1 %v2577_v11  ;;  %v1996_v10 = vld [vmem:[#allocation2 + $0xe0] sm:$0xf]  ;;  %v1916_v53 = vld [vmem:[#allocation2 + $0x30] sm:$0xf] }
  0x52   :  { %1360 = vmatpush.bf16.msra.mxu2 %v2581_v12  ;;  %1326 = vmatmul.bf16.vlgmr.msrb.gmra.mxu3 %v2951_v1  ;;  %v2675_v11 = vld [vmem:[#allocation2 + $0x13c] sm:$0xf0]  ;;  %v2663_v12 = vld [vmem:[#allocation2 + $0xe4] sm:$0xf]  ;;  %v2653_v54 = vld [vmem:[#allocation2 + $0x8c] sm:$0xf0] }
  0x53   :  { %1374 = vmatpush.bf16.msra.mxu3 %v2585_v16  ;;  %1312 = vmatmul.bf16.vlgmr.msrb.gmra.mxu2 %v2951_v1  ;;  %v2676_v16 = vld [vmem:[#allocation2 + $0x144] sm:$0xf0]  ;;  %v1997_v19 = vor.u32 %v2675_v11, %v1996_v10  ;;  %v2409_v10 = vor.u32 %v2762_v2, %v2406_v3  ;;  %v2302_v11 = vld [vmem:[#allocation2 + $0x390] sm:$0xf0]  ;;  %v2823_v2 = vld [vmem:[#allocation2 + $0x5dc] sm:$0xf0] }
  0x54   :  { %v2811_v3 = vld [vmem:[#allocation2 + $0x584] sm:$0xf] }
  0x55   :  { %1333 = vmatpush.bf16.msra.mxu0 %v2477_v22  ;;  %1347 = vmatpush.bf16.msra.mxu1 %v2481_v23  ;;  %v2001_v22 = vor.u32 %v2663_v12, %v1998_v14  ;;  %v2005_v23 = vor.u32 %v2676_v16, %v2004_v15  ;;  %v2308_v12 = vld [vmem:[#allocation2 + $0x338] sm:$0xf]  ;;  %v2738_v14 = vld [vmem:[#allocation2 + $0x33c] sm:$0xf] }
  0x56   :  { %1361 = vmatpush.bf16.msra.mxu2 %v2485_v24  ;;  %v2639_v24 = vld [vmem:[#allocation2 + $0x24] sm:$0xf]  ;;  %v2310_v15 = vld [vmem:[#allocation2 + $0x398] sm:$0xf0] }
  0x57   :  { %1375 = vmatpush.bf16.msra.mxu3 %v2489_v28  ;;  %v2652_v28 = vld [vmem:[#allocation2 + $0x84] sm:$0xf0]  ;;  %v1905_v38 = vor.u32 %v2639_v24, %v1902_v25  ;;  %v2212_v24 = vld [vmem:[#allocation2 + $0x278] sm:$0xf] }
  0x58   :  { %v1909_v39 = vor.u32 %v2652_v28, %v1908_v26  ;;  %v2726_v25 = vld [vmem:[#allocation2 + $0x2d4] sm:$0xf0]  ;;  %v2714_v26 = vld [vmem:[#allocation2 + $0x27c] sm:$0xf] }
  0x59   :  { %1334 = vmatpush.bf16.msra.mxu0 %v2381_v34  ;;  %1348 = vmatpush.bf16.msra.mxu1 %v2385_v35  ;;  %v1901_v34 = vor.u32 %v2651_v21, %v1900_v20  ;;  %v2590_v35 = vld [vmem:[#allocation2 + $0x5d0] sm:$0xf0]  ;;  %v2725_v20 = vld [vmem:[#allocation2 + $0x2cc] sm:$0xf0]  ;;  %v2213_v30 = vor.u32 %v2726_v25, %v2212_v24  ;;  %v2518_v24 = vld [vmem:[#allocation2 + $0x528] sm:$0xf0] }
  0x5a   :  { %1362 = vmatpush.bf16.msra.mxu2 %v2389_v36  ;;  %v2596_v36 = vld [vmem:[#allocation2 + $0x578] sm:$0xf]  ;;  %v2593_v44 = vor.u32 %v2809_v33, %v2590_v35  ;;  %v2713_v21 = vld [vmem:[#allocation2 + $0x274] sm:$0xf] }
  0x5b   :  { %1376 = vmatpush.bf16.msra.mxu3 %v2393_v40  ;;  %v2810_v40 = vld [vmem:[#allocation2 + $0x57c] sm:$0xf]  ;;  %v2597_v45 = vor.u32 %v2822_v37, %v2596_v36  ;;  %v2689_v33 = vld [vmem:[#allocation2 + $0x1b4] sm:$0xf]  ;;  %v2116_v36 = vld [vmem:[#allocation2 + $0x1b8] sm:$0xf] }
  0x5c   :  { %v2601_v49 = vor.u32 %v2810_v40, %v2598_v41  ;;  %v2110_v35 = vld [vmem:[#allocation2 + $0x210] sm:$0xf0]  ;;  %v2702_v37 = vld [vmem:[#allocation2 + $0x214] sm:$0xf0]  ;;  %v2109_v40 = vor.u32 %v2701_v32, %v2108_v31  ;;  %v2414_v32 = vld [vmem:[#allocation2 + $0x460] sm:$0xf0] }
  0x5d   :  { %1335 = vmatpush.bf16.msra.mxu0 %v2285_v46  ;;  %1349 = vmatpush.bf16.msra.mxu1 %v2289_v47  ;;  %v2492_v46 = vld [vmem:[#allocation2 + $0x4b0] sm:$0xf]  ;;  %v2113_v41 = vor.u32 %v2689_v33, %v2110_v35  ;;  %v2420_v33 = vld [vmem:[#allocation2 + $0x408] sm:$0xf]  ;;  %v2764_v35 = vld [vmem:[#allocation2 + $0x40c] sm:$0xf] }
  0x5e   :  { %1363 = vmatpush.bf16.msra.mxu2 %v2293_v48  ;;  %v2797_v47 = vld [vmem:[#allocation2 + $0x50c] sm:$0xf0]  ;;  %v2785_v48 = vld [vmem:[#allocation2 + $0x4b4] sm:$0xf] }
  0x5f   :  { %1377 = vmatpush.bf16.msra.mxu3 %v2297_v52  ;;  %v2798_v52 = vld [vmem:[#allocation2 + $0x514] sm:$0xf0]  ;;  %v2493_v55 = vor.u32 %v2797_v47, %v2492_v46  ;;  %v2497_v56 = vor.u32 %v2785_v48, %v2494_v50  ;;  %v2014_v47 = vld [vmem:[#allocation2 + $0x150] sm:$0xf0]  ;;  %v2666_v50 = vld [vmem:[#allocation2 + $0xfc] sm:$0xf] }
  0x60   :  { %v2501_v57 = vor.u32 %v2798_v52, %v2500_v51  ;;  %v2020_v48 = vld [vmem:[#allocation2 + $0xf8] sm:$0xf]  ;;  %v2022_v51 = vld [vmem:[#allocation2 + $0x158] sm:$0xf0] }
  0x61   :  { %1336 = vmatpush.bf16.msra.mxu0 %v2189_v58  ;;  %1350 = vmatpush.bf16.msra.mxu1 %v2193_v59  ;;  %v2396_v58 = vld [vmem:[#allocation2 + $0x3f0] sm:$0xf] }
  0x62   :  { %1364 = vmatpush.bf16.msra.mxu2 %v2197_v60  ;;  %v2773_v59 = vld [vmem:[#allocation2 + $0x44c] sm:$0xf0]  ;;  %v2761_v60 = vld [vmem:[#allocation2 + $0x3f4] sm:$0xf] }
  0x63   :  { %1378 = vmatpush.bf16.msra.mxu3 %v2201_v0  ;;  %v2774_v0 = vld [vmem:[#allocation2 + $0x454] sm:$0xf0]  ;;  %v2397_v4 = vor.u32 %v2773_v59, %v2396_v58  ;;  %v2401_v5 = vor.u32 %v2761_v60, %v2398_v62  ;;  %v1918_v58 = vld [vmem:[#allocation2 + $0x90] sm:$0xf0]  ;;  %v2025_v60 = vor.u32 %v2666_v50, %v2022_v51  ;;  %v2642_v62 = vld [vmem:[#allocation2 + $0x3c] sm:$0xf] }
  0x64   :  { %v2405_v6 = vor.u32 %v2774_v0, %v2404_v63  ;;  %v1924_v59 = vld [vmem:[#allocation2 + $0x38] sm:$0xf]  ;;  %v1926_v63 = vld [vmem:[#allocation2 + $0x98] sm:$0xf0]  ;;  %v2604_v0 = vld [vmem:[#allocation2 + $0x580] sm:$0xf] }
  0x65   :  { %1337 = vmatpush.bf16.msra.mxu0 %v2093_v7  ;;  %1351 = vmatpush.bf16.msra.mxu1 %v2097_v8  ;;  %v2300_v7 = vld [vmem:[#allocation2 + $0x330] sm:$0xf]  ;;  %v2220_v51 = vld [vmem:[#allocation2 + $0x280] sm:$0xf] }
  0x66   :  { %1365 = vmatpush.bf16.msra.mxu2 %v2101_v9  ;;  %v2749_v8 = vld [vmem:[#allocation2 + $0x38c] sm:$0xf0]  ;;  %v2737_v9 = vld [vmem:[#allocation2 + $0x334] sm:$0xf] }
  0x67   :  { %1379 = vmatpush.bf16.msra.mxu3 %v2105_v13  ;;  %v2750_v13 = vld [vmem:[#allocation2 + $0x394] sm:$0xf0]  ;;  %v2301_v16 = vor.u32 %v2749_v8, %v2300_v7  ;;  %v2305_v17 = vor.u32 %v2737_v9, %v2302_v11  ;;  %v2824_v7 = vld [vmem:[#allocation2 + $0x5e4] sm:$0xf0]  ;;  %v2614_v11 = vld [vmem:[#allocation2 + $0x5e8] sm:$0xf0] }
  0x68   :  { %v2309_v18 = vor.u32 %v2750_v13, %v2308_v12  ;;  %v1929_v12 = vor.u32 %v2642_v62, %v1926_v63  ;;  %v2605_v13 = vor.u32 %v2823_v2, %v2604_v0  ;;  %v2124_v63 = vld [vmem:[#allocation2 + $0x1c0] sm:$0xf]  ;;  %v2691_v2 = vld [vmem:[#allocation2 + $0x1c4] sm:$0xf] }
  0x69   :  { %1338 = vmatpush.bf16.msra.mxu0 %v1997_v19  ;;  %1352 = vmatpush.bf16.msra.mxu1 %v2001_v22  ;;  %v2204_v19 = vld [vmem:[#allocation2 + $0x270] sm:$0xf]  ;;  %v2313_v22 = vor.u32 %v2738_v14, %v2310_v15  ;;  %v2703_v0 = vld [vmem:[#allocation2 + $0x21c] sm:$0xf0] }
  0x6a   :  { %1366 = vmatpush.bf16.msra.mxu2 %v2005_v23  ;;  %v2206_v23 = vld [vmem:[#allocation2 + $0x2d0] sm:$0xf0]  ;;  %v2205_v28 = vor.u32 %v2725_v20, %v2204_v19  ;;  %v2510_v20 = vld [vmem:[#allocation2 + $0x520] sm:$0xf0] }
  0x6b   :  { %1380 = vmatpush.bf16.msra.mxu3 %v2009_v27  ;;  %v2214_v27 = vld [vmem:[#allocation2 + $0x2d8] sm:$0xf0]  ;;  %v2209_v29 = vor.u32 %v2713_v21, %v2206_v23  ;;  %v2516_v21 = vld [vmem:[#allocation2 + $0x4c8] sm:$0xf]  ;;  %v2788_v23 = vld [vmem:[#allocation2 + $0x4cc] sm:$0xf] }
  0x6c   :  { %v2521_v31 = vor.u32 %v2788_v23, %v2518_v24  ;;  %v2655_v23 = vld [vmem:[#allocation2 + $0x9c] sm:$0xf0] }
  0x6d   :  { %1339 = vmatpush.bf16.msra.mxu0 %v1901_v34  ;;  %1353 = vmatpush.bf16.msra.mxu1 %v1905_v38  ;;  %v2217_v34 = vor.u32 %v2714_v26, %v2214_v27  ;;  %v2690_v38 = vld [vmem:[#allocation2 + $0x1bc] sm:$0xf] }
  0x6e   :  { %1367 = vmatpush.bf16.msra.mxu2 %v1909_v39  ;;  %v2118_v39 = vld [vmem:[#allocation2 + $0x218] sm:$0xf0] }
  0x6f   :  { %1381 = vmatpush.bf16.msra.mxu3 %v1913_v42  ;;  %v2117_v42 = vor.u32 %v2702_v37, %v2116_v36  ;;  %v2121_v46 = vor.u32 %v2690_v38, %v2118_v39  ;;  %v2422_v36 = vld [vmem:[#allocation2 + $0x468] sm:$0xf0] }
  0x70   :  { %1340 = vmatmul.bf16.vlgmr.msra.gmra.mxu0 %v2951_v1  ;;  %1354 = vmatmul.bf16.vlgmr.msra.gmra.mxu1 %v2951_v1 }
  0x71   :  { %1388 = vmatpush.bf16.msrb.mxu0 %v2589_v43  ;;  %1402 = vmatpush.bf16.msrb.mxu1 %v2593_v44  ;;  %v2012_v43 = vld [vmem:[#allocation2 + $0xf0] sm:$0xf] }
  0x72   :  { %1416 = vmatpush.bf16.msrb.mxu2 %v2597_v45  ;;  %1382 = vmatmul.bf16.vlgmr.msra.gmra.mxu3 %v2951_v1  ;;  %v2677_v44 = vld [vmem:[#allocation2 + $0x14c] sm:$0xf0]  ;;  %v2665_v45 = vld [vmem:[#allocation2 + $0xf4] sm:$0xf] }
  0x73   :  { %1430 = vmatpush.bf16.msrb.mxu3 %v2601_v49  ;;  %1368 = vmatmul.bf16.vlgmr.msra.gmra.mxu2 %v2951_v1  ;;  %v2678_v49 = vld [vmem:[#allocation2 + $0x154] sm:$0xf0]  ;;  %v2013_v52 = vor.u32 %v2677_v44, %v2012_v43  ;;  %v2425_v43 = vor.u32 %v2764_v35, %v2422_v36  ;;  %v2318_v44 = vld [vmem:[#allocation2 + $0x3a0] sm:$0xf0]  ;;  %v2813_v35 = vld [vmem:[#allocation2 + $0x594] sm:$0xf] }
  0x75   :  { %1389 = vmatpush.bf16.msrb.mxu0 %v2493_v55  ;;  %1403 = vmatpush.bf16.msrb.mxu1 %v2497_v56  ;;  %v2017_v55 = vor.u32 %v2665_v45, %v2014_v47  ;;  %v2021_v56 = vor.u32 %v2678_v49, %v2020_v48  ;;  %v2324_v45 = vld [vmem:[#allocation2 + $0x348] sm:$0xf]  ;;  %v2740_v47 = vld [vmem:[#allocation2 + $0x34c] sm:$0xf] }
  0x76   :  { %1417 = vmatpush.bf16.msrb.mxu2 %v2501_v57  ;;  %v2641_v57 = vld [vmem:[#allocation2 + $0x34] sm:$0xf]  ;;  %v2326_v48 = vld [vmem:[#allocation2 + $0x3a8] sm:$0xf0] }
  0x77   :  { %1431 = vmatpush.bf16.msrb.mxu3 %v2505_v61  ;;  %v2654_v61 = vld [vmem:[#allocation2 + $0x94] sm:$0xf0]  ;;  %v1921_v8 = vor.u32 %v2641_v57, %v1918_v58  ;;  %v2728_v57 = vld [vmem:[#allocation2 + $0x2e4] sm:$0xf0]  ;;  %v2716_v58 = vld [vmem:[#allocation2 + $0x28c] sm:$0xf] }
  0x78   :  { %v1925_v9 = vor.u32 %v2654_v61, %v1924_v59  ;;  %v2230_v59 = vld [vmem:[#allocation2 + $0x2e8] sm:$0xf0] }
  0x79   :  { %1390 = vmatpush.bf16.msrb.mxu0 %v2397_v4  ;;  %1404 = vmatpush.bf16.msrb.mxu1 %v2401_v5  ;;  %v1917_v4 = vor.u32 %v2653_v54, %v1916_v53  ;;  %v2606_v5 = vld [vmem:[#allocation2 + $0x5e0] sm:$0xf0]  ;;  %v2329_v54 = vor.u32 %v2740_v47, %v2326_v48  ;;  %v2524_v48 = vld [vmem:[#allocation2 + $0x4d0] sm:$0xf] }
  0x7a   :  { %1418 = vmatpush.bf16.msrb.mxu2 %v2405_v6  ;;  %v2612_v6 = vld [vmem:[#allocation2 + $0x588] sm:$0xf]  ;;  %v2609_v14 = vor.u32 %v2811_v3, %v2606_v5  ;;  %v2715_v53 = vld [vmem:[#allocation2 + $0x284] sm:$0xf]  ;;  %v2233_v3 = vor.u32 %v2716_v58, %v2230_v59  ;;  %v2428_v59 = vld [vmem:[#allocation2 + $0x410] sm:$0xf] }
  0x7b   :  { %1432 = vmatpush.bf16.msrb.mxu3 %v2409_v10  ;;  %v2812_v10 = vld [vmem:[#allocation2 + $0x58c] sm:$0xf]  ;;  %v2613_v15 = vor.u32 %v2824_v7, %v2612_v6  ;;  %v2132_v5 = vld [vmem:[#allocation2 + $0x1c8] sm:$0xf] }
  0x7c   :  { %v2617_v19 = vor.u32 %v2812_v10, %v2614_v11  ;;  %v2704_v6 = vld [vmem:[#allocation2 + $0x224] sm:$0xf0]  ;;  %v2692_v7 = vld [vmem:[#allocation2 + $0x1cc] sm:$0xf] }
  0x7d   :  { %1391 = vmatpush.bf16.msrb.mxu0 %v2301_v16  ;;  %1405 = vmatpush.bf16.msrb.mxu1 %v2305_v17  ;;  %v2508_v16 = vld [vmem:[#allocation2 + $0x4c0] sm:$0xf]  ;;  %v2133_v11 = vor.u32 %v2704_v6, %v2132_v5  ;;  %v2438_v5 = vld [vmem:[#allocation2 + $0x478] sm:$0xf0] }
  0x7e   :  { %1419 = vmatpush.bf16.msrb.mxu2 %v2309_v18  ;;  %v2799_v17 = vld [vmem:[#allocation2 + $0x51c] sm:$0xf0]  ;;  %v2787_v18 = vld [vmem:[#allocation2 + $0x4c4] sm:$0xf] }
  0x7f   :  { %1433 = vmatpush.bf16.msrb.mxu3 %v2313_v22  ;;  %v2800_v22 = vld [vmem:[#allocation2 + $0x524] sm:$0xf0]  ;;  %v2509_v25 = vor.u32 %v2799_v17, %v2508_v16  ;;  %v2513_v26 = vor.u32 %v2787_v18, %v2510_v20  ;;  %v2030_v16 = vld [vmem:[#allocation2 + $0x160] sm:$0xf0]  ;;  %v2038_v20 = vld [vmem:[#allocation2 + $0x168] sm:$0xf0] }
  0x80   :  { %v2517_v27 = vor.u32 %v2800_v22, %v2516_v21  ;;  %v2036_v17 = vld [vmem:[#allocation2 + $0x108] sm:$0xf]  ;;  %v1932_v22 = vld [vmem:[#allocation2 + $0x40] sm:$0xf] }
  0x81   :  { %1392 = vmatpush.bf16.msrb.mxu0 %v2205_v28  ;;  %1406 = vmatpush.bf16.msrb.mxu1 %v2209_v29  ;;  %v2412_v28 = vld [vmem:[#allocation2 + $0x400] sm:$0xf]  ;;  %v2680_v18 = vld [vmem:[#allocation2 + $0x164] sm:$0xf0]  ;;  %v1933_v36 = vor.u32 %v2655_v23, %v1932_v22  ;;  %v2980_v22 = vld [vmem:[#allocation6] sm:$0xff] }
  0x82   :  { %1420 = vmatpush.bf16.msrb.mxu2 %v2213_v30  ;;  %v2775_v29 = vld [vmem:[#allocation2 + $0x45c] sm:$0xf0]  ;;  %v2763_v30 = vld [vmem:[#allocation2 + $0x404] sm:$0xf] }
  0x83   :  { %1434 = vmatpush.bf16.msrb.mxu3 %v2217_v34  ;;  %v2776_v34 = vld [vmem:[#allocation2 + $0x464] sm:$0xf0]  ;;  %v2413_v37 = vor.u32 %v2775_v29, %v2412_v28  ;;  %v2417_v38 = vor.u32 %v2763_v30, %v2414_v32  ;;  %v1942_v32 = vld [vmem:[#allocation2 + $0xa8] sm:$0xf0] }
  0x84   :  { %v2421_v39 = vor.u32 %v2776_v34, %v2420_v33  ;;  %v1940_v28 = vld [vmem:[#allocation2 + $0x48] sm:$0xf]  ;;  %v2620_v33 = vld [vmem:[#allocation2 + $0x590] sm:$0xf] }
  0x85   :  { %1393 = vmatpush.bf16.msrb.mxu0 %v2109_v40  ;;  %1407 = vmatpush.bf16.msrb.mxu1 %v2113_v41  ;;  %v2316_v40 = vld [vmem:[#allocation2 + $0x340] sm:$0xf]  ;;  %v2656_v30 = vld [vmem:[#allocation2 + $0xa4] sm:$0xf0]  ;;  %v2825_v34 = vld [vmem:[#allocation2 + $0x5ec] sm:$0xf0] }
  0x86   :  { %1421 = vmatpush.bf16.msrb.mxu2 %v2117_v42  ;;  %v2751_v41 = vld [vmem:[#allocation2 + $0x39c] sm:$0xf0]  ;;  %v2739_v42 = vld [vmem:[#allocation2 + $0x344] sm:$0xf] }
  0x87   :  { %1435 = vmatpush.bf16.msrb.mxu3 %v2121_v46  ;;  %v2752_v46 = vld [vmem:[#allocation2 + $0x3a4] sm:$0xf0]  ;;  %v2317_v49 = vor.u32 %v2751_v41, %v2316_v40  ;;  %v2321_v50 = vor.u32 %v2739_v42, %v2318_v44  ;;  %v1941_v41 = vor.u32 %v2656_v30, %v1940_v28  ;;  %v2814_v42 = vld [vmem:[#allocation2 + $0x59c] sm:$0xf]  ;;  %v2730_v30 = vld [vmem:[#allocation2 + $0x2f4] sm:$0xf0] }
  0x89   :  { %1394 = vmatpush.bf16.msrb.mxu0 %v2013_v52  ;;  %1408 = vmatpush.bf16.msrb.mxu1 %v2017_v55  ;;  %v2727_v52 = vld [vmem:[#allocation2 + $0x2dc] sm:$0xf0]  ;;  %v2222_v55 = vld [vmem:[#allocation2 + $0x2e0] sm:$0xf0] }
  0x8a   :  { %1422 = vmatpush.bf16.msrb.mxu2 %v2021_v56  ;;  %v2228_v56 = vld [vmem:[#allocation2 + $0x288] sm:$0xf]  ;;  %v2225_v61 = vor.u32 %v2715_v53, %v2222_v55  ;;  %v2802_v53 = vld [vmem:[#allocation2 + $0x534] sm:$0xf0]  ;;  %v2534_v55 = vld [vmem:[#allocation2 + $0x538] sm:$0xf0] }
  0x8b   :  { %1436 = vmatpush.bf16.msrb.mxu3 %v2025_v60  ;;  %v2221_v60 = vor.u32 %v2727_v52, %v2220_v51  ;;  %v2229_v62 = vor.u32 %v2728_v57, %v2228_v56  ;;  %v2526_v51 = vld [vmem:[#allocation2 + $0x530] sm:$0xf0]  ;;  %v2532_v52 = vld [vmem:[#allocation2 + $0x4d8] sm:$0xf] }
  0x8c   :  { %v2533_v58 = vor.u32 %v2802_v53, %v2532_v52 }
  0x8d   :  { %1395 = vmatpush.bf16.msrb.mxu0 %v1917_v4  ;;  %1409 = vmatpush.bf16.msrb.mxu1 %v1921_v8  ;;  %v2126_v4 = vld [vmem:[#allocation2 + $0x220] sm:$0xf0]  ;;  %v2134_v8 = vld [vmem:[#allocation2 + $0x228] sm:$0xf0] }
  0x8e   :  { %1423 = vmatpush.bf16.msrb.mxu2 %v1925_v9  ;;  %v2125_v9 = vor.u32 %v2703_v0, %v2124_v63  ;;  %v2129_v10 = vor.u32 %v2691_v2, %v2126_v4  ;;  %v2972_v63 = vld [vmem:[%s3142_s0] sm:$0xff]  ;;  %v2430_v0 = vld [vmem:[#allocation2 + $0x470] sm:$0xf0]  ;;  %v2436_v2 = vld [vmem:[#allocation2 + $0x418] sm:$0xf] }
  0x8f   :  { %1437 = vmatpush.bf16.msrb.mxu3 %v1929_v12  ;;  %v2028_v12 = vld [vmem:[#allocation2 + $0x100] sm:$0xf]  ;;  %v2766_v4 = vld [vmem:[#allocation2 + $0x41c] sm:$0xf] }
  0x90   :  { %1396 = vmatmul.bf16.vlgmr.msrb.gmra.mxu0 %v2951_v1  ;;  %1410 = vmatmul.bf16.vlgmr.msrb.gmra.mxu1 %v2951_v1 }
  0x91   :  { %1444 = vmatpush.bf16.msra.mxu0 %v2605_v13  ;;  %1458 = vmatpush.bf16.msra.mxu1 %v2609_v14  ;;  %v2679_v13 = vld [vmem:[#allocation2 + $0x15c] sm:$0xf0]  ;;  %v2667_v14 = vld [vmem:[#allocation2 + $0x104] sm:$0xf] }
  0x92   :  { %1472 = vmatpush.bf16.msra.mxu2 %v2613_v15  ;;  %1438 = vmatmul.bf16.vlgmr.msrb.gmra.mxu3 %v2951_v1  ;;  %v2137_v15 = vor.u32 %v2692_v7, %v2134_v8  ;;  %v2029_v21 = vor.u32 %v2679_v13, %v2028_v12  ;;  %v2033_v24 = vor.u32 %v2667_v14, %v2030_v16  ;;  %v2332_v7 = vld [vmem:[#allocation2 + $0x350] sm:$0xf]  ;;  %v2334_v12 = vld [vmem:[#allocation2 + $0x3b0] sm:$0xf0]  ;;  %v2340_v14 = vld [vmem:[#allocation2 + $0x358] sm:$0xf] }
  0x93   :  { %1486 = vmatpush.bf16.msra.mxu3 %v2617_v19  ;;  %1424 = vmatmul.bf16.vlgmr.msrb.gmra.mxu2 %v2951_v1  ;;  %v2325_v1 = vor.u32 %v2752_v46, %v2324_v45  ;;  %v2668_v19 = vld [vmem:[#allocation2 + $0x10c] sm:$0xf]  ;;  %v2621_v45 = vor.u32 %v2825_v34, %v2620_v33  ;;  %v2441_v13 = vor.u32 %v2766_v4, %v2438_v5  ;;  %v2978_v16 = vld [vmem:[#allocation4] sm:$0xff]  ;;  %v2246_v33 = vld [vmem:[#allocation2 + $0x2f8] sm:$0xf0]  ;;  %v1664_v34 = vperm.slane %v2980_v22, 0 }
  0x94   :  { %v2041_v29 = vor.u32 %v2668_v19, %v2038_v20  ;;  %v2236_v20 = vld [vmem:[#allocation2 + $0x290] sm:$0xf]  ;;  %v1565_v53 = vperm.slane %v2978_v16, 3  ;;  %v2052_v5 = vld [vmem:[#allocation2 + $0x118] sm:$0xf] }
  0x95   :  { %1445 = vmatpush.bf16.msra.mxu0 %v2509_v25  ;;  %1459 = vmatpush.bf16.msra.mxu1 %v2513_v26  ;;  %v2037_v25 = vor.u32 %v2680_v18, %v2036_v17  ;;  %v2643_v26 = vld [vmem:[#allocation2 + $0x44] sm:$0xf]  ;;  %v2742_v17 = vld [vmem:[#allocation2 + $0x35c] sm:$0xf] }
  0x96   :  { %1473 = vmatpush.bf16.msra.mxu2 %v2517_v27  ;;  %v1934_v27 = vld [vmem:[#allocation2 + $0xa0] sm:$0xf0]  ;;  %v2342_v18 = vld [vmem:[#allocation2 + $0x3b8] sm:$0xf0] }
  0x97   :  { %1487 = vmatpush.bf16.msra.mxu3 %v2521_v31  ;;  %v2644_v31 = vld [vmem:[#allocation2 + $0x4c] sm:$0xf]  ;;  %v1937_v40 = vor.u32 %v2643_v26, %v1934_v27  ;;  %v2238_v26 = vld [vmem:[#allocation2 + $0x2f0] sm:$0xf0]  ;;  %v1562_v27 = vperm.slane %v2978_v16, 0  ;;  %v2345_v28 = vor.u32 %v2742_v17, %v2342_v18 }
  0x98   :  { %v1945_v44 = vor.u32 %v2644_v31, %v1942_v32  ;;  %v1563_v31 = vperm.slane %v2978_v16, 1  ;;  %v2718_v32 = vld [vmem:[#allocation2 + $0x29c] sm:$0xf] }
  0x99   :  { %1446 = vmatpush.bf16.msra.mxu0 %v2413_v37  ;;  %1460 = vmatpush.bf16.msra.mxu1 %v2417_v38  ;;  %v2622_v37 = vld [vmem:[#allocation2 + $0x5f0] sm:$0xf0]  ;;  %v2628_v38 = vld [vmem:[#allocation2 + $0x598] sm:$0xf] }
  0x9a   :  { %1474 = vmatpush.bf16.msra.mxu2 %v2421_v39  ;;  %v2826_v39 = vld [vmem:[#allocation2 + $0x5f4] sm:$0xf0]  ;;  %v2625_v46 = vor.u32 %v2813_v35, %v2622_v37 }
  0x9b   :  { %1488 = vmatpush.bf16.msra.mxu3 %v2425_v43  ;;  %v2630_v43 = vld [vmem:[#allocation2 + $0x5f8] sm:$0xf0]  ;;  %v2629_v47 = vor.u32 %v2826_v39, %v2628_v38  ;;  %v1665_v38 = vperm.slane %v2980_v22, 1 }
  0x9d   :  { %1447 = vmatpush.bf16.msra.mxu0 %v2317_v49  ;;  %1461 = vmatpush.bf16.msra.mxu1 %v2321_v50  ;;  %v2801_v49 = vld [vmem:[#allocation2 + $0x52c] sm:$0xf0]  ;;  %v2789_v50 = vld [vmem:[#allocation2 + $0x4d4] sm:$0xf] }
  0x9e   :  { %1475 = vmatpush.bf16.msra.mxu2 %v2325_v1  ;;  %v2633_v1 = vor.u32 %v2814_v42, %v2630_v43  ;;  %v2525_v56 = vor.u32 %v2801_v49, %v2524_v48  ;;  %v2529_v57 = vor.u32 %v2789_v50, %v2526_v51  ;;  %v2693_v42 = vld [vmem:[#allocation2 + $0x1d4] sm:$0xf]  ;;  %v2706_v48 = vld [vmem:[#allocation2 + $0x234] sm:$0xf0]  ;;  %v1564_v50 = vperm.slane %v2978_v16, 2 }
  0x9f   :  { %1489 = vmatpush.bf16.msra.mxu3 %v2329_v54  ;;  %v2790_v54 = vld [vmem:[#allocation2 + $0x4dc] sm:$0xf]  ;;  %v2142_v43 = vld [vmem:[#allocation2 + $0x230] sm:$0xf0] }
  0xa0   :  { %v2150_v51 = vld [vmem:[#allocation2 + $0x238] sm:$0xf0] }
  0xa1   :  { %1448 = vmatpush.bf16.msra.mxu0 %v2221_v60  ;;  %1462 = vmatpush.bf16.msra.mxu1 %v2225_v61  ;;  %v2777_v60 = vld [vmem:[#allocation2 + $0x46c] sm:$0xf0]  ;;  %v2765_v61 = vld [vmem:[#allocation2 + $0x414] sm:$0xf] }
  0xa2   :  { %1476 = vmatpush.bf16.msra.mxu2 %v2229_v62  ;;  %v2537_v62 = vor.u32 %v2790_v54, %v2534_v55  ;;  %v2429_v6 = vor.u32 %v2777_v60, %v2428_v59  ;;  %v2433_v8 = vor.u32 %v2765_v61, %v2430_v0  ;;  %v2044_v55 = vld [vmem:[#allocation2 + $0x110] sm:$0xf]  ;;  %v2145_v59 = vor.u32 %v2693_v42, %v2142_v43  ;;  %v2669_v61 = vld [vmem:[#allocation2 + $0x114] sm:$0xf] }
  0xa3   :  { %1490 = vmatpush.bf16.msra.mxu3 %v2233_v3  ;;  %v2778_v3 = vld [vmem:[#allocation2 + $0x474] sm:$0xf0] }
  0xa5   :  { %1449 = vmatpush.bf16.msra.mxu0 %v2125_v9  ;;  %1463 = vmatpush.bf16.msra.mxu1 %v2129_v10  ;;  %v2437_v9 = vor.u32 %v2778_v3, %v2436_v2  ;;  %v2753_v10 = vld [vmem:[#allocation2 + $0x3ac] sm:$0xf0]  ;;  %v1667_v3 = vperm.slane %v2980_v22, 3 }
  0xa6   :  { %1477 = vmatpush.bf16.msra.mxu2 %v2133_v11  ;;  %v2741_v11 = vld [vmem:[#allocation2 + $0x354] sm:$0xf]  ;;  %v2333_v19 = vor.u32 %v2753_v10, %v2332_v7  ;;  %v2670_v10 = vld [vmem:[#allocation2 + $0x11c] sm:$0xf] }
  0xa7   :  { %1491 = vmatpush.bf16.msra.mxu3 %v2137_v15  ;;  %v2754_v15 = vld [vmem:[#allocation2 + $0x3b4] sm:$0xf0]  ;;  %v2337_v23 = vor.u32 %v2741_v11, %v2334_v12  ;;  %v2054_v11 = vld [vmem:[#allocation2 + $0x178] sm:$0xf0] }
  0xa9   :  { %1450 = vmatpush.bf16.msra.mxu0 %v2029_v21  ;;  %1464 = vmatpush.bf16.msra.mxu1 %v2033_v24  ;;  %v2729_v21 = vld [vmem:[#allocation2 + $0x2ec] sm:$0xf0]  ;;  %v2341_v24 = vor.u32 %v2754_v15, %v2340_v14 }
  0xaa   :  { %1478 = vmatpush.bf16.msra.mxu2 %v2037_v25  ;;  %v2717_v25 = vld [vmem:[#allocation2 + $0x294] sm:$0xf]  ;;  %v2237_v35 = vor.u32 %v2729_v21, %v2236_v20  ;;  %v1948_v15 = vld [vmem:[#allocation2 + $0x50] sm:$0xf] }
  0xab   :  { %1492 = vmatpush.bf16.msra.mxu3 %v2041_v29  ;;  %v2244_v29 = vld [vmem:[#allocation2 + $0x298] sm:$0xf]  ;;  %v2241_v39 = vor.u32 %v2717_v25, %v2238_v26  ;;  %v2657_v21 = vld [vmem:[#allocation2 + $0xac] sm:$0xf0] }
  0xad   :  { %1451 = vmatpush.bf16.msra.mxu0 %v1933_v36  ;;  %1465 = vmatpush.bf16.msra.mxu1 %v1937_v40  ;;  %v2140_v36 = vld [vmem:[#allocation2 + $0x1d0] sm:$0xf]  ;;  %v1229_v37 = vpop.f32.mrf.mxu0  ;;  %v2245_v40 = vor.u32 %v2730_v30, %v2244_v29  ;;  %v2057_v29 = vor.u32 %v2670_v10, %v2054_v11  ;;  %v1956_v30 = vld [vmem:[#allocation2 + $0x58] sm:$0xf] }
  0xae   :  { %1479 = vmatpush.bf16.msra.mxu2 %v1941_v41  ;;  %v2705_v41 = vld [vmem:[#allocation2 + $0x22c] sm:$0xf0] }
  0xaf   :  { %1493 = vmatpush.bf16.msra.mxu3 %v1945_v44  ;;  %v1610_v44 = vmul.f32 %v1562_v27, %v1229_v37  ;;  %v2141_v54 = vor.u32 %v2705_v41, %v2140_v36  ;;  %v2646_v36 = vld [vmem:[#allocation2 + $0x5c] sm:$0xf] }
  0xb0   :  { %1452 = vmatmul.bf16.vlgmr.msra.gmra.mxu0 %v2972_v63  ;;  %1466 = vmatmul.bf16.vlgmr.msra.gmra.mxu1 %v2972_v63  ;;  %v1958_v37 = vld [vmem:[#allocation2 + $0xb8] sm:$0xf0] }
  0xb1   :  { %1500 = vmatpush.bf16.msrb.mxu0 %v2621_v45  ;;  %1514 = vmatpush.bf16.msrb.mxu1 %v2625_v46  ;;  %v1243_v45 = vpop.f32.mrf.mxu1  ;;  %v2249_v46 = vor.u32 %v2718_v32, %v2246_v33  ;;  %v1712_v52 = vadd.f32 %v1664_v34, %v1610_v44  ;;  %v2658_v32 = vld [vmem:[#allocation2 + $0xb4] sm:$0xf0] }
  0xb2   :  { %1528 = vmatpush.bf16.msrb.mxu2 %v2629_v47  ;;  %1494 = vmatmul.bf16.vlgmr.msra.gmra.mxu3 %v2972_v63  ;;  %v2148_v47 = vld [vmem:[#allocation2 + $0x1d8] sm:$0xf]  ;;  %v1611_v49 = vmul.f32 %v1563_v31, %v1243_v45  ;;  %v1957_v43 = vor.u32 %v2658_v32, %v1956_v30 }
  0xb3   :  { %1542 = vmatpush.bf16.msrb.mxu3 %v2633_v1  ;;  %1480 = vmatmul.bf16.vlgmr.msra.gmra.mxu2 %v2972_v63  ;;  %v2694_v1 = vld [vmem:[#allocation2 + $0x1dc] sm:$0xf]  ;;  %v2149_v60 = vor.u32 %v2706_v48, %v2148_v47  ;;  %v1760_v0 = vmax.f32 %v1712_v52, 0.0 }
  0xb4   :  { %v2153_v4 = vor.u32 %v2694_v1, %v2150_v51 }
  0xb5   :  { %1501 = vmatpush.bf16.msrb.mxu0 %v2525_v56  ;;  %1515 = vmatpush.bf16.msrb.mxu1 %v2529_v57  ;;  %v2681_v56 = vld [vmem:[#allocation2 + $0x16c] sm:$0xf0]  ;;  %v1713_v57 = vadd.f32 %v1665_v38, %v1611_v49 }
  0xb6   :  { %1529 = vmatpush.bf16.msrb.mxu2 %v2533_v58  ;;  %v1666_v58 = vperm.slane %v2980_v22, 2  ;;  %v1257_v2 = vpop.f32.mrf.mxu2 }
  0xb7   :  { %1543 = vmatpush.bf16.msrb.mxu3 %v2537_v62  ;;  %v2046_v62 = vld [vmem:[#allocation2 + $0x170] sm:$0xf0]  ;;  %v1761_v7 = vmax.f32 %v1713_v57, 0.0 }
  0xb8   :  { %v2049_v14 = vor.u32 %v2669_v61, %v2046_v62  ;;  %v1568_v62 = vperm.slane %v2978_v16, 6 }
  0xb9   :  { %1502 = vmatpush.bf16.msrb.mxu0 %v2429_v6  ;;  %1516 = vmatpush.bf16.msrb.mxu1 %v2433_v8  ;;  %v2682_v6 = vld [vmem:[#allocation2 + $0x174] sm:$0xf0]  ;;  %v1612_v8 = vmul.f32 %v1564_v50, %v1257_v2  ;;  %v1808_v17 = vpack.c.bf16 %v1761_v7, %v1760_v0  ;;  %v1569_v0 = vperm.slane %v2978_v16, 7 }
  0xba   :  { %1530 = vmatpush.bf16.msrb.mxu2 %v2437_v9  ;;  %v1271_v9 = vpop.f32.mrf.mxu3  ;;  %v2053_v20 = vor.u32 %v2682_v6, %v2052_v5  ;;  %v1671_v6 = vperm.slane %v2980_v22, 7 }
  0xbb   :  { %1544 = vmatpush.bf16.msrb.mxu3 %v2441_v13  ;;  %v1613_v12 = vmul.f32 %v1565_v53, %v1271_v9  ;;  %v2045_v13 = vor.u32 %v2681_v56, %v2044_v55  ;;  %v1714_v18 = vadd.f32 %v1666_v58, %v1612_v8  ;;  %1832 = vst [vmem:[%s3146_s4] sm:$0xff] %v1808_v17  ;;  %v1567_v55 = vperm.slane %v2978_v16, 5 }
  0xbc   :  { %v1668_v56 = vperm.slane %v2980_v22, 4 }
  0xbd   :  { %1503 = vmatpush.bf16.msrb.mxu0 %v2333_v19  ;;  %1517 = vmatpush.bf16.msrb.mxu1 %v2337_v23  ;;  %v1231_v19 = vpop.f32.mrf.mxu0  ;;  %v2645_v23 = vld [vmem:[#allocation2 + $0x54] sm:$0xf]  ;;  %v1715_v25 = vadd.f32 %v1667_v3, %v1613_v12  ;;  %v1762_v33 = vmax.f32 %v1714_v18, 0.0 }
  0xbe   :  { %1531 = vmatpush.bf16.msrb.mxu2 %v2341_v24  ;;  %v1950_v24 = vld [vmem:[#allocation2 + $0xb0] sm:$0xf0]  ;;  %v1634_v26 = vmul.f32 %v1562_v27, %v1231_v19  ;;  %v1949_v27 = vor.u32 %v2657_v21, %v1948_v15 }
  0xbf   :  { %1545 = vmatpush.bf16.msrb.mxu3 %v2345_v28  ;;  %v1245_v28 = vpop.f32.mrf.mxu1  ;;  %v1953_v42 = vor.u32 %v2645_v23, %v1950_v24 }
  0xc1   :  { %1504 = vmatpush.bf16.msrb.mxu0 %v2237_v35  ;;  %1518 = vmatpush.bf16.msrb.mxu1 %v2241_v39  ;;  %v1635_v35 = vmul.f32 %v1563_v31, %v1245_v28  ;;  %v1763_v39 = vmax.f32 %v1715_v25, 0.0  ;;  %v1961_v31 = vor.u32 %v2646_v36, %v1958_v37 }
  0xc2   :  { %1532 = vmatpush.bf16.msrb.mxu2 %v2245_v40  ;;  %v1736_v40 = vadd.f32 %v1664_v34, %v1634_v26  ;;  %v1273_v49 = vpop.f32.mrf.mxu3 }
  0xc3   :  { %1546 = vmatpush.bf16.msrb.mxu3 %v2249_v46  ;;  %v1737_v41 = vadd.f32 %v1665_v38, %v1635_v35  ;;  %v1809_v44 = vpack.c.bf16 %v1763_v39, %v1762_v33  ;;  %v1259_v46 = vpop.f32.mrf.mxu2  ;;  %v1637_v34 = vmul.f32 %v1565_v53, %v1273_v49  ;;  %v3054_v39 = vld [vmem:[#allocation4 + $0x8] sm:$0xff] }
  0xc4   :  { %v1784_v45 = vmax.f32 %v1736_v40, 0.0  ;;  %v1636_v48 = vmul.f32 %v1564_v50, %v1259_v46  ;;  %v3056_v40 = vld [vmem:[#allocation6 + $0x8] sm:$0xff]  ;;  %v1573_v49 = vperm.slane %v3054_v39, 3 }
  0xc5   :  { %1505 = vmatpush.bf16.msrb.mxu0 %v2141_v54  ;;  %1519 = vmatpush.bf16.msrb.mxu1 %v2145_v59  ;;  %v1785_v47 = vmax.f32 %v1737_v41, 0.0  ;;  %1833 = vst [vmem:[%s3146_s4 + $0x8] sm:$0xff] %v1809_v44  ;;  %v1739_v51 = vadd.f32 %v1667_v3, %v1637_v34  ;;  %v1566_v54 = vperm.slane %v2978_v16, 4  ;;  %v1670_v3 = vperm.slane %v2980_v22, 6 }
  0xc6   :  { %1533 = vmatpush.bf16.msrb.mxu2 %v2149_v60  ;;  %v1738_v1 = vadd.f32 %v1666_v58, %v1636_v48  ;;  %v1669_v58 = vperm.slane %v2980_v22, 5  ;;  %v1571_v41 = vperm.slane %v3054_v39, 1  ;;  %v1673_v44 = vperm.slane %v3056_v40, 1 }
  0xc7   :  { %1547 = vmatpush.bf16.msrb.mxu3 %v2153_v4  ;;  %v1820_v38 = vpack.c.bf16 %v1785_v47, %v1784_v45  ;;  %v1787_v52 = vmax.f32 %v1739_v51, 0.0  ;;  %v1572_v47 = vperm.slane %v3054_v39, 2 }
  0xc8   :  { %v1786_v50 = vmax.f32 %v1738_v1, 0.0 }
  0xc9   :  { %1506 = vmatpush.bf16.msrb.mxu0 %v2045_v13  ;;  %1520 = vmatpush.bf16.msrb.mxu1 %v2049_v14  ;;  %1844 = vst [vmem:[%s3146_s4 + $0x60] sm:$0xff] %v1820_v38  ;;  %v1674_v38 = vperm.slane %v3056_v40, 2 }
  0xca   :  { %1534 = vmatpush.bf16.msrb.mxu2 %v2053_v20  ;;  %v1821_v53 = vpack.c.bf16 %v1787_v52, %v1786_v50  ;;  %v1675_v50 = vperm.slane %v3056_v40, 3 }
  0xcb   :  { %1548 = vmatpush.bf16.msrb.mxu3 %v2057_v29 }
  0xcc   :  { %1845 = vst [vmem:[%s3146_s4 + $0x68] sm:$0xff] %v1821_v53 }
  0xcd   :  { %1507 = vmatpush.bf16.msrb.mxu0 %v1949_v27  ;;  %1521 = vmatpush.bf16.msrb.mxu1 %v1953_v42  ;;  %v1285_v57 = vpop.f32.mrf.mxu0  ;;  %v1299_v60 = vpop.f32.mrf.mxu1  ;;  %v1570_v27 = vperm.slane %v3054_v39, 0  ;;  %v1672_v42 = vperm.slane %v3056_v40, 0 }
  0xce   :  { %1535 = vmatpush.bf16.msrb.mxu2 %v1957_v43  ;;  %v1614_v59 = vmul.f32 %v1566_v54, %v1285_v57  ;;  %v1615_v61 = vmul.f32 %v1567_v55, %v1299_v60 }
  0xcf   :  { %1549 = vmatpush.bf16.msrb.mxu3 %v1961_v31 }
  0xd0   :  { %1508 = vmatmul.bf16.vlgmr.msrb.gmra.mxu0 %v2972_v63  ;;  %1522 = vmatmul.bf16.vlgmr.msrb.gmra.mxu1 %v2972_v63  ;;  %v1717_v2 = vadd.f32 %v1669_v58, %v1615_v61 }
  0xd1   :  { %1536 = vmatmul.bf16.vlgmr.msrb.gmra.mxu2 %v2972_v63 }
  0xd2   :  { %1550 = vmatmul.bf16.vlgmr.msrb.gmra.mxu3 %v2972_v63  ;;  %v1716_v63 = vadd.f32 %v1668_v56, %v1614_v59  ;;  %v1765_v7 = vmax.f32 %v1717_v2, 0.0 }
  0xd4   :  { %v1764_v4 = vmax.f32 %v1716_v63, 0.0 }
  0xd5   :  { %v1327_v9 = vpop.f32.mrf.mxu3  ;;  %v1287_v13 = vpop.f32.mrf.mxu0 }
  0xd6   :  { %v1313_v5 = vpop.f32.mrf.mxu2  ;;  %v1617_v10 = vmul.f32 %v1569_v0, %v1327_v9  ;;  %v1810_v11 = vpack.c.bf16 %v1765_v7, %v1764_v4  ;;  %v1638_v15 = vmul.f32 %v1566_v54, %v1287_v13  ;;  %v1301_v17 = vpop.f32.mrf.mxu1 }
  0xd7   :  { %v1616_v8 = vmul.f32 %v1568_v62, %v1313_v5  ;;  %v1639_v18 = vmul.f32 %v1567_v55, %v1301_v17 }
  0xd8   :  { %v1719_v14 = vadd.f32 %v1671_v6, %v1617_v10  ;;  %1834 = vst [vmem:[%s3146_s4 + $0x10] sm:$0xff] %v1810_v11  ;;  %v1740_v20 = vadd.f32 %v1668_v56, %v1638_v15 }
  0xd9   :  { %v1718_v12 = vadd.f32 %v1670_v3, %v1616_v8  ;;  %v1741_v21 = vadd.f32 %v1669_v58, %v1639_v18  ;;  %v1575_v18 = vperm.slane %v3054_v39, 5 }
  0xda   :  { %v1767_v19 = vmax.f32 %v1719_v14, 0.0  ;;  %v1788_v23 = vmax.f32 %v1740_v20, 0.0 }
  0xdb   :  { %v1766_v16 = vmax.f32 %v1718_v12, 0.0  ;;  %v1789_v25 = vmax.f32 %v1741_v21, 0.0  ;;  %v1677_v21 = vperm.slane %v3056_v40, 5 }
  0xdd   :  { %v1811_v22 = vpack.c.bf16 %v1767_v19, %v1766_v16  ;;  %v1329_v28 = vpop.f32.mrf.mxu3  ;;  %v1822_v30 = vpack.c.bf16 %v1789_v25, %v1788_v23  ;;  %v1574_v16 = vperm.slane %v3054_v39, 4  ;;  %v1676_v19 = vperm.slane %v3056_v40, 4 }
  0xde   :  { %v1315_v24 = vpop.f32.mrf.mxu2  ;;  %v1641_v29 = vmul.f32 %v1569_v0, %v1329_v28  ;;  %v1576_v25 = vperm.slane %v3054_v39, 6  ;;  %v1577_v28 = vperm.slane %v3054_v39, 7 }
  0xdf   :  { %v1640_v26 = vmul.f32 %v1568_v62, %v1315_v24  ;;  %1835 = vst [vmem:[%s3146_s4 + $0x18] sm:$0xff] %v1811_v22 }
  0xe0   :  { %v1743_v33 = vadd.f32 %v1671_v6, %v1641_v29  ;;  %1846 = vst [vmem:[%s3146_s4 + $0x70] sm:$0xff] %v1822_v30  ;;  %v1678_v30 = vperm.slane %v3056_v40, 6 }
  0xe1   :  { %v1742_v32 = vadd.f32 %v1670_v3, %v1640_v26 }
  0xe2   :  { %v1791_v36 = vmax.f32 %v1743_v33, 0.0 }
  0xe3   :  { %v1790_v35 = vmax.f32 %v1742_v32, 0.0 }
  0xe5   :  { %v1823_v37 = vpack.c.bf16 %v1791_v36, %v1790_v35  ;;  %v1679_v35 = vperm.slane %v3056_v40, 7 }
  0xe7   :  { %1847 = vst [vmem:[%s3146_s4 + $0x78] sm:$0xff] %v1823_v37 }
  0xed   :  { %v1341_v43 = vpop.f32.mrf.mxu0  ;;  %v1355_v46 = vpop.f32.mrf.mxu1 }
  0xee   :  { %v1618_v45 = vmul.f32 %v1570_v27, %v1341_v43  ;;  %v1619_v31 = vmul.f32 %v1571_v41, %v1355_v46 }
  0xf0   :  { %v1720_v48 = vadd.f32 %v1672_v42, %v1618_v45  ;;  %v1721_v34 = vadd.f32 %v1673_v44, %v1619_v31 }
  0xf2   :  { %v1768_v1 = vmax.f32 %v1720_v48, 0.0  ;;  %v1769_v52 = vmax.f32 %v1721_v34, 0.0 }
  0xf4   :  { %v1812_v56 = vpack.c.bf16 %v1769_v52, %v1768_v1 }
  0xf5   :  { %v1383_v54 = vpop.f32.mrf.mxu3  ;;  %v1343_v58 = vpop.f32.mrf.mxu0 }
  0xf6   :  { %v1369_v51 = vpop.f32.mrf.mxu2  ;;  %v1621_v55 = vmul.f32 %v1573_v49, %v1383_v54  ;;  %v1642_v60 = vmul.f32 %v1570_v27, %v1343_v58  ;;  %v1357_v61 = vpop.f32.mrf.mxu1  ;;  %1836 = vst [vmem:[%s3146_s4 + $0x20] sm:$0xff] %v1812_v56 }
  0xf7   :  { %v1620_v53 = vmul.f32 %v1572_v47, %v1369_v51  ;;  %v1643_v63 = vmul.f32 %v1571_v41, %v1357_v61  ;;  %v3100_v61 = vld [vmem:[#allocation6 + $0x10] sm:$0xff] }
  0xf8   :  { %v1723_v59 = vadd.f32 %v1675_v50, %v1621_v55  ;;  %v1744_v2 = vadd.f32 %v1672_v42, %v1642_v60  ;;  %v3098_v60 = vld [vmem:[#allocation4 + $0x10] sm:$0xff] }
  0xf9   :  { %v1722_v57 = vadd.f32 %v1674_v38, %v1620_v53  ;;  %v1745_v3 = vadd.f32 %v1673_v44, %v1643_v63  ;;  %v1579_v63 = vperm.slane %v3098_v60, 1 }
  0xfa   :  { %v1771_v0 = vmax.f32 %v1723_v59, 0.0  ;;  %v1792_v5 = vmax.f32 %v1744_v2, 0.0 }
  0xfb   :  { %v1770_v62 = vmax.f32 %v1722_v57, 0.0  ;;  %v1793_v7 = vmax.f32 %v1745_v3, 0.0  ;;  %v1681_v3 = vperm.slane %v3100_v61, 1 }
  0xfd   :  { %v1813_v4 = vpack.c.bf16 %v1771_v0, %v1770_v62  ;;  %v1385_v9 = vpop.f32.mrf.mxu3  ;;  %v1824_v11 = vpack.c.bf16 %v1793_v7, %v1792_v5  ;;  %v1578_v62 = vperm.slane %v3098_v60, 0  ;;  %v1680_v0 = vperm.slane %v3100_v61, 0 }
  0xfe   :  { %v1371_v6 = vpop.f32.mrf.mxu2  ;;  %v1645_v10 = vmul.f32 %v1573_v49, %v1385_v9  ;;  %v1580_v7 = vperm.slane %v3098_v60, 2  ;;  %v1581_v9 = vperm.slane %v3098_v60, 3 }
  0xff   :  { %v1644_v8 = vmul.f32 %v1572_v47, %v1371_v6  ;;  %1837 = vst [vmem:[%s3146_s4 + $0x28] sm:$0xff] %v1813_v4 }
 0x100   :  { %v1747_v13 = vadd.f32 %v1675_v50, %v1645_v10  ;;  %1848 = vst [vmem:[%s3146_s4 + $0x80] sm:$0xff] %v1824_v11  ;;  %v1682_v11 = vperm.slane %v3100_v61, 2 }
 0x101   :  { %v1746_v12 = vadd.f32 %v1674_v38, %v1644_v8 }
 0x102   :  { %v1795_v15 = vmax.f32 %v1747_v13, 0.0 }
 0x103   :  { %v1794_v14 = vmax.f32 %v1746_v12, 0.0 }
 0x105   :  { %v1825_v17 = vpack.c.bf16 %v1795_v15, %v1794_v14  ;;  %v1683_v14 = vperm.slane %v3100_v61, 3 }
 0x107   :  { %1849 = vst [vmem:[%s3146_s4 + $0x88] sm:$0xff] %v1825_v17 }
 0x10d   :  { %v1397_v20 = vpop.f32.mrf.mxu0  ;;  %v1411_v23 = vpop.f32.mrf.mxu1 }
 0x10e   :  { %v1622_v22 = vmul.f32 %v1574_v16, %v1397_v20  ;;  %v1623_v24 = vmul.f32 %v1575_v18, %v1411_v23 }
 0x110   :  { %v1724_v26 = vadd.f32 %v1676_v19, %v1622_v22  ;;  %v1725_v29 = vadd.f32 %v1677_v21, %v1623_v24 }
 0x112   :  { %v1772_v32 = vmax.f32 %v1724_v26, 0.0  ;;  %v1773_v36 = vmax.f32 %v1725_v29, 0.0 }
 0x114   :  { %v1814_v42 = vpack.c.bf16 %v1773_v36, %v1772_v32 }
 0x115   :  { %v1439_v27 = vpop.f32.mrf.mxu3  ;;  %v1399_v44 = vpop.f32.mrf.mxu0 }
 0x116   :  { %v1425_v33 = vpop.f32.mrf.mxu2  ;;  %v1625_v41 = vmul.f32 %v1577_v28, %v1439_v27  ;;  %v1646_v46 = vmul.f32 %v1574_v16, %v1399_v44  ;;  %v1413_v31 = vpop.f32.mrf.mxu1  ;;  %1838 = vst [vmem:[%s3146_s4 + $0x30] sm:$0xff] %v1814_v42 }
 0x117   :  { %v1624_v37 = vmul.f32 %v1576_v25, %v1425_v33  ;;  %v1647_v47 = vmul.f32 %v1575_v18, %v1413_v31 }
 0x118   :  { %v1727_v45 = vadd.f32 %v1679_v35, %v1625_v41  ;;  %v1748_v49 = vadd.f32 %v1676_v19, %v1646_v46 }
 0x119   :  { %v1726_v43 = vadd.f32 %v1678_v30, %v1624_v37  ;;  %v1749_v34 = vadd.f32 %v1677_v21, %v1647_v47  ;;  %v1583_v47 = vperm.slane %v3098_v60, 5 }
 0x11a   :  { %v1775_v48 = vmax.f32 %v1727_v45, 0.0  ;;  %v1796_v38 = vmax.f32 %v1748_v49, 0.0 }
 0x11b   :  { %v1774_v39 = vmax.f32 %v1726_v43, 0.0  ;;  %v1797_v51 = vmax.f32 %v1749_v34, 0.0  ;;  %v1685_v34 = vperm.slane %v3100_v61, 5 }
 0x11d   :  { %v1815_v40 = vpack.c.bf16 %v1775_v48, %v1774_v39  ;;  %v1441_v52 = vpop.f32.mrf.mxu3  ;;  %v1826_v54 = vpack.c.bf16 %v1797_v51, %v1796_v38  ;;  %v1582_v39 = vperm.slane %v3098_v60, 4  ;;  %v1684_v48 = vperm.slane %v3100_v61, 4 }
 0x11e   :  { %v1427_v1 = vpop.f32.mrf.mxu2  ;;  %v1649_v53 = vmul.f32 %v1577_v28, %v1441_v52  ;;  %v1584_v52 = vperm.slane %v3098_v60, 6 }
 0x11f   :  { %v1648_v50 = vmul.f32 %v1576_v25, %v1427_v1  ;;  %1839 = vst [vmem:[%s3146_s4 + $0x38] sm:$0xff] %v1815_v40 }
 0x120   :  { %v1751_v56 = vadd.f32 %v1679_v35, %v1649_v53  ;;  %1850 = vst [vmem:[%s3146_s4 + $0x90] sm:$0xff] %v1826_v54  ;;  %v1585_v54 = vperm.slane %v3098_v60, 7 }
 0x121   :  { %v1750_v55 = vadd.f32 %v1678_v30, %v1648_v50 }
 0x122   :  { %v1799_v58 = vmax.f32 %v1751_v56, 0.0  ;;  %v1686_v56 = vperm.slane %v3100_v61, 6 }
 0x123   :  { %v1798_v57 = vmax.f32 %v1750_v55, 0.0 }
 0x125   :  { %v1827_v59 = vpack.c.bf16 %v1799_v58, %v1798_v57  ;;  %v1687_v58 = vperm.slane %v3100_v61, 7 }
 0x127   :  { %1851 = vst [vmem:[%s3146_s4 + $0x98] sm:$0xff] %v1827_v59 }
 0x12d   :  { %v1453_v2 = vpop.f32.mrf.mxu0  ;;  %v1467_v5 = vpop.f32.mrf.mxu1 }
 0x12e   :  { %v1626_v4 = vmul.f32 %v1578_v62, %v1453_v2  ;;  %v1627_v6 = vmul.f32 %v1579_v63, %v1467_v5 }
 0x130   :  { %v1728_v8 = vadd.f32 %v1680_v0, %v1626_v4  ;;  %v1729_v10 = vadd.f32 %v1681_v3, %v1627_v6 }
 0x132   :  { %v1776_v12 = vmax.f32 %v1728_v8, 0.0  ;;  %v1777_v15 = vmax.f32 %v1729_v10, 0.0 }
 0x134   :  { %v1816_v19 = vpack.c.bf16 %v1777_v15, %v1776_v12 }
 0x135   :  { %v1495_v16 = vpop.f32.mrf.mxu3  ;;  %v1455_v21 = vpop.f32.mrf.mxu0 }
 0x136   :  { %v1481_v13 = vpop.f32.mrf.mxu2  ;;  %v1629_v18 = vmul.f32 %v1581_v9, %v1495_v16  ;;  %v1650_v23 = vmul.f32 %v1578_v62, %v1455_v21  ;;  %v1469_v24 = vpop.f32.mrf.mxu1  ;;  %1840 = vst [vmem:[%s3146_s4 + $0x40] sm:$0xff] %v1816_v19 }
 0x137   :  { %v1628_v17 = vmul.f32 %v1580_v7, %v1481_v13  ;;  %v1651_v26 = vmul.f32 %v1579_v63, %v1469_v24 }
 0x138   :  { %v1731_v22 = vadd.f32 %v1683_v14, %v1629_v18  ;;  %v1752_v29 = vadd.f32 %v1680_v0, %v1650_v23 }
 0x139   :  { %v1730_v20 = vadd.f32 %v1682_v11, %v1628_v17  ;;  %v1753_v30 = vadd.f32 %v1681_v3, %v1651_v26 }
 0x13a   :  { %v1779_v28 = vmax.f32 %v1731_v22, 0.0  ;;  %v1800_v33 = vmax.f32 %v1752_v29, 0.0 }
 0x13b   :  { %v1778_v25 = vmax.f32 %v1730_v20, 0.0  ;;  %v1801_v36 = vmax.f32 %v1753_v30, 0.0 }
 0x13d   :  { %v1817_v32 = vpack.c.bf16 %v1779_v28, %v1778_v25  ;;  %v1497_v27 = vpop.f32.mrf.mxu3  ;;  %v1828_v42 = vpack.c.bf16 %v1801_v36, %v1800_v33 }
 0x13e   :  { %v1483_v35 = vpop.f32.mrf.mxu2  ;;  %v1653_v41 = vmul.f32 %v1581_v9, %v1497_v27 }
 0x13f   :  { %v1652_v37 = vmul.f32 %v1580_v7, %v1483_v35  ;;  %1841 = vst [vmem:[%s3146_s4 + $0x48] sm:$0xff] %v1817_v32 }
 0x140   :  { %v1755_v44 = vadd.f32 %v1683_v14, %v1653_v41  ;;  %1852 = vst [vmem:[%s3146_s4 + $0xa0] sm:$0xff] %v1828_v42 }
 0x141   :  { %v1754_v43 = vadd.f32 %v1682_v11, %v1652_v37 }
 0x142   :  { %v1803_v46 = vmax.f32 %v1755_v44, 0.0 }
 0x143   :  { %v1802_v45 = vmax.f32 %v1754_v43, 0.0 }
 0x145   :  { %v1829_v31 = vpack.c.bf16 %v1803_v46, %v1802_v45 }
 0x147   :  { %1853 = vst [vmem:[%s3146_s4 + $0xa8] sm:$0xff] %v1829_v31 }
 0x14d   :  { %v1509_v49 = vpop.f32.mrf.mxu0  ;;  %v1523_v38 = vpop.f32.mrf.mxu1 }
 0x14e   :  { %v1630_v40 = vmul.f32 %v1582_v39, %v1509_v49  ;;  %v1631_v1 = vmul.f32 %v1583_v47, %v1523_v38 }
 0x150   :  { %v1732_v51 = vadd.f32 %v1684_v48, %v1630_v40  ;;  %v1733_v50 = vadd.f32 %v1685_v34, %v1631_v1 }
 0x152   :  { %v1780_v53 = vmax.f32 %v1732_v51, 0.0  ;;  %v1781_v55 = vmax.f32 %v1733_v50, 0.0 }
 0x154   :  { %v1537_v57 = vpop.f32.mrf.mxu2  ;;  %v1818_v59 = vpack.c.bf16 %v1781_v55, %v1780_v53 }
 0x155   :  { %v1632_v62 = vmul.f32 %v1584_v52, %v1537_v57  ;;  %v1551_v63 = vpop.f32.mrf.mxu3  ;;  %v1511_v0 = vpop.f32.mrf.mxu0 }
 0x156   :  { %v1633_v2 = vmul.f32 %v1585_v54, %v1551_v63  ;;  %v1654_v3 = vmul.f32 %v1582_v39, %v1511_v0  ;;  %v1525_v4 = vpop.f32.mrf.mxu1  ;;  %1842 = vst [vmem:[%s3146_s4 + $0x50] sm:$0xff] %v1818_v59 }
 0x157   :  { %v1734_v5 = vadd.f32 %v1686_v56, %v1632_v62  ;;  %v1655_v6 = vmul.f32 %v1583_v47, %v1525_v4 }
 0x158   :  { %v1735_v60 = vadd.f32 %v1687_v58, %v1633_v2  ;;  %v1756_v7 = vadd.f32 %v1684_v48, %v1654_v3 }
 0x159   :  { %v1782_v8 = vmax.f32 %v1734_v5, 0.0  ;;  %v1757_v9 = vadd.f32 %v1685_v34, %v1655_v6 }
 0x15a   :  { %v1783_v10 = vmax.f32 %v1735_v60, 0.0  ;;  %v1804_v11 = vmax.f32 %v1756_v7, 0.0 }
 0x15b   :  { %v1805_v61 = vmax.f32 %v1757_v9, 0.0 }
 0x15c   :  { %v1819_v12 = vpack.c.bf16 %v1783_v10, %v1782_v8  ;;  %v1539_v13 = vpop.f32.mrf.mxu2 }
 0x15d   :  { %v1830_v14 = vpack.c.bf16 %v1805_v61, %v1804_v11  ;;  %v1656_v15 = vmul.f32 %v1584_v52, %v1539_v13  ;;  %v1553_v17 = vpop.f32.mrf.mxu3 }
 0x15e   :  { %1843 = vst [vmem:[%s3146_s4 + $0x58] sm:$0xff] %v1819_v12  ;;  %v1657_v16 = vmul.f32 %v1585_v54, %v1553_v17 }
 0x15f   :  { %1854 = vst [vmem:[%s3146_s4 + $0xb0] sm:$0xff] %v1830_v14  ;;  %v1758_v18 = vadd.f32 %v1686_v56, %v1656_v15 }
 0x160   :  { %v1759_v19 = vadd.f32 %v1687_v58, %v1657_v16 }
 0x161   :  { %v1806_v20 = vmax.f32 %v1758_v18, 0.0 }
 0x162   :  { %v1807_v21 = vmax.f32 %v1759_v19, 0.0 }
 0x164   :  { %v1831_v22 = vpack.c.bf16 %v1807_v21, %v1806_v20 }
 0x166   :  { %1855 = vst [vmem:[%s3146_s4 + $0xb8] sm:$0xff] %v1831_v22 }
 0x167   :  { %1860 = vsyncpa [#allocation3], 1 }
 0x168   :  { %1861 = vsyncpa [#allocation5], 1 }

// kernel: acgan_generator_forward.5
= control target key start
LH: loop header
LB: loop body
LE: loop exit
PB: predicated region body
PF: predicated region fallthrough
CT: control target
= control target key end

     0   :  { %9 = vsyncpa [#allocation3], 0  ;;  %s2981_s0 = inlined_call_operand.vmem [shape: bf16[64,768], index: 0, kind: input, shape index: {}]   ;;  %s2982_s1 = inlined_call_operand.hbm [shape: bf16[768,384], index: 1, kind: input, shape index: {}]   ;;  %s2983_s2 = inlined_call_operand.hbm [shape: f32[1,384], index: 2, kind: input, shape index: {}]   ;;  %s2984_s3 = inlined_call_operand.hbm [shape: f32[1,384], index: 3, kind: input, shape index: {}]   ;;  %s2985_s4 = inlined_call_operand.vmem [shape: bf16[64,384], index: 4, kind: output, shape index: {}]  }
   0x1   :  { %10 = vsyncpa [#allocation5], 0  ;;  %s2775_s15 = smov 0  }
   0x2 LB: > { %s162_s18 = sshll.u32 %s2983_s2, 4  ;;  %s1783_s19 = sadd.s32 4294967295, %s2743_s15   ;;  %s2743_s15 = sphi %s2775_s15, %s16_s15   ;;  %s163_s18 = int_to_ptr.hbm [resolvable:$true] %s162_s18 }
   0x3   : > { %p1785_p0 = scmp.ge.s32.totalorder %s2743_s15, 1  ;;  %p136_p1 = scmp.lt.s32.totalorder %s2743_s15, 3 }
   0x4   : > { %p2786_p2 = scmp.eq.s32.totalorder %s1783_s19, 0  ;;  %s2745_s22 = smov [#allocation4]  }
   0x5   : > { %p2790_p3 = pnand %p1785_p0, %p136_p1  ;;  %s164_s23 = sshll.u32 %s2745_s22, 4  ;;  %s165_s23 = int_to_ptr.vmem [resolvable:$true] %s164_s23 }
   0x6   : > { %s147_s26 = sshll.u32 %s2982_s1, 4  ;;  %s2746_s27 = smov [#allocation2]   ;;  %s148_s26 = int_to_ptr.hbm [resolvable:$true] %s147_s26 }
   0x7   : > { %p2610_p4 = pneg %p2790_p3  ;;  %s149_s28 = sshll.u32 %s2746_s27, 4  ;;  %s150_s28 = int_to_ptr.vmem [resolvable:$true] %s149_s28 }
   0x8   : > { %s174_s5 = sshll.u32 %s2984_s3, 4  ;;  %s2747_s6 = smov 192   ;;  %s175_s5 = int_to_ptr.hbm [resolvable:$true] %s174_s5 }
   0x9   : > { %p2611_p5 = pnand %p2786_p2, %p2610_p4  ;;  %s2748_s7 = smov 12  }
   0xa   : > { %s2749_s8 = smov [#allocation6]   ;;  %199 = sbr.rel (%p2790_p3) target bundleno = 336 (0x150), region = 36 }
   0xb   : > { %2616 = dma.hbm_to_vmem [thread:$0]  (!%p2611_p5), %s163_s18, 48, %s165_s23, [#allocation5]  }
   0xc   : > { %2613 = dma.hbm_to_vmem [thread:$0]  (!%p2611_p5), %s148_s26, 18432, %s150_s28, [#allocation3], %s2747_s6, %s2747_s6, %s2748_s7  }
   0xd   : > { %s176_s9 = sshll.u32 %s2749_s8, 4  ;;  %s177_s9 = int_to_ptr.vmem [resolvable:$true] %s176_s9 }
   0xe   : > { %2619 = dma.hbm_to_vmem [thread:$0]  (!%p2611_p5), %s175_s5, 48, %s177_s9, [#allocation5]  }
   0xf   : > { %2734 = dma.done.wait (%p2786_p2), [#allocation3], 18432  }
  0x10   : > { %2736 = vsyncadd (%p2786_p2), [#allocation3], 4294948864 }
  0x11   : > { %2738 = dma.done.wait (%p2786_p2), [#allocation5], 96  }
  0x12   : > { %2740 = vsyncadd (%p2786_p2), [#allocation5], 4294967200  ;;  %s2814_s10 = sshll.u32 %s1783_s19, 2  ;;  %v1932_v0 = vld [vmem:[#allocation2 + $0xa8] sm:$0xf] }
  0x13   : > { %v2458_v1 = vld [vmem:[#allocation2 + $0xb0] sm:$0xf0]  ;;  %v2028_v2 = vld [vmem:[#allocation2 + $0x168] sm:$0xf]  ;;  %v1920_v11 = vld [vmem:[#allocation2 + $0x90] sm:$0xf] }
  0x14   : > { %v1933_v3 = vor.u32 %v2458_v1, %v1932_v0  ;;  %v2482_v4 = vld [vmem:[#allocation2 + $0x170] sm:$0xf0]  ;;  %v2124_v5 = vld [vmem:[#allocation2 + $0x228] sm:$0xf]  ;;  %v2455_v13 = vld [vmem:[#allocation2 + $0x98] sm:$0xf0] }
  0x15   : > { %v2506_v6 = vld [vmem:[#allocation2 + $0x230] sm:$0xf0]  ;;  %v2029_v7 = vor.u32 %v2482_v4, %v2028_v2  ;;  %v2220_v9 = vld [vmem:[#allocation2 + $0x2e8] sm:$0xf]  ;;  %v2016_v14 = vld [vmem:[#allocation2 + $0x150] sm:$0xf]  ;;  %v1921_v16 = vor.u32 %v2455_v13, %v1920_v11 }
  0x16   : > { %v2125_v8 = vor.u32 %v2506_v6, %v2124_v5  ;;  %v2530_v10 = vld [vmem:[#allocation2 + $0x2f0] sm:$0xf0]  ;;  %1284 = vmatpush.bf16.msra.mxu0 %v1933_v3  ;;  %v2479_v15 = vld [vmem:[#allocation2 + $0x158] sm:$0xf0]  ;;  %v2112_v18 = vld [vmem:[#allocation2 + $0x210] sm:$0xf] }
  0x17   : > { %v2221_v12 = vor.u32 %v2530_v10, %v2220_v9  ;;  %1303 = vmatpush.bf16.msra.mxu1 %v2029_v7  ;;  %v2017_v17 = vor.u32 %v2479_v15, %v2016_v14  ;;  %v2503_v19 = vld [vmem:[#allocation2 + $0x218] sm:$0xf0]  ;;  %v2208_v20 = vld [vmem:[#allocation2 + $0x2d0] sm:$0xf]  ;;  %v1908_v23 = vld [vmem:[#allocation2 + $0x78] sm:$0xf] }
  0x18   : > { %1322 = vmatpush.bf16.msra.mxu2 %v2125_v8  ;;  %v2113_v21 = vor.u32 %v2503_v19, %v2112_v18  ;;  %v2527_v22 = vld [vmem:[#allocation2 + $0x2d8] sm:$0xf0]  ;;  %v2452_v24 = vld [vmem:[#allocation2 + $0x80] sm:$0xf0]  ;;  %v2004_v26 = vld [vmem:[#allocation2 + $0x138] sm:$0xf] }
  0x19   : > { %1341 = vmatpush.bf16.msra.mxu3 %v2221_v12  ;;  %v2209_v25 = vor.u32 %v2527_v22, %v2208_v20  ;;  %v2476_v27 = vld [vmem:[#allocation2 + $0x140] sm:$0xf0]  ;;  %v2100_v28 = vld [vmem:[#allocation2 + $0x1f8] sm:$0xf]  ;;  %v1909_v29 = vor.u32 %v2452_v24, %v1908_v23  ;;  %v1896_v35 = vld [vmem:[#allocation2 + $0x60] sm:$0xf] }
  0x1a   : > { %1285 = vmatpush.bf16.msra.mxu0 %v1921_v16  ;;  %v2500_v30 = vld [vmem:[#allocation2 + $0x200] sm:$0xf0]  ;;  %v2196_v31 = vld [vmem:[#allocation2 + $0x2b8] sm:$0xf]  ;;  %v2005_v33 = vor.u32 %v2476_v27, %v2004_v26  ;;  %v2449_v36 = vld [vmem:[#allocation2 + $0x68] sm:$0xf0] }
  0x1b   : > { %v2524_v32 = vld [vmem:[#allocation2 + $0x2c0] sm:$0xf0]  ;;  %1304 = vmatpush.bf16.msra.mxu1 %v2017_v17  ;;  %v2101_v34 = vor.u32 %v2500_v30, %v2100_v28  ;;  %v1992_v37 = vld [vmem:[#allocation2 + $0x120] sm:$0xf]  ;;  %v2473_v39 = vld [vmem:[#allocation2 + $0x128] sm:$0xf0]  ;;  %v1897_v44 = vor.u32 %v2449_v36, %v1896_v35 }
  0x1c   : > { %1323 = vmatpush.bf16.msra.mxu2 %v2113_v21  ;;  %v2197_v38 = vor.u32 %v2524_v32, %v2196_v31  ;;  %v2088_v40 = vld [vmem:[#allocation2 + $0x1e0] sm:$0xf]  ;;  %v2497_v41 = vld [vmem:[#allocation2 + $0x1e8] sm:$0xf0]  ;;  %p239_p6 = scmp.lt.s32.totalorder %s2814_s10, 7  ;;  %v1993_v45 = vor.u32 %v2473_v39, %v1992_v37 }
  0x1d   : > { %1342 = vmatpush.bf16.msra.mxu3 %v2209_v25  ;;  %v2184_v42 = vld [vmem:[#allocation2 + $0x2a0] sm:$0xf]  ;;  %v2521_v43 = vld [vmem:[#allocation2 + $0x2a8] sm:$0xf0]  ;;  %v2089_v46 = vor.u32 %v2497_v41, %v2088_v40  ;;  %v1884_v47 = vld [vmem:[#allocation2 + $0x48] sm:$0xf] }
  0x1e   : > { %1286 = vmatpush.bf16.msra.mxu0 %v1909_v29  ;;  %v2446_v48 = vld [vmem:[#allocation2 + $0x50] sm:$0xf0]  ;;  %v1980_v49 = vld [vmem:[#allocation2 + $0x108] sm:$0xf]  ;;  %v2185_v50 = vor.u32 %v2521_v43, %v2184_v42  ;;  %s2989_s10 = smov (!%p239_p6, %s2814_s10), 7 }
  0x1f   : > { %1305 = vmatpush.bf16.msra.mxu1 %v2005_v33  ;;  %v2470_v51 = vld [vmem:[#allocation2 + $0x110] sm:$0xf0]  ;;  %v2076_v52 = vld [vmem:[#allocation2 + $0x1c8] sm:$0xf]  ;;  %v1885_v56 = vor.u32 %v2446_v48, %v1884_v47  ;;  %v1872_v59 = vld [vmem:[#allocation2 + $0x30] sm:$0xf] }
  0x20   : > { %1324 = vmatpush.bf16.msra.mxu2 %v2101_v34  ;;  %v2494_v53 = vld [vmem:[#allocation2 + $0x1d0] sm:$0xf0]  ;;  %v2172_v54 = vld [vmem:[#allocation2 + $0x288] sm:$0xf]  ;;  %v1981_v57 = vor.u32 %v2470_v51, %v1980_v49  ;;  %v2443_v60 = vld [vmem:[#allocation2 + $0x38] sm:$0xf0] }
  0x21   : > { %1343 = vmatpush.bf16.msra.mxu3 %v2197_v38  ;;  %v2518_v55 = vld [vmem:[#allocation2 + $0x290] sm:$0xf0]  ;;  %v2077_v58 = vor.u32 %v2494_v53, %v2076_v52  ;;  %v1968_v61 = vld [vmem:[#allocation2 + $0xf0] sm:$0xf]  ;;  %v2467_v63 = vld [vmem:[#allocation2 + $0xf8] sm:$0xf0]  ;;  %v1873_v4 = vor.u32 %v2443_v60, %v1872_v59 }
  0x22   : > { %1287 = vmatpush.bf16.msra.mxu0 %v1897_v44  ;;  %v2173_v62 = vor.u32 %v2518_v55, %v2172_v54  ;;  %v2064_v0 = vld [vmem:[#allocation2 + $0x1b0] sm:$0xf]  ;;  %v2491_v1 = vld [vmem:[#allocation2 + $0x1b8] sm:$0xf0]  ;;  %s2596_s11 = smul.u32 24, %s2989_s10  ;;  %v1969_v5 = vor.u32 %v2467_v63, %v1968_v61 }
  0x23   : > { %1306 = vmatpush.bf16.msra.mxu1 %v1993_v45  ;;  %v2160_v2 = vld [vmem:[#allocation2 + $0x270] sm:$0xf]  ;;  %v2515_v3 = vld [vmem:[#allocation2 + $0x278] sm:$0xf0]  ;;  %v2065_v6 = vor.u32 %v2491_v1, %v2064_v0  ;;  %v1860_v7 = vld [vmem:[#allocation2 + $0x18] sm:$0xf] }
  0x24   : > { %1325 = vmatpush.bf16.msra.mxu2 %v2089_v46  ;;  %v2440_v8 = vld [vmem:[#allocation2 + $0x20] sm:$0xf0]  ;;  %v1956_v9 = vld [vmem:[#allocation2 + $0xd8] sm:$0xf]  ;;  %v2161_v10 = vor.u32 %v2515_v3, %v2160_v2  ;;  %v1848_v16 = vld [vmem:[#allocation2] sm:$0xf]  ;;  %s2826_s14 = scalar_lea.vmem %s2981_s0, %s2596_s11 }
  0x25   : > { %1344 = vmatpush.bf16.msra.mxu3 %v2185_v50  ;;  %v2464_v11 = vld [vmem:[#allocation2 + $0xe0] sm:$0xf0]  ;;  %v2052_v12 = vld [vmem:[#allocation2 + $0x198] sm:$0xf]  ;;  %v1861_v17 = vor.u32 %v2440_v8, %v1860_v7  ;;  %v2437_v18 = vld [vmem:[#allocation2 + $0x8] sm:$0xf0] }
  0x26   : > { %1288 = vmatpush.bf16.msra.mxu0 %v1885_v56  ;;  %v2488_v13 = vld [vmem:[#allocation2 + $0x1a0] sm:$0xf0]  ;;  %v2148_v14 = vld [vmem:[#allocation2 + $0x258] sm:$0xf]  ;;  %v1944_v19 = vld [vmem:[#allocation2 + $0xc0] sm:$0xf]  ;;  %v1957_v21 = vor.u32 %v2464_v11, %v1956_v9  ;;  %v1849_v34 = vor.u32 %v2437_v18, %v1848_v16 }
  0x27   : > { %1307 = vmatpush.bf16.msra.mxu1 %v1981_v57  ;;  %v2512_v15 = vld [vmem:[#allocation2 + $0x260] sm:$0xf0]  ;;  %v2461_v20 = vld [vmem:[#allocation2 + $0xc8] sm:$0xf0]  ;;  %v2053_v22 = vor.u32 %v2488_v13, %v2052_v12  ;;  %v2040_v23 = vld [vmem:[#allocation2 + $0x180] sm:$0xf] }
  0x28   : > { %1326 = vmatpush.bf16.msra.mxu2 %v2077_v58  ;;  %v2485_v24 = vld [vmem:[#allocation2 + $0x188] sm:$0xf0]  ;;  %v2136_v25 = vld [vmem:[#allocation2 + $0x240] sm:$0xf]  ;;  %v2149_v26 = vor.u32 %v2512_v15, %v2148_v14  ;;  %v2427_v29 = vld [vmem:[%s2826_s14 + $0x14] sm:$0xf0]  ;;  %v1945_v38 = vor.u32 %v2461_v20, %v1944_v19 }
  0x29   : > { %1345 = vmatpush.bf16.msra.mxu3 %v2173_v62  ;;  %v2509_v27 = vld [vmem:[#allocation2 + $0x248] sm:$0xf0]  ;;  %v1800_v28 = vld [vmem:[%s2826_s14] sm:$0xf]  ;;  %v2424_v30 = vld [vmem:[%s2826_s14 + $0x4] sm:$0xf]  ;;  %v2041_v39 = vor.u32 %v2485_v24, %v2040_v23 }
  0x2a   : > { %1289 = vmatpush.bf16.msra.mxu0 %v1873_v4  ;;  %v1802_v31 = vld [vmem:[%s2826_s14 + $0x18] sm:$0xf0]  ;;  %v2457_v32 = vld [vmem:[#allocation2 + $0xac] sm:$0xf]  ;;  %v1934_v33 = vld [vmem:[#allocation2 + $0xb4] sm:$0xf0]  ;;  %v2137_v43 = vor.u32 %v2509_v27, %v2136_v25  ;;  %v2836_v48 = vor.u32 %v2427_v29, %v1800_v28 }
  0x2b   : > { %1308 = vmatpush.bf16.msra.mxu1 %v1969_v5  ;;  %v1808_v35 = vld [vmem:[%s2826_s14 + $0x8] sm:$0xf]  ;;  %v2578_v37 = vld [vmem:[#allocation2 + $0x470] sm:$0xf0]  ;;  %v2428_v40 = vld [vmem:[%s2826_s14 + $0x1c] sm:$0xf0]  ;;  %v1937_v44 = vor.u32 %v2457_v32, %v1934_v33  ;;  %v2838_v53 = vor.u32 %v2424_v30, %v1802_v31 }
  0x2c   : > { %1327 = vmatpush.bf16.msra.mxu2 %v2065_v6  ;;  %v2412_v36 = vld [vmem:[#allocation2 + $0x468] sm:$0xf]  ;;  %v2425_v41 = vld [vmem:[%s2826_s14 + $0xc] sm:$0xf]  ;;  %v1810_v42 = vld [vmem:[%s2826_s14 + $0x20] sm:$0xf0]  ;;  %v2840_v54 = vor.u32 %v2428_v40, %v1808_v35 }
  0x2d   : > { %1346 = vmatpush.bf16.msra.mxu3 %v2161_v10  ;;  %v2316_v45 = vld [vmem:[#allocation2 + $0x3a8] sm:$0xf]  ;;  %v2554_v46 = vld [vmem:[#allocation2 + $0x3b0] sm:$0xf0]  ;;  %v2481_v47 = vld [vmem:[#allocation2 + $0x16c] sm:$0xf]  ;;  %v2413_v49 = vor.u32 %v2578_v37, %v2412_v36  ;;  %v2842_v57 = vor.u32 %v2425_v41, %v1810_v42 }
  0x2e   : > { %1290 = vmatpush.bf16.msra.mxu0 %v1861_v17  ;;  %v2030_v50 = vld [vmem:[#allocation2 + $0x174] sm:$0xf0]  ;;  %v2454_v51 = vld [vmem:[#allocation2 + $0x94] sm:$0xf]  ;;  %v1922_v52 = vld [vmem:[#allocation2 + $0x9c] sm:$0xf0]  ;;  %v2317_v58 = vor.u32 %v2554_v46, %v2316_v45 }
  0x2f   : > { %1309 = vmatpush.bf16.msra.mxu1 %v1957_v21  ;;  %v2400_v55 = vld [vmem:[#allocation2 + $0x450] sm:$0xf]  ;;  %v2575_v56 = vld [vmem:[#allocation2 + $0x458] sm:$0xf0]  ;;  %v2033_v59 = vor.u32 %v2481_v47, %v2030_v50  ;;  %v1925_v60 = vor.u32 %v2454_v51, %v1922_v52  ;;  %v2478_v63 = vld [vmem:[#allocation2 + $0x154] sm:$0xf] }
  0x30   : > { %1328 = vmatpush.bf16.msra.mxu2 %v2053_v22  ;;  %v2304_v61 = vld [vmem:[#allocation2 + $0x390] sm:$0xf]  ;;  %v2551_v62 = vld [vmem:[#allocation2 + $0x398] sm:$0xf0]  ;;  %v2401_v0 = vor.u32 %v2575_v56, %v2400_v55  ;;  %v2018_v1 = vld [vmem:[#allocation2 + $0x15c] sm:$0xf0] }
  0x31   : > { %1347 = vmatpush.bf16.msra.mxu3 %v2149_v26  ;;  %v2451_v2 = vld [vmem:[#allocation2 + $0x7c] sm:$0xf]  ;;  %v1910_v3 = vld [vmem:[#allocation2 + $0x84] sm:$0xf0]  ;;  %v2388_v4 = vld [vmem:[#allocation2 + $0x438] sm:$0xf]  ;;  %v2305_v6 = vor.u32 %v2551_v62, %v2304_v61  ;;  %v2021_v7 = vor.u32 %v2478_v63, %v2018_v1 }
  0x32   : > { %1291 = vmatpush.bf16.msra.mxu0 %v1849_v34  ;;  %v2572_v5 = vld [vmem:[#allocation2 + $0x440] sm:$0xf0]  ;;  %v1913_v8 = vor.u32 %v2451_v2, %v1910_v3  ;;  %v2292_v9 = vld [vmem:[#allocation2 + $0x378] sm:$0xf]  ;;  %v2475_v11 = vld [vmem:[#allocation2 + $0x13c] sm:$0xf] }
  0x33   : > { %1310 = vmatpush.bf16.msra.mxu1 %v1945_v38  ;;  %v2548_v10 = vld [vmem:[#allocation2 + $0x380] sm:$0xf0]  ;;  %v2389_v12 = vor.u32 %v2572_v5, %v2388_v4  ;;  %v2006_v13 = vld [vmem:[#allocation2 + $0x144] sm:$0xf0]  ;;  %v1898_v15 = vld [vmem:[#allocation2 + $0x6c] sm:$0xf0] }
  0x34   : > { %1329 = vmatpush.bf16.msra.mxu2 %v2041_v39  ;;  %v2448_v14 = vld [vmem:[#allocation2 + $0x64] sm:$0xf]  ;;  %v2376_v16 = vld [vmem:[#allocation2 + $0x420] sm:$0xf]  ;;  %v2569_v17 = vld [vmem:[#allocation2 + $0x428] sm:$0xf0]  ;;  %v2293_v18 = vor.u32 %v2548_v10, %v2292_v9  ;;  %v2009_v22 = vor.u32 %v2475_v11, %v2006_v13 }
  0x35   : > { %1348 = vmatpush.bf16.msra.mxu3 %v2137_v43  ;;  %1292 = vmatmul.bf16.vlgmr.msra.gmra.mxu0 %v2836_v48  ;;  %v2280_v19 = vld [vmem:[#allocation2 + $0x360] sm:$0xf]  ;;  %v2545_v20 = vld [vmem:[#allocation2 + $0x368] sm:$0xf0]  ;;  %v2472_v21 = vld [vmem:[#allocation2 + $0x124] sm:$0xf]  ;;  %v1901_v23 = vor.u32 %v2448_v14, %v1898_v15  ;;  %v2377_v27 = vor.u32 %v2569_v17, %v2376_v16 }
  0x36   : > { %1311 = vmatmul.bf16.vlgmr.msra.gmra.mxu1 %v2838_v53  ;;  %1360 = vmatpush.bf16.msrb.mxu0 %v2317_v58  ;;  %v1994_v24 = vld [vmem:[#allocation2 + $0x12c] sm:$0xf0]  ;;  %v2433_v26 = vld [vmem:[%s2826_s14 + $0x44] sm:$0xf0]  ;;  %v2430_v28 = vld [vmem:[%s2826_s14 + $0x34] sm:$0xf]  ;;  %v2281_v35 = vor.u32 %v2545_v20, %v2280_v19 }
  0x37   : > { %1379 = vmatpush.bf16.msrb.mxu1 %v2413_v49  ;;  %1330 = vmatmul.bf16.vlgmr.msra.gmra.mxu2 %v2840_v54  ;;  %v1824_v25 = vld [vmem:[%s2826_s14 + $0x30] sm:$0xf]  ;;  %v1826_v29 = vld [vmem:[%s2826_s14 + $0x48] sm:$0xf0]  ;;  %v1886_v31 = vld [vmem:[#allocation2 + $0x54] sm:$0xf0]  ;;  %v1997_v39 = vor.u32 %v2472_v21, %v1994_v24 }
  0x38   : > { %1398 = vmatpush.bf16.msrb.mxu2 %v1937_v44  ;;  %1349 = vmatmul.bf16.vlgmr.msra.gmra.mxu3 %v2842_v57  ;;  %v2445_v30 = vld [vmem:[#allocation2 + $0x4c] sm:$0xf]  ;;  %v1832_v32 = vld [vmem:[%s2826_s14 + $0x38] sm:$0xf]  ;;  %v2364_v33 = vld [vmem:[#allocation2 + $0x408] sm:$0xf]  ;;  %v2856_v44 = vor.u32 %v2433_v26, %v1824_v25  ;;  %v2858_v50 = vor.u32 %v2430_v28, %v1826_v29 }
  0x39   : > { %1417 = vmatpush.bf16.msrb.mxu3 %v2033_v59  ;;  %v2566_v34 = vld [vmem:[#allocation2 + $0x410] sm:$0xf0]  ;;  %v2434_v36 = vld [vmem:[%s2826_s14 + $0x4c] sm:$0xf0]  ;;  %v2431_v37 = vld [vmem:[%s2826_s14 + $0x3c] sm:$0xf]  ;;  %v1889_v40 = vor.u32 %v2445_v30, %v1886_v31 }
  0x3a   : > { %1361 = vmatpush.bf16.msrb.mxu0 %v2305_v6  ;;  %v1834_v38 = vld [vmem:[%s2826_s14 + $0x50] sm:$0xf0]  ;;  %v2268_v41 = vld [vmem:[#allocation2 + $0x348] sm:$0xf]  ;;  %v2469_v43 = vld [vmem:[#allocation2 + $0x10c] sm:$0xf]  ;;  %v2365_v45 = vor.u32 %v2566_v34, %v2364_v33  ;;  %v2860_v51 = vor.u32 %v2434_v36, %v1832_v32 }
  0x3b   : > { %1380 = vmatpush.bf16.msrb.mxu1 %v2401_v0  ;;  %v2542_v42 = vld [vmem:[#allocation2 + $0x350] sm:$0xf0]  ;;  %v1982_v46 = vld [vmem:[#allocation2 + $0x114] sm:$0xf0]  ;;  %v1874_v49 = vld [vmem:[#allocation2 + $0x3c] sm:$0xf0]  ;;  %v2862_v56 = vor.u32 %v2431_v37, %v1834_v38 }
  0x3c   : > { %1399 = vmatpush.bf16.msrb.mxu2 %v1925_v60  ;;  %v2442_v47 = vld [vmem:[#allocation2 + $0x34] sm:$0xf]  ;;  %v2352_v52 = vld [vmem:[#allocation2 + $0x3f0] sm:$0xf]  ;;  %v2563_v55 = vld [vmem:[#allocation2 + $0x3f8] sm:$0xf0]  ;;  %v2269_v58 = vor.u32 %v2542_v42, %v2268_v41  ;;  %v1985_v59 = vor.u32 %v2469_v43, %v1982_v46 }
  0x3d   : > { %1418 = vmatpush.bf16.msrb.mxu3 %v2021_v7  ;;  %v1877_v60 = vor.u32 %v2442_v47, %v1874_v49  ;;  %v2256_v61 = vld [vmem:[#allocation2 + $0x330] sm:$0xf]  ;;  %v2539_v62 = vld [vmem:[#allocation2 + $0x338] sm:$0xf0]  ;;  %v2466_v63 = vld [vmem:[#allocation2 + $0xf4] sm:$0xf]  ;;  %v2353_v0 = vor.u32 %v2563_v55, %v2352_v52 }
  0x3e   : > { %1362 = vmatpush.bf16.msrb.mxu0 %v2293_v18  ;;  %v1970_v1 = vld [vmem:[#allocation2 + $0xfc] sm:$0xf0]  ;;  %v2439_v2 = vld [vmem:[#allocation2 + $0x1c] sm:$0xf]  ;;  %v1862_v3 = vld [vmem:[#allocation2 + $0x24] sm:$0xf0]  ;;  %v2257_v6 = vor.u32 %v2539_v62, %v2256_v61 }
  0x3f   : > { %1381 = vmatpush.bf16.msrb.mxu1 %v2389_v12  ;;  %v2340_v4 = vld [vmem:[#allocation2 + $0x3d8] sm:$0xf]  ;;  %v2560_v5 = vld [vmem:[#allocation2 + $0x3e0] sm:$0xf0]  ;;  %v1865_v9 = vor.u32 %v2439_v2, %v1862_v3  ;;  %v2463_v11 = vld [vmem:[#allocation2 + $0xdc] sm:$0xf] }
  0x40   : > { %1400 = vmatpush.bf16.msrb.mxu2 %v1913_v8  ;;  %v2244_v7 = vld [vmem:[#allocation2 + $0x318] sm:$0xf]  ;;  %v1973_v8 = vor.u32 %v2466_v63, %v1970_v1  ;;  %v2536_v10 = vld [vmem:[#allocation2 + $0x320] sm:$0xf0]  ;;  %v1958_v12 = vld [vmem:[#allocation2 + $0xe4] sm:$0xf0]  ;;  %v2341_v13 = vor.u32 %v2560_v5, %v2340_v4 }
  0x41   : > { %1419 = vmatpush.bf16.msrb.mxu3 %v2009_v22  ;;  %v2436_v14 = vld [vmem:[#allocation2 + $0x4] sm:$0xf]  ;;  %v1850_v15 = vld [vmem:[#allocation2 + $0xc] sm:$0xf0]  ;;  %v2328_v16 = vld [vmem:[#allocation2 + $0x3c0] sm:$0xf]  ;;  %v2245_v20 = vor.u32 %v2536_v10, %v2244_v7  ;;  %v1961_v24 = vor.u32 %v2463_v11, %v1958_v12 }
  0x42   : > { %1363 = vmatpush.bf16.msrb.mxu0 %v2281_v35  ;;  %v2557_v17 = vld [vmem:[#allocation2 + $0x3c8] sm:$0xf0]  ;;  %v2318_v19 = vld [vmem:[#allocation2 + $0x3b4] sm:$0xf0]  ;;  %v2232_v21 = vld [vmem:[#allocation2 + $0x300] sm:$0xf]  ;;  %v1853_v25 = vor.u32 %v2436_v14, %v1850_v15 }
  0x43   : > { %1382 = vmatpush.bf16.msrb.mxu1 %v2377_v27  ;;  %v2553_v18 = vld [vmem:[#allocation2 + $0x3ac] sm:$0xf]  ;;  %v2460_v27 = vld [vmem:[#allocation2 + $0xc4] sm:$0xf]  ;;  %v1946_v28 = vld [vmem:[#allocation2 + $0xcc] sm:$0xf0]  ;;  %v2329_v29 = vor.u32 %v2557_v17, %v2328_v16 }
  0x44   : > { %1401 = vmatpush.bf16.msrb.mxu2 %v1901_v23  ;;  %v2529_v22 = vld [vmem:[#allocation2 + $0x2ec] sm:$0xf]  ;;  %v2222_v23 = vld [vmem:[#allocation2 + $0x2f4] sm:$0xf0]  ;;  %v1816_v30 = vld [vmem:[%s2826_s14 + $0x10] sm:$0xf]  ;;  %v2321_v31 = vor.u32 %v2553_v18, %v2318_v19  ;;  %v1949_v43 = vor.u32 %v2460_v27, %v1946_v28 }
  0x45   : > { %1420 = vmatpush.bf16.msrb.mxu3 %v1997_v39  ;;  %1297 = vmatmul.bf16.gmra.mxu0 %v2856_v44  ;;  %v2533_v26 = vld [vmem:[#allocation2 + $0x308] sm:$0xf0]  ;;  %v2126_v33 = vld [vmem:[#allocation2 + $0x234] sm:$0xf0]  ;;  %v2225_v35 = vor.u32 %v2529_v22, %v2222_v23  ;;  %v2550_v37 = vld [vmem:[#allocation2 + $0x394] sm:$0xf] }
  0x46   : > { %1316 = vmatmul.bf16.gmra.mxu1 %v2858_v50  ;;  %1364 = vmatpush.bf16.msrb.mxu0 %v2269_v58  ;;  %v2505_v32 = vld [vmem:[#allocation2 + $0x22c] sm:$0xf]  ;;  %v2414_v36 = vld [vmem:[#allocation2 + $0x474] sm:$0xf0]  ;;  %v2306_v38 = vld [vmem:[#allocation2 + $0x39c] sm:$0xf0]  ;;  %v2233_v39 = vor.u32 %v2533_v26, %v2232_v21 }
  0x47   : > { %1383 = vmatpush.bf16.msrb.mxu1 %v2365_v45  ;;  %1335 = vmatmul.bf16.gmra.mxu2 %v2860_v51  ;;  %v2577_v34 = vld [vmem:[#allocation2 + $0x46c] sm:$0xf]  ;;  %v2426_v41 = vld [vmem:[%s2826_s14 + $0x14] sm:$0xf]  ;;  %v2129_v45 = vor.u32 %v2505_v32, %v2126_v33  ;;  %v2114_v47 = vld [vmem:[#allocation2 + $0x21c] sm:$0xf0]  ;;  %v2309_v52 = vor.u32 %v2550_v37, %v2306_v38 }
  0x48   : > { %1402 = vmatpush.bf16.msrb.mxu2 %v1889_v40  ;;  %1354 = vmatmul.bf16.gmra.mxu3 %v2862_v56  ;;  %v2429_v40 = vld [vmem:[%s2826_s14 + $0x24] sm:$0xf0]  ;;  %v1818_v42 = vld [vmem:[%s2826_s14 + $0x28] sm:$0xf0]  ;;  %v2502_v46 = vld [vmem:[#allocation2 + $0x214] sm:$0xf]  ;;  %v2417_v49 = vor.u32 %v2577_v34, %v2414_v36 }
  0x49   : > { %1421 = vmatpush.bf16.msrb.mxu3 %v1985_v59  ;;  %v2526_v55 = vld [vmem:[#allocation2 + $0x2d4] sm:$0xf]  ;;  %v2210_v58 = vld [vmem:[#allocation2 + $0x2dc] sm:$0xf0]  ;;  %v2874_v61 = vor.u32 %v2426_v41, %v1818_v42  ;;  %v2547_v63 = vld [vmem:[#allocation2 + $0x37c] sm:$0xf]  ;;  %v2117_v1 = vor.u32 %v2502_v46, %v2114_v47 }
  0x4a   : > { %1365 = vmatpush.bf16.msrb.mxu0 %v2257_v6  ;;  %v2574_v59 = vld [vmem:[#allocation2 + $0x454] sm:$0xf]  ;;  %v2402_v62 = vld [vmem:[#allocation2 + $0x45c] sm:$0xf0]  ;;  %v2213_v2 = vor.u32 %v2526_v55, %v2210_v58  ;;  %v2499_v3 = vld [vmem:[#allocation2 + $0x1fc] sm:$0xf] }
  0x4b   : > { %1384 = vmatpush.bf16.msrb.mxu1 %v2353_v0  ;;  %v2294_v0 = vld [vmem:[#allocation2 + $0x384] sm:$0xf0]  ;;  %v2405_v5 = vor.u32 %v2574_v59, %v2402_v62  ;;  %v2523_v7 = vld [vmem:[#allocation2 + $0x2bc] sm:$0xf]  ;;  %v2544_v11 = vld [vmem:[#allocation2 + $0x364] sm:$0xf] }
  0x4c   : > { %1403 = vmatpush.bf16.msrb.mxu2 %v1877_v60  ;;  %v2872_v60 = vor.u32 %v2429_v40, %v1816_v30  ;;  %v2102_v4 = vld [vmem:[#allocation2 + $0x204] sm:$0xf0]  ;;  %v2297_v6 = vor.u32 %v2547_v63, %v2294_v0  ;;  %v2282_v12 = vld [vmem:[#allocation2 + $0x36c] sm:$0xf0]  ;;  %v2496_v15 = vld [vmem:[#allocation2 + $0x1e4] sm:$0xf] }
  0x4d   : > { %1422 = vmatpush.bf16.msrb.mxu3 %v1973_v8  ;;  %v2198_v8 = vld [vmem:[#allocation2 + $0x2c4] sm:$0xf0]  ;;  %v2090_v16 = vld [vmem:[#allocation2 + $0x1ec] sm:$0xf0]  ;;  %v2285_v18 = vor.u32 %v2544_v11, %v2282_v12  ;;  %v2520_v19 = vld [vmem:[#allocation2 + $0x2a4] sm:$0xf] }
  0x4e   : > { %1366 = vmatpush.bf16.msrb.mxu0 %v2245_v20  ;;  %v2390_v10 = vld [vmem:[#allocation2 + $0x444] sm:$0xf0]  ;;  %v2201_v14 = vor.u32 %v2523_v7, %v2198_v8  ;;  %v2186_v20 = vld [vmem:[#allocation2 + $0x2ac] sm:$0xf0]  ;;  %v2568_v21 = vld [vmem:[#allocation2 + $0x424] sm:$0xf] }
  0x4f   : > { %1385 = vmatpush.bf16.msrb.mxu1 %v2341_v13  ;;  %v2105_v13 = vor.u32 %v2499_v3, %v2102_v4  ;;  %v2378_v22 = vld [vmem:[#allocation2 + $0x42c] sm:$0xf0]  ;;  %v2541_v23 = vld [vmem:[#allocation2 + $0x34c] sm:$0xf]  ;;  %v2189_v26 = vor.u32 %v2520_v19, %v2186_v20  ;;  %v2078_v28 = vld [vmem:[#allocation2 + $0x1d4] sm:$0xf0] }
  0x50   : > { %1404 = vmatpush.bf16.msrb.mxu2 %v1865_v9  ;;  %v2571_v9 = vld [vmem:[#allocation2 + $0x43c] sm:$0xf]  ;;  %v2493_v27 = vld [vmem:[#allocation2 + $0x1cc] sm:$0xf]  ;;  %v1840_v30 = vld [vmem:[%s2826_s14 + $0x40] sm:$0xf] }
  0x51   : > { %1423 = vmatpush.bf16.msrb.mxu3 %v1961_v24  ;;  %v2393_v17 = vor.u32 %v2571_v9, %v2390_v10  ;;  %v2270_v24 = vld [vmem:[#allocation2 + $0x354] sm:$0xf0]  ;;  %v2517_v32 = vld [vmem:[#allocation2 + $0x28c] sm:$0xf]  ;;  %v2538_v36 = vld [vmem:[#allocation2 + $0x334] sm:$0xf]  ;;  %v2081_v41 = vor.u32 %v2493_v27, %v2078_v28 }
  0x52   : > { %1367 = vmatpush.bf16.msrb.mxu0 %v2233_v39  ;;  %v2174_v33 = vld [vmem:[#allocation2 + $0x294] sm:$0xf0]  ;;  %v2565_v34 = vld [vmem:[#allocation2 + $0x40c] sm:$0xf]  ;;  %v2258_v37 = vld [vmem:[#allocation2 + $0x33c] sm:$0xf0] }
  0x53   : > { %1386 = vmatpush.bf16.msrb.mxu1 %v2329_v29  ;;  %v2381_v29 = vor.u32 %v2568_v21, %v2378_v22  ;;  %v2435_v38 = vld [vmem:[%s2826_s14 + $0x54] sm:$0xf0]  ;;  %v2432_v39 = vld [vmem:[%s2826_s14 + $0x44] sm:$0xf]  ;;  %v1842_v40 = vld [vmem:[%s2826_s14 + $0x58] sm:$0xf0]  ;;  %v2177_v42 = vor.u32 %v2517_v32, %v2174_v33  ;;  %v2261_v47 = vor.u32 %v2538_v36, %v2258_v37 }
  0x54   : > { %1405 = vmatpush.bf16.msrb.mxu2 %v1853_v25  ;;  %v2093_v25 = vor.u32 %v2496_v15, %v2090_v16  ;;  %v2562_v55 = vld [vmem:[#allocation2 + $0x3f4] sm:$0xf]  ;;  %v2884_v58 = vor.u32 %v2435_v38, %v1840_v30  ;;  %v2886_v59 = vor.u32 %v2432_v39, %v1842_v40  ;;  %v2354_v62 = vld [vmem:[#allocation2 + $0x3fc] sm:$0xf0]  ;;  %v2535_v63 = vld [vmem:[#allocation2 + $0x31c] sm:$0xf] }
  0x55   : > { %1424 = vmatpush.bf16.msrb.mxu3 %v1949_v43  ;;  %1368 = vmatmul.bf16.vlgmr.msrb.gmra.mxu0 %v2872_v60  ;;  %v2490_v43 = vld [vmem:[#allocation2 + $0x1b4] sm:$0xf]  ;;  %v2246_v0 = vld [vmem:[#allocation2 + $0x324] sm:$0xf0]  ;;  %v2487_v3 = vld [vmem:[#allocation2 + $0x19c] sm:$0xf] }
  0x56   : > { %1436 = vmatpush.bf16.msra.mxu0 %v2129_v45  ;;  %1387 = vmatmul.bf16.vlgmr.msrb.gmra.mxu1 %v2874_v61  ;;  %v2066_v45 = vld [vmem:[#allocation2 + $0x1bc] sm:$0xf0]  ;;  %v2054_v4 = vld [vmem:[#allocation2 + $0x1a4] sm:$0xf0]  ;;  %v2511_v7 = vld [vmem:[#allocation2 + $0x25c] sm:$0xf] }
  0x57   : > { %1455 = vmatpush.bf16.msra.mxu1 %v2225_v35  ;;  %1406 = vmatmul.bf16.vlgmr.msrb.gmra.mxu2 %v2836_v48  ;;  %v2366_v35 = vld [vmem:[#allocation2 + $0x414] sm:$0xf0]  ;;  %v2150_v8 = vld [vmem:[#allocation2 + $0x264] sm:$0xf0]  ;;  %v2559_v9 = vld [vmem:[#allocation2 + $0x3dc] sm:$0xf]  ;;  %v2057_v15 = vor.u32 %v2487_v3, %v2054_v4 }
  0x58   : > { %1474 = vmatpush.bf16.msra.mxu2 %v2321_v31  ;;  %1425 = vmatmul.bf16.vlgmr.msrb.gmra.mxu3 %v2838_v53  ;;  %v2273_v31 = vor.u32 %v2541_v23, %v2270_v24  ;;  %v2369_v46 = vor.u32 %v2565_v34, %v2366_v35  ;;  %v2342_v10 = vld [vmem:[#allocation2 + $0x3e4] sm:$0xf0]  ;;  %v2532_v11 = vld [vmem:[#allocation2 + $0x304] sm:$0xf]  ;;  %v2234_v12 = vld [vmem:[#allocation2 + $0x30c] sm:$0xf0]  ;;  %v2153_v16 = vor.u32 %v2511_v7, %v2150_v8 }
  0x59   : > { %1493 = vmatpush.bf16.msra.mxu3 %v2417_v49  ;;  %v2514_v49 = vld [vmem:[#allocation2 + $0x274] sm:$0xf]  ;;  %v2508_v19 = vld [vmem:[#allocation2 + $0x244] sm:$0xf]  ;;  %v2345_v20 = vor.u32 %v2559_v9, %v2342_v10  ;;  %v2237_v21 = vor.u32 %v2532_v11, %v2234_v12  ;;  %v2138_v22 = vld [vmem:[#allocation2 + $0x24c] sm:$0xf0] }
  0x5a   : > { %1437 = vmatpush.bf16.msra.mxu0 %v2117_v1  ;;  %v2069_v1 = vor.u32 %v2490_v43, %v2066_v45  ;;  %v2556_v23 = vld [vmem:[#allocation2 + $0x3c4] sm:$0xf]  ;;  %v2330_v24 = vld [vmem:[#allocation2 + $0x3cc] sm:$0xf0]  ;;  %v2459_v27 = vld [vmem:[#allocation2 + $0xb8] sm:$0xf0]  ;;  %v2141_v33 = vor.u32 %v2508_v19, %v2138_v22 }
  0x5b   : > { %1456 = vmatpush.bf16.msra.mxu1 %v2213_v2  ;;  %v2036_v28 = vld [vmem:[#allocation2 + $0x170] sm:$0xf]  ;;  %v2120_v34 = vld [vmem:[#allocation2 + $0x218] sm:$0xf]  ;;  %v2504_v35 = vld [vmem:[#allocation2 + $0x220] sm:$0xf0]  ;;  %v2333_v36 = vor.u32 %v2556_v23, %v2330_v24 }
  0x5c   : > { %1475 = vmatpush.bf16.msra.mxu2 %v2309_v52  ;;  %v2162_v52 = vld [vmem:[#allocation2 + $0x27c] sm:$0xf0]  ;;  %v2228_v30 = vld [vmem:[#allocation2 + $0x2f0] sm:$0xf]  ;;  %v1928_v40 = vld [vmem:[#allocation2 + $0x98] sm:$0xf] }
  0x5d   : > { %1494 = vmatpush.bf16.msra.mxu3 %v2405_v5  ;;  %v2165_v2 = vor.u32 %v2514_v49, %v2162_v52  ;;  %v2357_v5 = vor.u32 %v2562_v55, %v2354_v62  ;;  %v2024_v43 = vld [vmem:[#allocation2 + $0x158] sm:$0xf]  ;;  %v2480_v45 = vld [vmem:[#allocation2 + $0x160] sm:$0xf0]  ;;  %v2108_v52 = vld [vmem:[#allocation2 + $0x200] sm:$0xf] }
  0x5e   : > { %1438 = vmatpush.bf16.msra.mxu0 %v2105_v13  ;;  %v2132_v13 = vld [vmem:[#allocation2 + $0x230] sm:$0xf]  ;;  %v2528_v49 = vld [vmem:[#allocation2 + $0x2e0] sm:$0xf0]  ;;  %v2501_v55 = vld [vmem:[#allocation2 + $0x208] sm:$0xf0] }
  0x5f   : > { %1457 = vmatpush.bf16.msra.mxu1 %v2201_v14  ;;  %v2507_v14 = vld [vmem:[#allocation2 + $0x238] sm:$0xf0]  ;;  %v1916_v62 = vld [vmem:[#allocation2 + $0x80] sm:$0xf]  ;;  %v2477_v3 = vld [vmem:[#allocation2 + $0x148] sm:$0xf0]  ;;  %v2109_v4 = vor.u32 %v2501_v55, %v2108_v52 }
  0x60   : > { %1476 = vmatpush.bf16.msra.mxu2 %v2297_v6  ;;  %v2249_v6 = vor.u32 %v2535_v63, %v2246_v0  ;;  %v2453_v63 = vld [vmem:[#allocation2 + $0x88] sm:$0xf0]  ;;  %v2025_v0 = vor.u32 %v2480_v45, %v2024_v43  ;;  %v2096_v8 = vld [vmem:[#allocation2 + $0x1e8] sm:$0xf]  ;;  %v2498_v9 = vld [vmem:[#allocation2 + $0x1f0] sm:$0xf0] }
  0x61   : > { %1495 = vmatpush.bf16.msra.mxu3 %v2393_v17  ;;  %v2484_v17 = vld [vmem:[#allocation2 + $0x184] sm:$0xf]  ;;  %v2525_v7 = vld [vmem:[#allocation2 + $0x2c8] sm:$0xf0]  ;;  %v1904_v10 = vld [vmem:[#allocation2 + $0x68] sm:$0xf] }
  0x62   : > { %1439 = vmatpush.bf16.msra.mxu0 %v2093_v25  ;;  %v2133_v25 = vor.u32 %v2507_v14, %v2132_v13  ;;  %v2450_v11 = vld [vmem:[#allocation2 + $0x70] sm:$0xf0]  ;;  %v2000_v14 = vld [vmem:[#allocation2 + $0x128] sm:$0xf]  ;;  %v1892_v22 = vld [vmem:[#allocation2 + $0x50] sm:$0xf] }
  0x63   : > { %1458 = vmatpush.bf16.msra.mxu1 %v2189_v26  ;;  %v1940_v26 = vld [vmem:[#allocation2 + $0xb0] sm:$0xf]  ;;  %v2522_v19 = vld [vmem:[#allocation2 + $0x2b0] sm:$0xf0]  ;;  %v2447_v23 = vld [vmem:[#allocation2 + $0x58] sm:$0xf0] }
  0x64   : > { %1477 = vmatpush.bf16.msra.mxu2 %v2285_v18  ;;  %v2042_v18 = vld [vmem:[#allocation2 + $0x18c] sm:$0xf0]  ;;  %v1941_v37 = vor.u32 %v2459_v27, %v1940_v26  ;;  %v2471_v27 = vld [vmem:[#allocation2 + $0x118] sm:$0xf0]  ;;  %v2516_v43 = vld [vmem:[#allocation2 + $0x280] sm:$0xf0] }
  0x65   : > { %1496 = vmatpush.bf16.msra.mxu3 %v2381_v29  ;;  %1373 = vmatmul.bf16.gmra.mxu0 %v2884_v58  ;;  %v2483_v29 = vld [vmem:[#allocation2 + $0x178] sm:$0xf0]  ;;  %v2045_v32 = vor.u32 %v2484_v17, %v2042_v18  ;;  %v1905_v17 = vor.u32 %v2450_v11, %v1904_v10  ;;  %v2192_v18 = vld [vmem:[#allocation2 + $0x2a8] sm:$0xf]  ;;  %v1988_v26 = vld [vmem:[#allocation2 + $0x110] sm:$0xf] }
  0x66   : > { %1440 = vmatpush.bf16.msra.mxu0 %v2081_v41  ;;  %1392 = vmatmul.bf16.gmra.mxu1 %v2886_v59  ;;  %v2037_v38 = vor.u32 %v2483_v29, %v2036_v28  ;;  %v2456_v41 = vld [vmem:[#allocation2 + $0xa0] sm:$0xf0]  ;;  %v1893_v29 = vor.u32 %v2447_v23, %v1892_v22  ;;  %v2060_v45 = vld [vmem:[#allocation2 + $0x1a0] sm:$0xf]  ;;  %s2597_s16 = smul.u32 12, %s2989_s10 }
  0x67   : > { %1459 = vmatpush.bf16.msra.mxu1 %v2177_v42  ;;  %1411 = vmatmul.bf16.gmra.mxu2 %v2856_v44  ;;  %v2121_v42 = vor.u32 %v2504_v35, %v2120_v34  ;;  %v1880_v34 = vld [vmem:[#allocation2 + $0x38] sm:$0xf]  ;;  %v2444_v35 = vld [vmem:[#allocation2 + $0x40] sm:$0xf0] }
  0x68   : > { %1478 = vmatpush.bf16.msra.mxu2 %v2273_v31  ;;  %1430 = vmatmul.bf16.gmra.mxu3 %v2858_v50  ;;  %v2531_v31 = vld [vmem:[#allocation2 + $0x2f8] sm:$0xf0]  ;;  %v2552_v22 = vld [vmem:[#allocation2 + $0x3a0] sm:$0xf0]  ;;  %s2949_s19 = scalar_lea.vmem %s2985_s4, %s2597_s16 }
  0x69   : > { %1497 = vmatpush.bf16.msra.mxu3 %v2369_v46  ;;  %v2229_v39 = vor.u32 %v2531_v31, %v2228_v30  ;;  %v1929_v46 = vor.u32 %v2456_v41, %v1928_v40  ;;  %v2180_v30 = vld [vmem:[#allocation2 + $0x290] sm:$0xf]  ;;  %v2519_v31 = vld [vmem:[#allocation2 + $0x298] sm:$0xf0]  ;;  %v1881_v41 = vor.u32 %v2444_v35, %v1880_v34 }
  0x6a   : > { %1441 = vmatpush.bf16.msra.mxu0 %v2069_v1 }
  0x6b   : > { %1460 = vmatpush.bf16.msra.mxu1 %v2165_v2  ;;  %v2012_v2 = vld [vmem:[#allocation2 + $0x140] sm:$0xf] }
  0x6c   : > { %1479 = vmatpush.bf16.msra.mxu2 %v2261_v47  ;;  %v2216_v47 = vld [vmem:[#allocation2 + $0x2d8] sm:$0xf]  ;;  %v2013_v12 = vor.u32 %v2477_v3, %v2012_v2  ;;  %v2156_v2 = vld [vmem:[#allocation2 + $0x260] sm:$0xf]  ;;  %v2513_v3 = vld [vmem:[#allocation2 + $0x268] sm:$0xf0] }
  0x6d   : > { %1498 = vmatpush.bf16.msra.mxu3 %v2357_v5  ;;  %v2217_v1 = vor.u32 %v2528_v49, %v2216_v47  ;;  %v1917_v5 = vor.u32 %v2453_v63, %v1916_v62  ;;  %v1868_v47 = vld [vmem:[#allocation2 + $0x20] sm:$0xf]  ;;  %v2441_v49 = vld [vmem:[#allocation2 + $0x28] sm:$0xf0]  ;;  %v2157_v11 = vor.u32 %v2513_v3, %v2156_v2 }
  0x6e   : > { %1442 = vmatpush.bf16.msra.mxu0 %v2057_v15  ;;  %v2474_v15 = vld [vmem:[#allocation2 + $0x130] sm:$0xf0]  ;;  %v1964_v62 = vld [vmem:[#allocation2 + $0xe0] sm:$0xf]  ;;  %v2465_v63 = vld [vmem:[#allocation2 + $0xe8] sm:$0xf0] }
  0x6f   : > { %1461 = vmatpush.bf16.msra.mxu1 %v2153_v16  ;;  %v2097_v16 = vor.u32 %v2498_v9, %v2096_v8  ;;  %v2001_v24 = vor.u32 %v2474_v15, %v2000_v14  ;;  %v2324_v8 = vld [vmem:[#allocation2 + $0x3b0] sm:$0xf]  ;;  %v2555_v9 = vld [vmem:[#allocation2 + $0x3b8] sm:$0xf0]  ;;  %v1965_v10 = vor.u32 %v2465_v63, %v1964_v62  ;;  %v2462_v15 = vld [vmem:[#allocation2 + $0xd0] sm:$0xf0] }
  0x70   : > { %1480 = vmatpush.bf16.msra.mxu2 %v2249_v6  ;;  %v2204_v6 = vld [vmem:[#allocation2 + $0x2c0] sm:$0xf]  ;;  %v2537_v63 = vld [vmem:[#allocation2 + $0x328] sm:$0xf0] }
  0x71   : > { %1499 = vmatpush.bf16.msra.mxu3 %v2345_v20  ;;  %v2205_v13 = vor.u32 %v2525_v7, %v2204_v6  ;;  %v2084_v20 = vld [vmem:[#allocation2 + $0x1d0] sm:$0xf]  ;;  %v1856_v6 = vld [vmem:[#allocation2 + $0x8] sm:$0xf]  ;;  %v2438_v7 = vld [vmem:[#allocation2 + $0x10] sm:$0xf0] }
  0x72   : > { %1443 = vmatpush.bf16.msra.mxu0 %v2045_v32  ;;  %v2072_v32 = vld [vmem:[#allocation2 + $0x1b8] sm:$0xf]  ;;  %v1857_v14 = vor.u32 %v2438_v7, %v1856_v6  ;;  %v2252_v62 = vld [vmem:[#allocation2 + $0x320] sm:$0xf]  ;;  %v2336_v6 = vld [vmem:[#allocation2 + $0x3c8] sm:$0xf] }
  0x73   : > { %1462 = vmatpush.bf16.msra.mxu1 %v2141_v33  ;;  %v2492_v33 = vld [vmem:[#allocation2 + $0x1c0] sm:$0xf0]  ;;  %v2253_v2 = vor.u32 %v2537_v63, %v2252_v62  ;;  %v2558_v7 = vld [vmem:[#allocation2 + $0x3d0] sm:$0xf0] }
  0x74   : > { %1481 = vmatpush.bf16.msra.mxu2 %v2237_v21  ;;  %v2495_v21 = vld [vmem:[#allocation2 + $0x1d8] sm:$0xf0]  ;;  %v2073_v40 = vor.u32 %v2492_v33, %v2072_v32  ;;  %v2396_v32 = vld [vmem:[#allocation2 + $0x440] sm:$0xf]  ;;  %v2573_v33 = vld [vmem:[#allocation2 + $0x448] sm:$0xf0] }
  0x75   : > { %1500 = vmatpush.bf16.msra.mxu3 %v2333_v36  ;;  %1444 = vmatmul.bf16.vlgmr.msra.gmra.mxu0 %v2840_v54  ;;  %v2085_v28 = vor.u32 %v2495_v21, %v2084_v20  ;;  %v1989_v36 = vor.u32 %v2471_v27, %v1988_v26  ;;  %v2579_v20 = vld [vmem:[#allocation2 + $0x478] sm:$0xf0]  ;;  %v2312_v21 = vld [vmem:[#allocation2 + $0x398] sm:$0xf]  ;;  %v2397_v35 = vor.u32 %v2573_v33, %v2396_v32 }
  0x76   : > { %1512 = vmatpush.bf16.msrb.mxu0 %v1941_v37  ;;  %1463 = vmatmul.bf16.vlgmr.msra.gmra.mxu1 %v2842_v57  ;;  %v2181_v37 = vor.u32 %v2519_v31, %v2180_v30  ;;  %v2313_v26 = vor.u32 %v2552_v22, %v2312_v21  ;;  %v2408_v27 = vld [vmem:[#allocation2 + $0x458] sm:$0xf]  ;;  %v2300_v30 = vld [vmem:[#allocation2 + $0x380] sm:$0xf]  ;;  %v2549_v31 = vld [vmem:[#allocation2 + $0x388] sm:$0xf0] }
  0x77   : > { %1531 = vmatpush.bf16.msrb.mxu1 %v2037_v38  ;;  %1482 = vmatmul.bf16.vlgmr.msra.gmra.mxu2 %v2872_v60  ;;  %v1976_v38 = vld [vmem:[#allocation2 + $0xf8] sm:$0xf]  ;;  %v2301_v34 = vor.u32 %v2549_v31, %v2300_v30 }
  0x78   : > { %1550 = vmatpush.bf16.msrb.mxu2 %v2133_v25  ;;  %1501 = vmatmul.bf16.vlgmr.msra.gmra.mxu3 %v2874_v61  ;;  %v2193_v25 = vor.u32 %v2522_v19, %v2192_v18  ;;  %v2325_v18 = vor.u32 %v2555_v9, %v2324_v8  ;;  %v2420_v19 = vld [vmem:[#allocation2 + $0x470] sm:$0xf]  ;;  %v2337_v9 = vor.u32 %v2558_v7, %v2336_v6 }
  0x79   : > { %1569 = vmatpush.bf16.msrb.mxu3 %v2229_v39  ;;  %v2468_v39 = vld [vmem:[#allocation2 + $0x100] sm:$0xf0] }
  0x7a   : > { %1513 = vmatpush.bf16.msrb.mxu0 %v1929_v46  ;;  %v2489_v46 = vld [vmem:[#allocation2 + $0x1a8] sm:$0xf0]  ;;  %v1977_v52 = vor.u32 %v2468_v39, %v1976_v38  ;;  %v2384_v38 = vld [vmem:[#allocation2 + $0x428] sm:$0xf]  ;;  %v2570_v39 = vld [vmem:[#allocation2 + $0x430] sm:$0xf0] }
  0x7b   : > { %1532 = vmatpush.bf16.msrb.mxu1 %v2025_v0  ;;  %v2061_v0 = vor.u32 %v2489_v46, %v2060_v45  ;;  %v2372_v45 = vld [vmem:[#allocation2 + $0x410] sm:$0xf]  ;;  %v2567_v46 = vld [vmem:[#allocation2 + $0x418] sm:$0xf0] }
  0x7c   : > { %1551 = vmatpush.bf16.msrb.mxu2 %v2121_v42  ;;  %v2168_v42 = vld [vmem:[#allocation2 + $0x278] sm:$0xf] }
  0x7d   : > { %1570 = vmatpush.bf16.msrb.mxu3 %v2217_v1  ;;  %v2169_v55 = vor.u32 %v2516_v43, %v2168_v42  ;;  %v1869_v1 = vor.u32 %v2441_v49, %v1868_v47  ;;  %v2276_v42 = vld [vmem:[#allocation2 + $0x350] sm:$0xf]  ;;  %v2543_v43 = vld [vmem:[#allocation2 + $0x358] sm:$0xf0]  ;;  %v2264_v47 = vld [vmem:[#allocation2 + $0x338] sm:$0xf] }
  0x7e   : > { %1514 = vmatpush.bf16.msrb.mxu0 %v1917_v5  ;;  %v2486_v5 = vld [vmem:[#allocation2 + $0x190] sm:$0xf0]  ;;  %v2360_v49 = vld [vmem:[#allocation2 + $0x3f8] sm:$0xf] }
  0x7f   : > { %1533 = vmatpush.bf16.msrb.mxu1 %v2013_v12  ;;  %v1952_v12 = vld [vmem:[#allocation2 + $0xc8] sm:$0xf] }
  0x80   : > { %1552 = vmatpush.bf16.msrb.mxu2 %v2109_v4  ;;  %v2048_v4 = vld [vmem:[#allocation2 + $0x188] sm:$0xf]  ;;  %v1953_v23 = vor.u32 %v2462_v15, %v1952_v12 }
  0x81   : > { %1571 = vmatpush.bf16.msrb.mxu3 %v2205_v13  ;;  %v2049_v13 = vor.u32 %v2486_v5, %v2048_v4  ;;  %v2240_v4 = vld [vmem:[#allocation2 + $0x308] sm:$0xf]  ;;  %v2534_v5 = vld [vmem:[#allocation2 + $0x310] sm:$0xf0] }
  0x82   : > { %1515 = vmatpush.bf16.msrb.mxu0 %v1905_v17  ;;  %v2510_v17 = vld [vmem:[#allocation2 + $0x250] sm:$0xf0]  ;;  %v2241_v8 = vor.u32 %v2534_v5, %v2240_v4 }
  0x83   : > { %1534 = vmatpush.bf16.msrb.mxu1 %v2001_v24 }
  0x84   : > { %1553 = vmatpush.bf16.msrb.mxu2 %v2097_v16  ;;  %v2144_v16 = vld [vmem:[#allocation2 + $0x248] sm:$0xf] }
  0x85   : > { %1572 = vmatpush.bf16.msrb.mxu3 %v2193_v25  ;;  %1449 = vmatmul.bf16.gmra.mxu0 %v2860_v51  ;;  %v2145_v24 = vor.u32 %v2510_v17, %v2144_v16  ;;  %v2421_v25 = vor.u32 %v2579_v20, %v2420_v19 }
  0x86   : > { %1516 = vmatpush.bf16.msrb.mxu0 %v1893_v29  ;;  %1468 = vmatmul.bf16.gmra.mxu1 %v2862_v56 }
  0x87   : > { %1535 = vmatpush.bf16.msrb.mxu1 %v1989_v36  ;;  %1487 = vmatmul.bf16.gmra.mxu2 %v2884_v58  ;;  %v2288_v36 = vld [vmem:[#allocation2 + $0x368] sm:$0xf] }
  0x88   : > { %1554 = vmatpush.bf16.msrb.mxu2 %v2085_v28  ;;  %1506 = vmatmul.bf16.gmra.mxu3 %v2886_v59  ;;  %v2576_v28 = vld [vmem:[#allocation2 + $0x460] sm:$0xf0] }
  0x89   : > { %1573 = vmatpush.bf16.msrb.mxu3 %v2181_v37  ;;  %v2409_v29 = vor.u32 %v2576_v28, %v2408_v27  ;;  %v2546_v37 = vld [vmem:[#allocation2 + $0x370] sm:$0xf0] }
  0x8a   : > { %1517 = vmatpush.bf16.msrb.mxu0 %v1881_v41  ;;  %v2385_v41 = vor.u32 %v2570_v39, %v2384_v38 }
  0x8b   : > { %1536 = vmatpush.bf16.msrb.mxu1 %v1977_v52 }
  0x8c   : > { %1555 = vmatpush.bf16.msrb.mxu2 %v2073_v40  ;;  %v2289_v40 = vor.u32 %v2546_v37, %v2288_v36 }
  0x8d   : > { %1574 = vmatpush.bf16.msrb.mxu3 %v2169_v55 }
  0x8e   : > { %1518 = vmatpush.bf16.msrb.mxu0 %v1869_v1  ;;  %v2561_v1 = vld [vmem:[#allocation2 + $0x3e8] sm:$0xf0] }
  0x8f   : > { %1537 = vmatpush.bf16.msrb.mxu1 %v1965_v10 }
  0x90   : > { %1556 = vmatpush.bf16.msrb.mxu2 %v2061_v0  ;;  %v2348_v0 = vld [vmem:[#allocation2 + $0x3e0] sm:$0xf] }
  0x91   : > { %1575 = vmatpush.bf16.msrb.mxu3 %v2157_v11  ;;  %v2349_v3 = vor.u32 %v2561_v1, %v2348_v0 }
  0x92   : > { %1519 = vmatpush.bf16.msrb.mxu0 %v1857_v14 }
  0x93   : > { %1538 = vmatpush.bf16.msrb.mxu1 %v1953_v23 }
  0x94   : > { %1557 = vmatpush.bf16.msrb.mxu2 %v2049_v13 }
  0x95   : > { %1576 = vmatpush.bf16.msrb.mxu3 %v2145_v24  ;;  %1520 = vmatmul.bf16.vlgmr.msrb.gmra.mxu0 %v2836_v48  ;;  %v2277_v48 = vor.u32 %v2543_v43, %v2276_v42  ;;  %v2924_v43 = vld [vmem:[#allocation4] sm:$0x7] }
  0x96   : > { %1588 = vmatpush.bf16.msra.mxu0 %v2325_v18  ;;  %1539 = vmatmul.bf16.vlgmr.msrb.gmra.mxu1 %v2838_v53  ;;  %v2373_v53 = vor.u32 %v2567_v46, %v2372_v45 }
  0x97   : > { %1607 = vmatpush.bf16.msra.mxu1 %v2421_v25  ;;  %1558 = vmatmul.bf16.vlgmr.msrb.gmra.mxu2 %v2840_v54  ;;  %v2540_v54 = vld [vmem:[#allocation2 + $0x340] sm:$0xf0] }
  0x98   : > { %2580 = vmatpush.bf16.msra.mxu2 %v2325_v18  ;;  %1577 = vmatmul.bf16.vlgmr.msrb.gmra.mxu3 %v2842_v57  ;;  %v2564_v57 = vld [vmem:[#allocation2 + $0x400] sm:$0xf0]  ;;  %v2265_v52 = vor.u32 %v2540_v54, %v2264_v47 }
  0x99   : > { %2588 = vmatpush.bf16.msra.mxu3 %v2421_v25  ;;  %v2361_v55 = vor.u32 %v2564_v57, %v2360_v49 }
  0x9a   : > { %1589 = vmatpush.bf16.msra.mxu0 %v2313_v26 }
  0x9b   : > { %1608 = vmatpush.bf16.msra.mxu1 %v2409_v29 }
  0x9c   : > { %2581 = vmatpush.bf16.msra.mxu2 %v2313_v26 }
  0x9d   : > { %2589 = vmatpush.bf16.msra.mxu3 %v2409_v29 }
  0x9e   : > { %1590 = vmatpush.bf16.msra.mxu0 %v2301_v34 }
  0x9f   : > { %1609 = vmatpush.bf16.msra.mxu1 %v2397_v35 }
  0xa0   : > { %2582 = vmatpush.bf16.msra.mxu2 %v2301_v34 }
  0xa1   : > { %2590 = vmatpush.bf16.msra.mxu3 %v2397_v35 }
  0xa2   : > { %1591 = vmatpush.bf16.msra.mxu0 %v2289_v40 }
  0xa3   : > { %1610 = vmatpush.bf16.msra.mxu1 %v2385_v41 }
  0xa4   : > { %2583 = vmatpush.bf16.msra.mxu2 %v2289_v40 }
  0xa5   : > { %2591 = vmatpush.bf16.msra.mxu3 %v2385_v41  ;;  %1525 = vmatmul.bf16.gmra.mxu0 %v2856_v44 }
  0xa6   : > { %1592 = vmatpush.bf16.msra.mxu0 %v2277_v48  ;;  %1544 = vmatmul.bf16.gmra.mxu1 %v2858_v50 }
  0xa7   : > { %1611 = vmatpush.bf16.msra.mxu1 %v2373_v53  ;;  %1563 = vmatmul.bf16.gmra.mxu2 %v2860_v51 }
  0xa8   : > { %2584 = vmatpush.bf16.msra.mxu2 %v2277_v48  ;;  %1582 = vmatmul.bf16.gmra.mxu3 %v2862_v56  ;;  %v2927_v48 = vperm.slane %v2924_v43, 0 }
  0xa9   : > { %2592 = vmatpush.bf16.msra.mxu3 %v2373_v53  ;;  %v2929_v53 = vld [vmem:[#allocation6] sm:$0x7] }
  0xaa   : > { %1593 = vmatpush.bf16.msra.mxu0 %v2265_v52  ;;  %v2932_v57 = vperm.slane %v2929_v53, 0  ;;  %v2939_v7 = vperm.slane %v2929_v53, 1 }
  0xab   : > { %1612 = vmatpush.bf16.msra.mxu1 %v2361_v55 }
  0xac   : > { %2585 = vmatpush.bf16.msra.mxu2 %v2265_v52 }
  0xad   : > { %2593 = vmatpush.bf16.msra.mxu3 %v2361_v55 }
  0xae   : > { %1594 = vmatpush.bf16.msra.mxu0 %v2253_v2 }
  0xaf   : > { %1613 = vmatpush.bf16.msra.mxu1 %v2349_v3 }
  0xb0   : > { %2586 = vmatpush.bf16.msra.mxu2 %v2253_v2  ;;  %v2936_v2 = vperm.slane %v2924_v43, 1 }
  0xb1   : > { %2594 = vmatpush.bf16.msra.mxu3 %v2349_v3 }
  0xb2   : > { %1595 = vmatpush.bf16.msra.mxu0 %v2241_v8  ;;  %v1293_v10 = vpop.f32.mrf.mxu0 }
  0xb3   : > { %1614 = vmatpush.bf16.msra.mxu1 %v2337_v9  ;;  %v1312_v44 = vpop.f32.mrf.mxu1 }
  0xb4   : > { %2587 = vmatpush.bf16.msra.mxu2 %v2241_v8  ;;  %v1313_v28 = vadd.f32 %v1312_v44, %v1293_v10 }
  0xb5   : > { %2595 = vmatpush.bf16.msra.mxu3 %v2337_v9  ;;  %1596 = vmatmul.bf16.vlgmr.msra.gmra.mxu0 %v2872_v60 }
  0xb6   : > { %1615 = vmatmul.bf16.vlgmr.msra.gmra.mxu1 %v2874_v61 }
  0xb7   : > { %1601 = vmatmul.bf16.vlgmr.msra.gmra.mxu2 %v2884_v58 }
  0xb8   : > { %1620 = vmatmul.bf16.vlgmr.msra.gmra.mxu3 %v2886_v59 }
  0xba   : > { %v1331_v50 = vpop.f32.mrf.mxu2  ;;  %v1295_v56 = vpop.f32.mrf.mxu0 }
  0xbb   : > { %v1350_v51 = vpop.f32.mrf.mxu3  ;;  %v1314_v11 = vpop.f32.mrf.mxu1  ;;  %v1332_v33 = vadd.f32 %v1331_v50, %v1313_v28 }
  0xbc   : > { %v1315_v35 = vadd.f32 %v1314_v11, %v1295_v56 }
  0xbd   : > { %v1351_v34 = vadd.f32 %v1350_v51, %v1332_v33 }
  0xc2   : > { %v1333_v12 = vpop.f32.mrf.mxu2  ;;  %v1298_v14 = vpop.f32.mrf.mxu0 }
  0xc3   : > { %v1352_v13 = vpop.f32.mrf.mxu3  ;;  %v1317_v15 = vpop.f32.mrf.mxu1  ;;  %v1334_v42 = vadd.f32 %v1333_v12, %v1315_v35 }
  0xc4   : > { %v1318_v54 = vadd.f32 %v1317_v15, %v1298_v14 }
  0xc5   : > { %v1353_v47 = vadd.f32 %v1352_v13, %v1334_v42 }
  0xca   : > { %v1336_v16 = vpop.f32.mrf.mxu2  ;;  %v1300_v18 = vpop.f32.mrf.mxu0 }
  0xcb   : > { %v1355_v17 = vpop.f32.mrf.mxu3  ;;  %v1319_v19 = vpop.f32.mrf.mxu1  ;;  %v1337_v5 = vadd.f32 %v1336_v16, %v1318_v54 }
  0xcc   : > { %v1320_v11 = vadd.f32 %v1319_v19, %v1300_v18 }
  0xcd   : > { %v1356_v50 = vadd.f32 %v1355_v17, %v1337_v5 }
  0xd2   : > { %v2912_v20 = vpop.f32.mrf.mxu2  ;;  %v1369_v61 = vpop.f32.mrf.mxu0 }
  0xd3   : > { %v2914_v60 = vpop.f32.mrf.mxu3  ;;  %v1388_v58 = vpop.f32.mrf.mxu1  ;;  %v1370_v38 = vadd.f32 %v1369_v61, %v1351_v34  ;;  %v1339_v17 = vadd.f32 %v2912_v20, %v1320_v11 }
  0xd5   : > { %v1389_v46 = vadd.f32 %v1388_v58, %v1370_v38  ;;  %v1358_v28 = vadd.f32 %v2914_v60, %v1339_v17 }
  0xd7   : > { %v1634_v63 = vmul.f32 %v2927_v48, %v1389_v46 }
  0xd9   : > { %v1654_v10 = vadd.f32 %v2932_v57, %v1634_v63 }
  0xda   : > { %v1407_v21 = vpop.f32.mrf.mxu2  ;;  %v1371_v22 = vpop.f32.mrf.mxu0 }
  0xdb   : > { %v1426_v59 = vpop.f32.mrf.mxu3  ;;  %v1390_v23 = vpop.f32.mrf.mxu1  ;;  %v1372_v52 = vadd.f32 %v1371_v22, %v1353_v47  ;;  %v1666_v16 = vmax.f32 %v1654_v10, 0.0 }
  0xdc   : > { %v1427_v39 = vadd.f32 %v1426_v59, %v1407_v21 }
  0xdd   : > { %v1391_v9 = vadd.f32 %v1390_v23, %v1372_v52 }
  0xdf   : > { %v1637_v12 = vmul.f32 %v2927_v48, %v1391_v9 }
  0xe2   : > { %v1409_v24 = vpop.f32.mrf.mxu2  ;;  %v1374_v26 = vpop.f32.mrf.mxu0 }
  0xe3   : > { %v1428_v25 = vpop.f32.mrf.mxu3  ;;  %v1393_v27 = vpop.f32.mrf.mxu1  ;;  %v1375_v13 = vadd.f32 %v1374_v26, %v1356_v50 }
  0xe4   : > { %v1429_v0 = vadd.f32 %v1428_v25, %v1409_v24  ;;  %v1657_v24 = vadd.f32 %v2932_v57, %v1637_v12 }
  0xe5   : > { %v1394_v25 = vadd.f32 %v1393_v27, %v1375_v13 }
  0xe6   : > { %v1669_v33 = vmax.f32 %v1657_v24, 0.0  ;;  %v1630_v24 = vperm.slane %v2924_v43, 2 }
  0xe7   : > { %v1640_v34 = vmul.f32 %v2927_v48, %v1394_v25 }
  0xe9   : > { %v1660_v47 = vadd.f32 %v2932_v57, %v1640_v34 }
  0xea   : > { %v1412_v29 = vpop.f32.mrf.mxu2  ;;  %v2916_v31 = vpop.f32.mrf.mxu0 }
  0xeb   : > { %v1431_v30 = vpop.f32.mrf.mxu3  ;;  %v2918_v32 = vpop.f32.mrf.mxu1  ;;  %v1377_v38 = vadd.f32 %v2916_v31, %v1358_v28 }
  0xec   : > { %v1432_v61 = vadd.f32 %v1431_v30, %v1412_v29 }
  0xed   : > { %v1396_v54 = vadd.f32 %v2918_v32, %v1377_v38 }
  0xf2   : > { %v2920_v36 = vpop.f32.mrf.mxu2  ;;  %v1445_v40 = vpop.f32.mrf.mxu0 }
  0xf3   : > { %v2922_v37 = vpop.f32.mrf.mxu3  ;;  %v1464_v41 = vpop.f32.mrf.mxu1  ;;  %v1446_v45 = vadd.f32 %v1445_v40, %v1427_v39 }
  0xf4   : > { %v1434_v39 = vadd.f32 %v2922_v37, %v2920_v36  ;;  %v1672_v37 = vmax.f32 %v1660_v47, 0.0 }
  0xf5   : > { %v1465_v49 = vadd.f32 %v1464_v41, %v1446_v45 }
  0xfa   : > { %v1483_v55 = vpop.f32.mrf.mxu2  ;;  %v1447_v3 = vpop.f32.mrf.mxu0 }
  0xfb   : > { %v1502_v62 = vpop.f32.mrf.mxu3  ;;  %v1484_v1 = vadd.f32 %v1483_v55, %v1465_v49  ;;  %v1466_v4 = vpop.f32.mrf.mxu1  ;;  %v1448_v8 = vadd.f32 %v1447_v3, %v1429_v0 }
  0xfd   : > { %v1503_v6 = vadd.f32 %v1502_v62, %v1484_v1  ;;  %v1467_v56 = vadd.f32 %v1466_v4, %v1448_v8  ;;  %v1643_v62 = vmul.f32 %v2927_v48, %v1396_v54 }
  0xff   : > { %v1635_v44 = vmul.f32 %v2936_v2, %v1503_v6  ;;  %v1663_v32 = vadd.f32 %v2932_v57, %v1643_v62 }
 0x101   : > { %v1655_v51 = vadd.f32 %v2939_v7, %v1635_v44  ;;  %v1675_v44 = vmax.f32 %v1663_v32, 0.0 }
 0x102   : > { %v1485_v14 = vpop.f32.mrf.mxu2  ;;  %v1450_v59 = vpop.f32.mrf.mxu0 }
 0x103   : > { %v1504_v15 = vpop.f32.mrf.mxu3  ;;  %v1667_v58 = vmax.f32 %v1655_v51, 0.0  ;;  %v1486_v21 = vadd.f32 %v1485_v14, %v1467_v56  ;;  %v1469_v22 = vpop.f32.mrf.mxu1  ;;  %v1451_v23 = vadd.f32 %v1450_v59, %v1432_v61 }
 0x105   : > { %v1678_v18 = vpack.c.bf16 %v1667_v58, %v1666_v16  ;;  %v1505_v19 = vadd.f32 %v1504_v15, %v1486_v21  ;;  %v1470_v30 = vadd.f32 %v1469_v22, %v1451_v23 }
 0x107   : > { %1686 = vst [vmem:[%s2949_s19] sm:$0xff] %v1678_v18  ;;  %v1638_v26 = vmul.f32 %v2936_v2, %v1505_v19 }
 0x109   : > { %v1658_v29 = vadd.f32 %v2939_v7, %v1638_v26 }
 0x10a   : > { %v1488_v35 = vpop.f32.mrf.mxu2  ;;  %v1452_v41 = vpop.f32.mrf.mxu0 }
 0x10b   : > { %v1507_v20 = vpop.f32.mrf.mxu3  ;;  %v1670_v27 = vmax.f32 %v1658_v29, 0.0  ;;  %v1489_v40 = vadd.f32 %v1488_v35, %v1470_v30  ;;  %v1471_v42 = vpop.f32.mrf.mxu1  ;;  %v1453_v46 = vadd.f32 %v1452_v41, %v1434_v39  ;;  %v1650_v29 = vperm.slane %v2929_v53, 2 }
 0x10d   : > { %v1680_v45 = vpack.c.bf16 %v1670_v27, %v1669_v33  ;;  %v1508_v60 = vadd.f32 %v1507_v20, %v1489_v40  ;;  %v1472_v52 = vadd.f32 %v1471_v42, %v1453_v46 }
 0x10f   : > { %1688 = vst [vmem:[%s2949_s19 + $0xc] sm:$0xff] %v1680_v45  ;;  %v1641_v49 = vmul.f32 %v2936_v2, %v1508_v60 }
 0x111   : > { %v1661_v31 = vadd.f32 %v2939_v7, %v1641_v49 }
 0x112   : > { %v1490_v55 = vpop.f32.mrf.mxu2  ;;  %v1521_v1 = vpop.f32.mrf.mxu0 }
 0x113   : > { %v1509_v36 = vpop.f32.mrf.mxu3  ;;  %v1673_v63 = vmax.f32 %v1661_v31, 0.0  ;;  %v1491_v0 = vadd.f32 %v1490_v55, %v1472_v52  ;;  %v1540_v3 = vpop.f32.mrf.mxu1 }
 0x114   : > { %v1541_v15 = vadd.f32 %v1540_v3, %v1521_v1 }
 0x115   : > { %v1682_v4 = vpack.c.bf16 %v1673_v63, %v1672_v37  ;;  %v1510_v5 = vadd.f32 %v1509_v36, %v1491_v0 }
 0x117   : > { %1690 = vst [vmem:[%s2949_s19 + $0x18] sm:$0xff] %v1682_v4  ;;  %v1644_v6 = vmul.f32 %v2936_v2, %v1510_v5 }
 0x119   : > { %v1664_v8 = vadd.f32 %v2939_v7, %v1644_v6 }
 0x11a   : > { %v1559_v9 = vpop.f32.mrf.mxu2  ;;  %v1523_v51 = vpop.f32.mrf.mxu0 }
 0x11b   : > { %v1578_v10 = vpop.f32.mrf.mxu3  ;;  %v1676_v50 = vmax.f32 %v1664_v8, 0.0  ;;  %v1542_v48 = vpop.f32.mrf.mxu1  ;;  %v1560_v2 = vadd.f32 %v1559_v9, %v1541_v15 }
 0x11c   : > { %v1543_v19 = vadd.f32 %v1542_v48, %v1523_v51 }
 0x11d   : > { %v1684_v56 = vpack.c.bf16 %v1676_v50, %v1675_v44  ;;  %v1579_v7 = vadd.f32 %v1578_v10, %v1560_v2 }
 0x11f   : > { %1692 = vst [vmem:[%s2949_s19 + $0x24] sm:$0xff] %v1684_v56 }
 0x122   : > { %v1561_v11 = vpop.f32.mrf.mxu2  ;;  %v1526_v13 = vpop.f32.mrf.mxu0 }
 0x123   : > { %v1580_v12 = vpop.f32.mrf.mxu3  ;;  %v1545_v14 = vpop.f32.mrf.mxu1  ;;  %v1562_v26 = vadd.f32 %v1561_v11, %v1543_v19 }
 0x124   : > { %v1546_v21 = vadd.f32 %v1545_v14, %v1526_v13 }
 0x125   : > { %v1581_v34 = vadd.f32 %v1580_v12, %v1562_v26 }
 0x12a   : > { %v1564_v16 = vpop.f32.mrf.mxu2  ;;  %v1528_v61 = vpop.f32.mrf.mxu0 }
 0x12b   : > { %v1583_v57 = vpop.f32.mrf.mxu3  ;;  %v1547_v58 = vpop.f32.mrf.mxu1  ;;  %v1565_v25 = vadd.f32 %v1564_v16, %v1546_v21 }
 0x12c   : > { %v1548_v39 = vadd.f32 %v1547_v58, %v1528_v61 }
 0x12d   : > { %v1584_v33 = vadd.f32 %v1583_v57, %v1565_v25 }
 0x132   : > { %v1566_v59 = vpop.f32.mrf.mxu2  ;;  %v1597_v17 = vpop.f32.mrf.mxu0 }
 0x133   : > { %v1585_v22 = vpop.f32.mrf.mxu3  ;;  %v1616_v18 = vpop.f32.mrf.mxu1  ;;  %v1598_v23 = vadd.f32 %v1597_v17, %v1579_v7  ;;  %v1567_v45 = vadd.f32 %v1566_v59, %v1548_v39 }
 0x135   : > { %v1617_v28 = vadd.f32 %v1616_v18, %v1598_v23  ;;  %v1586_v49 = vadd.f32 %v1585_v22, %v1567_v45 }
 0x137   : > { %v1636_v30 = vmul.f32 %v1630_v24, %v1617_v28 }
 0x139   : > { %v1656_v35 = vadd.f32 %v1650_v29, %v1636_v30 }
 0x13a   : > { %v1602_v20 = vpop.f32.mrf.mxu2  ;;  %v1599_v40 = vpop.f32.mrf.mxu0 }
 0x13b   : > { %v1621_v38 = vpop.f32.mrf.mxu3  ;;  %v1603_v27 = vadd.f32 %v1602_v20, %v1584_v33  ;;  %v1668_v41 = vmax.f32 %v1656_v35, 0.0  ;;  %v1600_v42 = vadd.f32 %v1599_v40, %v1581_v34  ;;  %v1618_v43 = vpop.f32.mrf.mxu1 }
 0x13d   : > { %v1622_v60 = vadd.f32 %v1621_v38, %v1603_v27  ;;  %v1679_v46 = vpack.c.bf16 %v1668_v41, %v1668_v41  ;;  %v1619_v47 = vadd.f32 %v1618_v43, %v1600_v42 }
 0x13f   : > { %v1642_v54 = vmul.f32 %v1630_v24, %v1622_v60  ;;  %1687 = vst [vmem:[%s2949_s19 + $0x8] sm:$0xf] %v1679_v46  ;;  %v1639_v53 = vmul.f32 %v1630_v24, %v1619_v47 }
 0x141   : > { %v1662_v31 = vadd.f32 %v1650_v29, %v1642_v54  ;;  %v1659_v52 = vadd.f32 %v1650_v29, %v1639_v53 }
 0x142   : > { %v1604_v55 = vpop.f32.mrf.mxu2 }
 0x143   : > { %v1674_v36 = vmax.f32 %v1662_v31, 0.0  ;;  %v1605_v37 = vadd.f32 %v1604_v55, %v1586_v49  ;;  %v1671_v62 = vmax.f32 %v1659_v52, 0.0  ;;  %v1623_v63 = vpop.f32.mrf.mxu3 }
 0x145   : > { %v1624_v0 = vadd.f32 %v1623_v63, %v1605_v37  ;;  %v1681_v1 = vpack.c.bf16 %v1671_v62, %v1671_v62  ;;  %v1683_v3 = vpack.c.bf16 %v1674_v36, %v1674_v36 }
 0x147   : > { %v1645_v4 = vmul.f32 %v1630_v24, %v1624_v0  ;;  %1689 = vst [vmem:[%s2949_s19 + $0x14] sm:$0xf] %v1681_v1 }
 0x148   : > { %1691 = vst [vmem:[%s2949_s19 + $0x20] sm:$0xf] %v1683_v3 }
 0x149   : > { %v1665_v5 = vadd.f32 %v1650_v29, %v1645_v4 }
 0x14b   : > { %v1677_v32 = vmax.f32 %v1665_v5, 0.0 }
 0x14d   : > { %v1685_v6 = vpack.c.bf16 %v1677_v32, %v1677_v32 }
 0x14f   : > { %1693 = vst [vmem:[%s2949_s19 + $0x2c] sm:$0xf] %v1685_v6 }
 0x150 PF: > { %s16_s15 = sadd.s32 1, %s2743_s15  }
 0x151   : > { %p13_p7 = scmp.ge.s32.totalorder %s16_s15, 4  }
 0x153   :  { %15 = sbr.rel (!%p13_p7) target bundleno = 2 (0x2), region = 79 }
 0x158   :  { %1718 = vsyncpa [#allocation3], 1 }
 0x159   :  { %1720 = vsyncpa [#allocation3 + $0x1], 1 }
 0x15a   :  { %1721 = vsyncpa [#allocation5], 1 }

// kernel: acgan_generator_forward.6
= control target key start
LH: loop header
LB: loop body
LE: loop exit
PB: predicated region body
PF: predicated region fallthrough
CT: control target
= control target key end

     0   :  { %s1413_s15 = smov 0   ;;  %s1906_s0 = inlined_call_operand.vmem [shape: bf16[192,384], index: 0, kind: input, shape index: {}]   ;;  %s1907_s1 = inlined_call_operand.vmem [shape: bf16[384,256], index: 1, kind: input, shape index: {}]   ;;  %s1908_s2 = inlined_call_operand.vmem [shape: f32[1,256], index: 2, kind: input, shape index: {}]   ;;  %s1909_s3 = inlined_call_operand.vmem [shape: f32[1,256], index: 3, kind: input, shape index: {}]   ;;  %s1910_s4 = inlined_call_operand.vmem [shape: bf16[192,256], index: 4, kind: output, shape index: {}]  }
   0x1 LB: > { %s1014_s16 = sadd.s32 4294967295, %s1386_s15   ;;  %p1018_p0 = scmp.ge.s32.totalorder %s1386_s15, 1  ;;  %s1386_s15 = sphi %s1413_s15, %s14_s15  }
   0x2   : > { %p164_p1 = scmp.lt.s32.totalorder %s1386_s15, 3 }
   0x4   : > { %p165_p2 = pnand %p1018_p0, %p164_p1 }
   0x5   : > { %s192_s25 = smul.u32 (!%p165_p2), 12, %s1014_s16 }
   0x6   : > { %168 = sbr.rel (%p165_p2) target bundleno = 329 (0x149), region = 36 }
   0x7   : > { %p193_p3 = scmp.lt.s32.totalorder (!%p165_p2), %s192_s25, 23 }
   0xb   : > { %v1152_v0 = vld [vmem:[%s1907_s1 + $0x70] sm:$0xf]  ;;  %v1322_v1 = vld [vmem:[%s1907_s1 + $0x74] sm:$0xf0]  ;;  %v1144_v5 = vld [vmem:[%s1907_s1 + $0x60] sm:$0xf] }
   0xc   : > { %v1216_v2 = vld [vmem:[%s1907_s1 + $0xf0] sm:$0xf]  ;;  %v1153_v3 = vor.u32 %v1322_v1, %v1152_v0  ;;  %v1338_v4 = vld [vmem:[%s1907_s1 + $0xf4] sm:$0xf0]  ;;  %v1320_v6 = vld [vmem:[%s1907_s1 + $0x64] sm:$0xf0] }
   0xd   : > { %v1217_v7 = vor.u32 %v1338_v4, %v1216_v2  ;;  %v1208_v8 = vld [vmem:[%s1907_s1 + $0xe0] sm:$0xf]  ;;  %v1336_v9 = vld [vmem:[%s1907_s1 + $0xe4] sm:$0xf0]  ;;  %v1145_v10 = vor.u32 %v1320_v6, %v1144_v5  ;;  %v1136_v12 = vld [vmem:[%s1907_s1 + $0x50] sm:$0xf] }
   0xe   : > { %614 = vmatpush.bf16.msra.mxu0 %v1153_v3  ;;  %1355 = vmatpush.bf16.msra.mxu2 %v1153_v3  ;;  %v1209_v11 = vor.u32 %v1336_v9, %v1208_v8  ;;  %v1318_v13 = vld [vmem:[%s1907_s1 + $0x54] sm:$0xf0]  ;;  %v1200_v14 = vld [vmem:[%s1907_s1 + $0xd0] sm:$0xf]  ;;  %v1128_v18 = vld [vmem:[%s1907_s1 + $0x40] sm:$0xf] }
   0xf   : > { %653 = vmatpush.bf16.msra.mxu1 %v1217_v7  ;;  %1363 = vmatpush.bf16.msra.mxu3 %v1217_v7  ;;  %v1334_v15 = vld [vmem:[%s1907_s1 + $0xd4] sm:$0xf0]  ;;  %v1137_v16 = vor.u32 %v1318_v13, %v1136_v12  ;;  %v1316_v19 = vld [vmem:[%s1907_s1 + $0x44] sm:$0xf0]  ;;  %v1192_v20 = vld [vmem:[%s1907_s1 + $0xc0] sm:$0xf] }
  0x10   : > { %v1201_v17 = vor.u32 %v1334_v15, %v1200_v14  ;;  %v1332_v21 = vld [vmem:[%s1907_s1 + $0xc4] sm:$0xf0]  ;;  %v1129_v22 = vor.u32 %v1316_v19, %v1128_v18  ;;  %v1120_v24 = vld [vmem:[%s1907_s1 + $0x30] sm:$0xf]  ;;  %v1314_v25 = vld [vmem:[%s1907_s1 + $0x34] sm:$0xf0] }
  0x11   : > { %v1193_v23 = vor.u32 %v1332_v21, %v1192_v20  ;;  %v1184_v26 = vld [vmem:[%s1907_s1 + $0xb0] sm:$0xf]  ;;  %v1330_v27 = vld [vmem:[%s1907_s1 + $0xb4] sm:$0xf0]  ;;  %v1121_v28 = vor.u32 %v1314_v25, %v1120_v24  ;;  %s1912_s25 = smov (!%p193_p3, %s192_s25), 23 }
  0x12   : > { %615 = vmatpush.bf16.msra.mxu0 %v1145_v10  ;;  %1356 = vmatpush.bf16.msra.mxu2 %v1145_v10  ;;  %v1185_v29 = vor.u32 %v1330_v27, %v1184_v26  ;;  %v1112_v30 = vld [vmem:[%s1907_s1 + $0x20] sm:$0xf]  ;;  %v1312_v31 = vld [vmem:[%s1907_s1 + $0x24] sm:$0xf0]  ;;  %s1371_s17 = smul.u32 12, %s1912_s25  ;;  %s1288_s30 = sshll.u32 %s1912_s25, 3 }
  0x13   : > { %654 = vmatpush.bf16.msra.mxu1 %v1209_v11  ;;  %1364 = vmatpush.bf16.msra.mxu3 %v1209_v11  ;;  %v1176_v32 = vld [vmem:[%s1907_s1 + $0xa0] sm:$0xf]  ;;  %v1328_v33 = vld [vmem:[%s1907_s1 + $0xa4] sm:$0xf0]  ;;  %v1113_v34 = vor.u32 %v1312_v31, %v1112_v30  ;;  %v1104_v36 = vld [vmem:[%s1907_s1 + $0x10] sm:$0xf]  ;;  %s1833_s7 = scalar_lea.vmem %s1910_s4, %s1288_s30 }
  0x14   : > { %v1177_v35 = vor.u32 %v1328_v33, %v1176_v32  ;;  %v1310_v37 = vld [vmem:[%s1907_s1 + $0x14] sm:$0xf0]  ;;  %v1168_v38 = vld [vmem:[%s1907_s1 + $0x90] sm:$0xf]  ;;  %v1096_v41 = vld [vmem:[%s1907_s1] sm:$0xf]  ;;  %s1516_s5 = scalar_lea.vmem %s1906_s0, %s1371_s17 }
  0x15   : > { %v1326_v39 = vld [vmem:[%s1907_s1 + $0x94] sm:$0xf0]  ;;  %v1105_v40 = vor.u32 %v1310_v37, %v1104_v36  ;;  %v1308_v43 = vld [vmem:[%s1907_s1 + $0x4] sm:$0xf0]  ;;  %v1160_v44 = vld [vmem:[%s1907_s1 + $0x80] sm:$0xf] }
  0x16   : > { %616 = vmatpush.bf16.msra.mxu0 %v1137_v16  ;;  %1357 = vmatpush.bf16.msra.mxu2 %v1137_v16  ;;  %v1169_v42 = vor.u32 %v1326_v39, %v1168_v38  ;;  %v1324_v45 = vld [vmem:[%s1907_s1 + $0x84] sm:$0xf0]  ;;  %v1321_v46 = vld [vmem:[%s1907_s1 + $0x74] sm:$0xf]  ;;  %v1154_v47 = vld [vmem:[%s1907_s1 + $0x78] sm:$0xf0]  ;;  %v1097_v52 = vor.u32 %v1308_v43, %v1096_v41 }
  0x17   : > { %655 = vmatpush.bf16.msra.mxu1 %v1201_v17  ;;  %1365 = vmatpush.bf16.msra.mxu3 %v1201_v17  ;;  %v1280_v48 = vld [vmem:[%s1907_s1 + $0x170] sm:$0xf]  ;;  %v1024_v49 = vld [vmem:[%s1516_s5] sm:$0xf]  ;;  %v1290_v50 = vld [vmem:[%s1516_s5 + $0x8] sm:$0xf0]  ;;  %v1161_v57 = vor.u32 %v1324_v45, %v1160_v44  ;;  %v1157_v62 = vor.u32 %v1321_v46, %v1154_v47 }
  0x18   : > { %v1354_v51 = vld [vmem:[%s1907_s1 + $0x174] sm:$0xf0]  ;;  %v1060_v53 = vld [vmem:[%s1516_s5 + $0x48] sm:$0xf]  ;;  %v1299_v54 = vld [vmem:[%s1516_s5 + $0x50] sm:$0xf0]  ;;  %v1562_v3 = vor.u32 %v1290_v50, %v1024_v49 }
  0x19   : > { %v1289_v55 = vld [vmem:[%s1516_s5 + $0x4] sm:$0xf]  ;;  %v1337_v56 = vld [vmem:[%s1907_s1 + $0xf4] sm:$0xf]  ;;  %v1026_v58 = vld [vmem:[%s1516_s5 + $0xc] sm:$0xf0]  ;;  %v1281_v63 = vor.u32 %v1354_v51, %v1280_v48  ;;  %v1564_v4 = vor.u32 %v1299_v54, %v1060_v53 }
  0x1a   : > { %617 = vmatpush.bf16.msra.mxu0 %v1129_v22  ;;  %1358 = vmatpush.bf16.msra.mxu2 %v1129_v22  ;;  %v1298_v59 = vld [vmem:[%s1516_s5 + $0x4c] sm:$0xf]  ;;  %v1062_v60 = vld [vmem:[%s1516_s5 + $0x54] sm:$0xf0]  ;;  %v1319_v61 = vld [vmem:[%s1907_s1 + $0x64] sm:$0xf]  ;;  %v1575_v8 = vor.u32 %v1289_v55, %v1026_v58 }
  0x1b   : > { %656 = vmatpush.bf16.msra.mxu1 %v1193_v23  ;;  %1366 = vmatpush.bf16.msra.mxu3 %v1193_v23  ;;  %v1218_v0 = vld [vmem:[%s1907_s1 + $0xf8] sm:$0xf0]  ;;  %v1353_v1 = vld [vmem:[%s1907_s1 + $0x174] sm:$0xf]  ;;  %v1146_v5 = vld [vmem:[%s1907_s1 + $0x68] sm:$0xf0]  ;;  %v1577_v9 = vor.u32 %v1298_v59, %v1062_v60 }
  0x1c   : > { %v1282_v2 = vld [vmem:[%s1907_s1 + $0x178] sm:$0xf0]  ;;  %v1272_v6 = vld [vmem:[%s1907_s1 + $0x160] sm:$0xf]  ;;  %v1352_v7 = vld [vmem:[%s1907_s1 + $0x164] sm:$0xf0]  ;;  %v1221_v10 = vor.u32 %v1337_v56, %v1218_v0  ;;  %v1149_v14 = vor.u32 %v1319_v61, %v1146_v5 }
  0x1d   : > { %v1285_v11 = vor.u32 %v1353_v1, %v1282_v2  ;;  %v1317_v12 = vld [vmem:[%s1907_s1 + $0x54] sm:$0xf]  ;;  %v1335_v13 = vld [vmem:[%s1907_s1 + $0xe4] sm:$0xf]  ;;  %v1273_v15 = vor.u32 %v1352_v7, %v1272_v6  ;;  %v1210_v16 = vld [vmem:[%s1907_s1 + $0xe8] sm:$0xf0] }
  0x1e   : > { %618 = vmatpush.bf16.msra.mxu0 %v1121_v28  ;;  %1359 = vmatpush.bf16.msra.mxu2 %v1121_v28  ;;  %v1351_v17 = vld [vmem:[%s1907_s1 + $0x164] sm:$0xf]  ;;  %v1274_v18 = vld [vmem:[%s1907_s1 + $0x168] sm:$0xf0]  ;;  %v1138_v19 = vld [vmem:[%s1907_s1 + $0x58] sm:$0xf0]  ;;  %v1213_v22 = vor.u32 %v1335_v13, %v1210_v16 }
  0x1f   : > { %657 = vmatpush.bf16.msra.mxu1 %v1185_v29  ;;  %1367 = vmatpush.bf16.msra.mxu3 %v1185_v29  ;;  %v1264_v20 = vld [vmem:[%s1907_s1 + $0x150] sm:$0xf]  ;;  %v1350_v21 = vld [vmem:[%s1907_s1 + $0x154] sm:$0xf0]  ;;  %v1277_v23 = vor.u32 %v1351_v17, %v1274_v18  ;;  %v1315_v24 = vld [vmem:[%s1907_s1 + $0x44] sm:$0xf]  ;;  %v1141_v26 = vor.u32 %v1317_v12, %v1138_v19 }
  0x20   : > { %v1333_v25 = vld [vmem:[%s1907_s1 + $0xd4] sm:$0xf]  ;;  %v1265_v27 = vor.u32 %v1350_v21, %v1264_v20  ;;  %v1202_v28 = vld [vmem:[%s1907_s1 + $0xd8] sm:$0xf0]  ;;  %v1130_v31 = vld [vmem:[%s1907_s1 + $0x48] sm:$0xf0] }
  0x21   : > { %v1349_v29 = vld [vmem:[%s1907_s1 + $0x154] sm:$0xf]  ;;  %v1266_v30 = vld [vmem:[%s1907_s1 + $0x158] sm:$0xf0]  ;;  %v1256_v32 = vld [vmem:[%s1907_s1 + $0x140] sm:$0xf] }
  0x22   : > { %619 = vmatpush.bf16.msra.mxu0 %v1113_v34  ;;  %1360 = vmatpush.bf16.msra.mxu2 %v1113_v34  ;;  %v1348_v33 = vld [vmem:[%s1907_s1 + $0x144] sm:$0xf0]  ;;  %v1205_v34 = vor.u32 %v1333_v25, %v1202_v28  ;;  %v1313_v36 = vld [vmem:[%s1907_s1 + $0x34] sm:$0xf]  ;;  %v1331_v37 = vld [vmem:[%s1907_s1 + $0xc4] sm:$0xf] }
  0x23   : > { %658 = vmatpush.bf16.msra.mxu1 %v1177_v35  ;;  %1368 = vmatpush.bf16.msra.mxu3 %v1177_v35  ;;  %v1269_v35 = vor.u32 %v1349_v29, %v1266_v30  ;;  %v1036_v38 = vld [vmem:[%s1516_s5 + $0x18] sm:$0xf]  ;;  %v1293_v39 = vld [vmem:[%s1516_s5 + $0x20] sm:$0xf0]  ;;  %v1302_v41 = vld [vmem:[%s1516_s5 + $0x68] sm:$0xf0]  ;;  %v1257_v43 = vor.u32 %v1348_v33, %v1256_v32 }
  0x24   : > { %v1194_v44 = vld [vmem:[%s1907_s1 + $0xc8] sm:$0xf0]  ;;  %v1347_v45 = vld [vmem:[%s1907_s1 + $0x144] sm:$0xf]  ;;  %v1122_v47 = vld [vmem:[%s1907_s1 + $0x38] sm:$0xf0] }
  0x25   : > { %v1258_v46 = vld [vmem:[%s1907_s1 + $0x148] sm:$0xf0]  ;;  %v1248_v48 = vld [vmem:[%s1907_s1 + $0x130] sm:$0xf]  ;;  %v1346_v49 = vld [vmem:[%s1907_s1 + $0x134] sm:$0xf0]  ;;  %v1197_v54 = vor.u32 %v1331_v37, %v1194_v44  ;;  %v1125_v58 = vor.u32 %v1313_v36, %v1122_v47 }
  0x26   : > { %620 = vmatpush.bf16.msra.mxu0 %v1105_v40  ;;  %1361 = vmatpush.bf16.msra.mxu2 %v1105_v40  ;;  %v1072_v40 = vld [vmem:[%s1516_s5 + $0x60] sm:$0xf]  ;;  %v1292_v50 = vld [vmem:[%s1516_s5 + $0x1c] sm:$0xf]  ;;  %v1038_v51 = vld [vmem:[%s1516_s5 + $0x24] sm:$0xf0]  ;;  %v1261_v55 = vor.u32 %v1347_v45, %v1258_v46  ;;  %v1249_v59 = vor.u32 %v1346_v49, %v1248_v48 }
  0x27   : > { %659 = vmatpush.bf16.msra.mxu1 %v1169_v42  ;;  %1369 = vmatpush.bf16.msra.mxu3 %v1169_v42  ;;  %v1133_v42 = vor.u32 %v1315_v24, %v1130_v31  ;;  %v1074_v53 = vld [vmem:[%s1516_s5 + $0x6c] sm:$0xf0]  ;;  %v1311_v56 = vld [vmem:[%s1907_s1 + $0x24] sm:$0xf]  ;;  %v1186_v60 = vld [vmem:[%s1907_s1 + $0xb8] sm:$0xf0]  ;;  %v1680_v0 = vor.u32 %v1302_v41, %v1072_v40  ;;  %v1691_v6 = vor.u32 %v1292_v50, %v1038_v51 }
  0x28   : > { %v1345_v61 = vld [vmem:[%s1907_s1 + $0x134] sm:$0xf]  ;;  %v1114_v1 = vld [vmem:[%s1907_s1 + $0x28] sm:$0xf0]  ;;  %v1240_v2 = vld [vmem:[%s1907_s1 + $0x120] sm:$0xf] }
  0x29   : > { %v1344_v5 = vld [vmem:[%s1907_s1 + $0x124] sm:$0xf0]  ;;  %v1309_v12 = vld [vmem:[%s1907_s1 + $0x14] sm:$0xf]  ;;  %v1327_v13 = vld [vmem:[%s1907_s1 + $0xa4] sm:$0xf] }
  0x2a   : > { %621 = vmatpush.bf16.msra.mxu0 %v1097_v52  ;;  %1362 = vmatpush.bf16.msra.mxu2 %v1097_v52  ;;  %v1301_v52 = vld [vmem:[%s1516_s5 + $0x64] sm:$0xf]  ;;  %v1178_v16 = vld [vmem:[%s1907_s1 + $0xa8] sm:$0xf0]  ;;  %v1106_v19 = vld [vmem:[%s1907_s1 + $0x18] sm:$0xf0] }
  0x2b   : > { %660 = vmatpush.bf16.msra.mxu1 %v1161_v57  ;;  %1370 = vmatpush.bf16.msra.mxu3 %v1161_v57  ;;  %v1329_v57 = vld [vmem:[%s1907_s1 + $0xb4] sm:$0xf]  ;;  %v1693_v7 = vor.u32 %v1301_v52, %v1074_v53  ;;  %v1343_v17 = vld [vmem:[%s1907_s1 + $0x124] sm:$0xf]  ;;  %v1242_v18 = vld [vmem:[%s1907_s1 + $0x128] sm:$0xf0] }
  0x2c   : > { %v1232_v20 = vld [vmem:[%s1907_s1 + $0x110] sm:$0xf]  ;;  %v1342_v21 = vld [vmem:[%s1907_s1 + $0x114] sm:$0xf0]  ;;  %v1325_v24 = vld [vmem:[%s1907_s1 + $0x94] sm:$0xf] }
  0x2d   : > { %622 = vmatmul.bf16.vlgmr.msra.gmra.mxu0 %v1562_v3  ;;  %637 = vmatmul.bf16.vlgmr.msra.gmra.mxu2 %v1564_v4  ;;  %v1170_v25 = vld [vmem:[%s1907_s1 + $0x98] sm:$0xf0]  ;;  %v1341_v28 = vld [vmem:[%s1907_s1 + $0x114] sm:$0xf]  ;;  %v1307_v30 = vld [vmem:[%s1907_s1 + $0x4] sm:$0xf] }
  0x2e   : > { %692 = vmatpush.bf16.msrb.mxu2 %v1281_v63  ;;  %661 = vmatmul.bf16.vlgmr.msra.gmra.mxu1 %v1575_v8  ;;  %v1678_v63 = vor.u32 %v1293_v39, %v1036_v38  ;;  %v1234_v29 = vld [vmem:[%s1907_s1 + $0x118] sm:$0xf0]  ;;  %v1098_v31 = vld [vmem:[%s1907_s1 + $0x8] sm:$0xf0]  ;;  %v1224_v32 = vld [vmem:[%s1907_s1 + $0x100] sm:$0xf] }
  0x2f   : > { %731 = vmatpush.bf16.msrb.mxu3 %v1157_v62  ;;  %770 = vmatpush.bf16.msrb.mxu0 %v1221_v10  ;;  %v1250_v62 = vld [vmem:[%s1907_s1 + $0x138] sm:$0xf0]  ;;  %v1189_v10 = vor.u32 %v1329_v57, %v1186_v60  ;;  %v1340_v33 = vld [vmem:[%s1907_s1 + $0x104] sm:$0xf0]  ;;  %v1323_v36 = vld [vmem:[%s1907_s1 + $0x84] sm:$0xf]  ;;  %v1101_v37 = vor.u32 %v1307_v30, %v1098_v31 }
  0x30   : > { %676 = vmatmul.bf16.vlgmr.msra.gmra.mxu3 %v1577_v9  ;;  %809 = vmatpush.bf16.msrb.mxu1 %v1285_v11  ;;  %v1253_v11 = vor.u32 %v1345_v61, %v1250_v62  ;;  %v1225_v38 = vor.u32 %v1340_v33, %v1224_v32  ;;  %v1162_v39 = vld [vmem:[%s1907_s1 + $0x88] sm:$0xf0]  ;;  %v1339_v40 = vld [vmem:[%s1907_s1 + $0x104] sm:$0xf]  ;;  %v1084_v44 = vld [vmem:[%s1516_s5 + $0x78] sm:$0xf] }
  0x31   : > { %v1226_v41 = vld [vmem:[%s1907_s1 + $0x108] sm:$0xf0]  ;;  %v1305_v45 = vld [vmem:[%s1516_s5 + $0x80] sm:$0xf0]  ;;  %v1295_v46 = vld [vmem:[%s1516_s5 + $0x34] sm:$0xf]  ;;  %v1165_v50 = vor.u32 %v1323_v36, %v1162_v39 }
  0x32   : > { %693 = vmatpush.bf16.msrb.mxu2 %v1273_v15  ;;  %v1241_v15 = vor.u32 %v1344_v5, %v1240_v2  ;;  %v1050_v47 = vld [vmem:[%s1516_s5 + $0x3c] sm:$0xf0]  ;;  %v1304_v48 = vld [vmem:[%s1516_s5 + $0x7c] sm:$0xf]  ;;  %v1086_v49 = vld [vmem:[%s1516_s5 + $0x84] sm:$0xf0]  ;;  %v1229_v51 = vor.u32 %v1339_v40, %v1226_v41  ;;  %v1085_v53 = vor.u32 %v1305_v45, %v1084_v44 }
  0x33   : > { %732 = vmatpush.bf16.msrb.mxu3 %v1149_v14  ;;  %771 = vmatpush.bf16.msrb.mxu0 %v1213_v22  ;;  %v1117_v14 = vor.u32 %v1311_v56, %v1114_v1  ;;  %v1181_v22 = vor.u32 %v1327_v13, %v1178_v16  ;;  %v1032_v56 = vld [vmem:[%s1516_s5 + $0x8] sm:$0xf]  ;;  %v1291_v57 = vld [vmem:[%s1516_s5 + $0x10] sm:$0xf0]  ;;  %v1294_v60 = vld [vmem:[%s1516_s5 + $0x28] sm:$0xf0] }
  0x34   : > { %810 = vmatpush.bf16.msrb.mxu1 %v1277_v23  ;;  %v1245_v23 = vor.u32 %v1343_v17, %v1242_v18  ;;  %v1056_v62 = vld [vmem:[%s1516_s5 + $0x38] sm:$0xf]  ;;  %v1297_v1 = vld [vmem:[%s1516_s5 + $0x40] sm:$0xf0]  ;;  %v878_v45 = vld [vmem:[%s1909_s3] sm:$0x3] }
  0x35   : > { %v1057_v2 = vor.u32 %v1297_v1, %v1056_v62 }
  0x36   : > { %694 = vmatpush.bf16.msrb.mxu2 %v1265_v27  ;;  %v1233_v27 = vor.u32 %v1342_v21, %v1232_v20 }
  0x37   : > { %733 = vmatpush.bf16.msrb.mxu3 %v1141_v26  ;;  %772 = vmatpush.bf16.msrb.mxu0 %v1205_v34  ;;  %v1109_v26 = vor.u32 %v1309_v12, %v1106_v19  ;;  %v1173_v34 = vor.u32 %v1325_v24, %v1170_v25  ;;  %v1306_v12 = vld [vmem:[%s1516_s5 + $0x88] sm:$0xf0] }
  0x38   : > { %811 = vmatpush.bf16.msrb.mxu1 %v1269_v35  ;;  %v1237_v35 = vor.u32 %v1341_v28, %v1234_v29 }
  0x3a   : > { %695 = vmatpush.bf16.msrb.mxu2 %v1257_v43  ;;  %v1296_v43 = vld [vmem:[%s1516_s5 + $0x38] sm:$0xf0] }
  0x3b   : > { %734 = vmatpush.bf16.msrb.mxu3 %v1133_v42  ;;  %773 = vmatpush.bf16.msrb.mxu0 %v1197_v54  ;;  %v1048_v42 = vld [vmem:[%s1516_s5 + $0x30] sm:$0xf]  ;;  %v1053_v54 = vor.u32 %v1295_v46, %v1050_v47 }
  0x3c   : > { %812 = vmatpush.bf16.msrb.mxu1 %v1261_v55  ;;  %v1049_v52 = vor.u32 %v1296_v43, %v1048_v42  ;;  %v1089_v55 = vor.u32 %v1304_v48, %v1086_v49  ;;  %v848_v42 = vld [vmem:[%s1908_s2] sm:$0x3]  ;;  %v1819_v49 = vperm.slane %v878_v45, 0 }
  0x3d   : > { %627 = vmatmul.bf16.gmra.mxu0 %v1678_v63  ;;  %642 = vmatmul.bf16.gmra.mxu2 %v1680_v0  ;;  %v1814_v44 = vperm.slane %v848_v42, 0 }
  0x3e   : > { %696 = vmatpush.bf16.msrb.mxu2 %v1249_v59  ;;  %666 = vmatmul.bf16.gmra.mxu1 %v1691_v6  ;;  %v1044_v59 = vld [vmem:[%s1516_s5 + $0x20] sm:$0xf] }
  0x3f   : > { %735 = vmatpush.bf16.msrb.mxu3 %v1125_v58  ;;  %774 = vmatpush.bf16.msrb.mxu0 %v1189_v10  ;;  %v1033_v58 = vor.u32 %v1291_v57, %v1032_v56  ;;  %v1045_v61 = vor.u32 %v1294_v60, %v1044_v59  ;;  %v1824_v56 = vperm.slane %v878_v45, 1 }
  0x40   : > { %681 = vmatmul.bf16.gmra.mxu3 %v1693_v7  ;;  %813 = vmatpush.bf16.msrb.mxu1 %v1253_v11  ;;  %v1092_v11 = vld [vmem:[%s1516_s5 + $0x80] sm:$0xf] }
  0x41   : > { %v1093_v13 = vor.u32 %v1306_v12, %v1092_v11 }
  0x42   : > { %697 = vmatpush.bf16.msrb.mxu2 %v1241_v15 }
  0x43   : > { %736 = vmatpush.bf16.msrb.mxu3 %v1117_v14  ;;  %775 = vmatpush.bf16.msrb.mxu0 %v1181_v22 }
  0x44   : > { %814 = vmatpush.bf16.msrb.mxu1 %v1245_v23 }
  0x46   : > { %698 = vmatpush.bf16.msrb.mxu2 %v1233_v27 }
  0x47   : > { %737 = vmatpush.bf16.msrb.mxu3 %v1109_v26  ;;  %776 = vmatpush.bf16.msrb.mxu0 %v1173_v34 }
  0x48   : > { %815 = vmatpush.bf16.msrb.mxu1 %v1237_v35 }
  0x4a   : > { %699 = vmatpush.bf16.msrb.mxu2 %v1225_v38 }
  0x4b   : > { %738 = vmatpush.bf16.msrb.mxu3 %v1101_v37  ;;  %777 = vmatpush.bf16.msrb.mxu0 %v1165_v50 }
  0x4c   : > { %816 = vmatpush.bf16.msrb.mxu1 %v1229_v51  ;;  %v1821_v51 = vperm.slane %v848_v42, 1 }
  0x4d   : > { %632 = vmatmul.bf16.gmra.mxu0 %v1049_v52  ;;  %647 = vmatmul.bf16.gmra.mxu2 %v1085_v53 }
  0x4e   : > { %671 = vmatmul.bf16.gmra.mxu1 %v1053_v54 }
  0x50   : > { %686 = vmatmul.bf16.gmra.mxu3 %v1089_v55 }
  0x5d   : > { %700 = vmatmul.bf16.vlgmr.msrb.gmra.mxu2 %v1033_v58  ;;  %778 = vmatmul.bf16.vlgmr.msrb.gmra.mxu0 %v1575_v8  ;;  %v1300_v8 = vld [vmem:[%s1516_s5 + $0x58] sm:$0xf0] }
  0x5e   : > { %817 = vmatmul.bf16.vlgmr.msrb.gmra.mxu1 %v1033_v58 }
  0x60   : > { %739 = vmatmul.bf16.vlgmr.msrb.gmra.mxu3 %v1562_v3  ;;  %v1068_v3 = vld [vmem:[%s1516_s5 + $0x50] sm:$0xf] }
  0x61   : > { %v1069_v5 = vor.u32 %v1300_v8, %v1068_v3 }
  0x6d   : > { %705 = vmatmul.bf16.gmra.mxu2 %v1045_v61  ;;  %783 = vmatmul.bf16.gmra.mxu0 %v1691_v6  ;;  %v1303_v6 = vld [vmem:[%s1516_s5 + $0x70] sm:$0xf0] }
  0x6e   : > { %822 = vmatmul.bf16.gmra.mxu1 %v1045_v61 }
  0x70   : > { %744 = vmatmul.bf16.gmra.mxu3 %v1678_v63  ;;  %v1080_v63 = vld [vmem:[%s1516_s5 + $0x68] sm:$0xf] }
  0x71   : > { %v1081_v10 = vor.u32 %v1303_v6, %v1080_v63 }
  0x7d   : > { %710 = vmatmul.bf16.gmra.mxu2 %v1057_v2  ;;  %788 = vmatmul.bf16.gmra.mxu0 %v1053_v54 }
  0x7e   : > { %827 = vmatmul.bf16.gmra.mxu1 %v1057_v2 }
  0x80   : > { %749 = vmatmul.bf16.gmra.mxu3 %v1049_v52 }
  0x8d   : > { %715 = vmatmul.bf16.gmra.mxu2 %v1069_v5  ;;  %793 = vmatmul.bf16.gmra.mxu0 %v1577_v9 }
  0x8e   : > { %832 = vmatmul.bf16.gmra.mxu1 %v1069_v5 }
  0x90   : > { %754 = vmatmul.bf16.gmra.mxu3 %v1564_v4 }
  0x9d   : > { %720 = vmatmul.bf16.gmra.mxu2 %v1081_v10  ;;  %798 = vmatmul.bf16.gmra.mxu0 %v1693_v7 }
  0x9e   : > { %837 = vmatmul.bf16.gmra.mxu1 %v1081_v10 }
  0xa0   : > { %759 = vmatmul.bf16.gmra.mxu3 %v1680_v0 }
  0xaa   : > { %v623_v14 = vpop.f32.mrf.mxu0 }
  0xab   : > { %v662_v15 = vpop.f32.mrf.mxu1 }
  0xac   : > { %v663_v43 = vadd.f32 %v662_v15, %v623_v14 }
  0xad   : > { %725 = vmatmul.bf16.gmra.mxu2 %v1093_v13  ;;  %803 = vmatmul.bf16.gmra.mxu0 %v1089_v55 }
  0xae   : > { %842 = vmatmul.bf16.gmra.mxu1 %v1093_v13 }
  0xb0   : > { %764 = vmatmul.bf16.gmra.mxu3 %v1085_v53  ;;  %v638_v4 = vpop.f32.mrf.mxu2 }
  0xb2   : > { %v625_v17 = vpop.f32.mrf.mxu0 }
  0xb3   : > { %v677_v9 = vpop.f32.mrf.mxu3  ;;  %v664_v18 = vpop.f32.mrf.mxu1 }
  0xb4   : > { %v1787_v16 = vadd.f32 %v677_v9, %v638_v4  ;;  %v665_v59 = vadd.f32 %v664_v18, %v625_v17 }
  0xb8   : > { %v640_v19 = vpop.f32.mrf.mxu2 }
  0xba   : > { %v628_v0 = vpop.f32.mrf.mxu0 }
  0xbb   : > { %v679_v7 = vpop.f32.mrf.mxu3  ;;  %v667_v21 = vpop.f32.mrf.mxu1 }
  0xbc   : > { %v1789_v20 = vadd.f32 %v679_v7, %v640_v19  ;;  %v668_v14 = vadd.f32 %v667_v21, %v628_v0 }
  0xc0   : > { %v643_v22 = vpop.f32.mrf.mxu2 }
  0xc2   : > { %v1793_v25 = vpop.f32.mrf.mxu0 }
  0xc3   : > { %v682_v23 = vpop.f32.mrf.mxu3  ;;  %v1795_v26 = vpop.f32.mrf.mxu1 }
  0xc4   : > { %v1791_v24 = vadd.f32 %v682_v23, %v643_v22  ;;  %v670_v21 = vadd.f32 %v1795_v26, %v1793_v25 }
  0xc8   : > { %v645_v27 = vpop.f32.mrf.mxu2 }
  0xca   : > { %v1799_v30 = vpop.f32.mrf.mxu0 }
  0xcb   : > { %v684_v28 = vpop.f32.mrf.mxu3  ;;  %v1801_v31 = vpop.f32.mrf.mxu1 }
  0xcc   : > { %v1797_v29 = vadd.f32 %v684_v28, %v645_v27  ;;  %v673_v26 = vadd.f32 %v1801_v31, %v1799_v30 }
  0xd0   : > { %v648_v32 = vpop.f32.mrf.mxu2 }
  0xd2   : > { %v1805_v35 = vpop.f32.mrf.mxu0 }
  0xd3   : > { %v687_v33 = vpop.f32.mrf.mxu3  ;;  %v1807_v36 = vpop.f32.mrf.mxu1 }
  0xd4   : > { %v1803_v34 = vadd.f32 %v687_v33, %v648_v32  ;;  %v675_v31 = vadd.f32 %v1807_v36, %v1805_v35 }
  0xd8   : > { %v650_v37 = vpop.f32.mrf.mxu2 }
  0xda   : > { %v779_v40 = vpop.f32.mrf.mxu0 }
  0xdb   : > { %v689_v38 = vpop.f32.mrf.mxu3  ;;  %v818_v41 = vpop.f32.mrf.mxu1 }
  0xdc   : > { %v1809_v39 = vadd.f32 %v689_v38, %v650_v37 }
  0xe0   : > { %v701_v46 = vpop.f32.mrf.mxu2 }
  0xe1   : > { %v702_v47 = vadd.f32 %v701_v46, %v663_v43 }
  0xe2   : > { %v781_v52 = vpop.f32.mrf.mxu0 }
  0xe3   : > { %v740_v48 = vpop.f32.mrf.mxu3  ;;  %v854_v53 = vmul.f32 %v1814_v44, %v702_v47  ;;  %v820_v54 = vpop.f32.mrf.mxu1 }
  0xe4   : > { %v780_v50 = vadd.f32 %v779_v40, %v740_v48 }
  0xe5   : > { %v884_v57 = vadd.f32 %v1819_v49, %v854_v53 }
  0xe6   : > { %v819_v55 = vadd.f32 %v818_v41, %v780_v50 }
  0xe7   : > { %v908_v2 = vmax.f32 %v884_v57, 0.0 }
  0xe8   : > { %v855_v58 = vmul.f32 %v1821_v51, %v819_v55  ;;  %v703_v61 = vpop.f32.mrf.mxu2 }
  0xe9   : > { %v704_v62 = vadd.f32 %v703_v61, %v665_v59 }
  0xea   : > { %v885_v60 = vadd.f32 %v1824_v56, %v855_v58  ;;  %v784_v5 = vpop.f32.mrf.mxu0 }
  0xeb   : > { %v742_v1 = vpop.f32.mrf.mxu3  ;;  %v856_v63 = vmul.f32 %v1814_v44, %v704_v62  ;;  %v823_v6 = vpop.f32.mrf.mxu1 }
  0xec   : > { %v909_v3 = vmax.f32 %v885_v60, 0.0  ;;  %v782_v8 = vadd.f32 %v781_v52, %v742_v1 }
  0xed   : > { %v886_v12 = vadd.f32 %v1819_v49, %v856_v63 }
  0xee   : > { %v932_v10 = vpack.c.bf16 %v909_v3, %v908_v2  ;;  %v821_v11 = vadd.f32 %v820_v54, %v782_v8 }
  0xef   : > { %v910_v18 = vmax.f32 %v886_v12, 0.0 }
  0xf0   : > { %944 = vst [vmem:[%s1833_s7] sm:$0xff] %v932_v10  ;;  %v857_v13 = vmul.f32 %v1821_v51, %v821_v11  ;;  %v706_v4 = vpop.f32.mrf.mxu2 }
  0xf1   : > { %v707_v9 = vadd.f32 %v706_v4, %v668_v14 }
  0xf2   : > { %v887_v15 = vadd.f32 %v1824_v56, %v857_v13  ;;  %v786_v22 = vpop.f32.mrf.mxu0 }
  0xf3   : > { %v745_v17 = vpop.f32.mrf.mxu3  ;;  %v858_v23 = vmul.f32 %v1814_v44, %v707_v9  ;;  %v825_v27 = vpop.f32.mrf.mxu1 }
  0xf4   : > { %v911_v19 = vmax.f32 %v887_v15, 0.0  ;;  %v785_v7 = vadd.f32 %v784_v5, %v745_v17 }
  0xf5   : > { %v888_v33 = vadd.f32 %v1819_v49, %v858_v23 }
  0xf6   : > { %v933_v28 = vpack.c.bf16 %v911_v19, %v910_v18  ;;  %v824_v32 = vadd.f32 %v823_v6, %v785_v7 }
  0xf7   : > { %v912_v42 = vmax.f32 %v888_v33, 0.0 }
  0xf8   : > { %945 = vst [vmem:[%s1833_s7 + $0x8] sm:$0xff] %v933_v28  ;;  %v859_v0 = vmul.f32 %v1821_v51, %v824_v32  ;;  %v708_v38 = vpop.f32.mrf.mxu2 }
  0xf9   : > { %v709_v40 = vadd.f32 %v708_v38, %v670_v21 }
  0xfa   : > { %v889_v37 = vadd.f32 %v1824_v56, %v859_v0  ;;  %v789_v46 = vpop.f32.mrf.mxu0 }
  0xfb   : > { %v747_v41 = vpop.f32.mrf.mxu3  ;;  %v860_v47 = vmul.f32 %v1814_v44, %v709_v40  ;;  %v828_v48 = vpop.f32.mrf.mxu1 }
  0xfc   : > { %v913_v43 = vmax.f32 %v889_v37, 0.0  ;;  %v787_v45 = vadd.f32 %v786_v22, %v747_v41 }
  0xfd   : > { %v890_v53 = vadd.f32 %v1819_v49, %v860_v47 }
  0xfe   : > { %v934_v50 = vpack.c.bf16 %v913_v43, %v912_v42  ;;  %v826_v52 = vadd.f32 %v825_v27, %v787_v45 }
  0xff   : > { %v914_v59 = vmax.f32 %v890_v53, 0.0 }
 0x100   : > { %946 = vst [vmem:[%s1833_s7 + $0x10] sm:$0xff] %v934_v50  ;;  %v861_v25 = vmul.f32 %v1821_v51, %v826_v52  ;;  %v711_v55 = vpop.f32.mrf.mxu2 }
 0x101   : > { %v712_v57 = vadd.f32 %v711_v55, %v673_v26 }
 0x102   : > { %v891_v54 = vadd.f32 %v1824_v56, %v861_v25  ;;  %v791_v62 = vpop.f32.mrf.mxu0 }
 0x103   : > { %v750_v58 = vpop.f32.mrf.mxu3  ;;  %v862_v1 = vmul.f32 %v1814_v44, %v712_v57  ;;  %v830_v2 = vpop.f32.mrf.mxu1 }
 0x104   : > { %v915_v60 = vmax.f32 %v891_v54, 0.0  ;;  %v790_v61 = vadd.f32 %v789_v46, %v750_v58 }
 0x105   : > { %v892_v5 = vadd.f32 %v1819_v49, %v862_v1 }
 0x106   : > { %v935_v3 = vpack.c.bf16 %v915_v60, %v914_v59  ;;  %v829_v8 = vadd.f32 %v828_v48, %v790_v61 }
 0x107   : > { %v916_v12 = vmax.f32 %v892_v5, 0.0 }
 0x108   : > { %947 = vst [vmem:[%s1833_s7 + $0x18] sm:$0xff] %v935_v3  ;;  %v863_v30 = vmul.f32 %v1821_v51, %v829_v8  ;;  %v713_v6 = vpop.f32.mrf.mxu2 }
 0x109   : > { %v714_v10 = vadd.f32 %v713_v6, %v675_v31 }
 0x10a   : > { %v893_v63 = vadd.f32 %v1824_v56, %v863_v30  ;;  %v794_v15 = vpop.f32.mrf.mxu0 }
 0x10b   : > { %v752_v11 = vpop.f32.mrf.mxu3  ;;  %v864_v4 = vmul.f32 %v1814_v44, %v714_v10  ;;  %v833_v9 = vpop.f32.mrf.mxu1 }
 0x10c   : > { %v917_v13 = vmax.f32 %v893_v63, 0.0  ;;  %v792_v14 = vadd.f32 %v791_v62, %v752_v11 }
 0x10d   : > { %v894_v19 = vadd.f32 %v1819_v49, %v864_v4 }
 0x10e   : > { %v936_v17 = vpack.c.bf16 %v917_v13, %v916_v12  ;;  %v831_v18 = vadd.f32 %v830_v2, %v792_v14 }
 0x10f   : > { %v918_v27 = vmax.f32 %v894_v19, 0.0 }
 0x110   : > { %948 = vst [vmem:[%s1833_s7 + $0x20] sm:$0xff] %v936_v17  ;;  %v865_v35 = vmul.f32 %v1821_v51, %v831_v18  ;;  %v716_v7 = vpop.f32.mrf.mxu2 }
 0x111   : > { %v717_v22 = vadd.f32 %v716_v7, %v1787_v16 }
 0x112   : > { %v895_v36 = vadd.f32 %v1824_v56, %v865_v35  ;;  %v796_v33 = vpop.f32.mrf.mxu0 }
 0x113   : > { %v755_v23 = vpop.f32.mrf.mxu3  ;;  %v866_v0 = vmul.f32 %v1814_v44, %v717_v22  ;;  %v835_v21 = vpop.f32.mrf.mxu1 }
 0x114   : > { %v919_v28 = vmax.f32 %v895_v36, 0.0  ;;  %v795_v32 = vadd.f32 %v794_v15, %v755_v23 }
 0x115   : > { %v896_v40 = vadd.f32 %v1819_v49, %v866_v0 }
 0x116   : > { %v937_v37 = vpack.c.bf16 %v919_v28, %v918_v27  ;;  %v834_v38 = vadd.f32 %v833_v9, %v795_v32 }
 0x117   : > { %v920_v46 = vmax.f32 %v896_v40, 0.0 }
 0x118   : > { %949 = vst [vmem:[%s1833_s7 + $0x28] sm:$0xff] %v937_v37  ;;  %v867_v41 = vmul.f32 %v1821_v51, %v834_v38  ;;  %v718_v43 = vpop.f32.mrf.mxu2 }
 0x119   : > { %v719_v16 = vadd.f32 %v718_v43, %v1789_v20 }
 0x11a   : > { %v897_v42 = vadd.f32 %v1824_v56, %v867_v41  ;;  %v799_v52 = vpop.f32.mrf.mxu0 }
 0x11b   : > { %v757_v45 = vpop.f32.mrf.mxu3  ;;  %v868_v50 = vmul.f32 %v1814_v44, %v719_v16  ;;  %v838_v26 = vpop.f32.mrf.mxu1 }
 0x11c   : > { %v921_v47 = vmax.f32 %v897_v42, 0.0  ;;  %v797_v48 = vadd.f32 %v796_v33, %v757_v45 }
 0x11d   : > { %v898_v54 = vadd.f32 %v1819_v49, %v868_v50 }
 0x11e   : > { %v938_v53 = vpack.c.bf16 %v921_v47, %v920_v46  ;;  %v836_v25 = vadd.f32 %v835_v21, %v797_v48 }
 0x11f   : > { %v922_v60 = vmax.f32 %v898_v54, 0.0 }
 0x120   : > { %950 = vst [vmem:[%s1833_s7 + $0x30] sm:$0xff] %v938_v53  ;;  %v869_v55 = vmul.f32 %v1821_v51, %v836_v25  ;;  %v721_v58 = vpop.f32.mrf.mxu2 }
 0x121   : > { %v722_v20 = vadd.f32 %v721_v58, %v1791_v24 }
 0x122   : > { %v899_v57 = vadd.f32 %v1824_v56, %v869_v55  ;;  %v801_v8 = vpop.f32.mrf.mxu0 }
 0x123   : > { %v760_v59 = vpop.f32.mrf.mxu3  ;;  %v870_v1 = vmul.f32 %v1814_v44, %v722_v20  ;;  %v840_v31 = vpop.f32.mrf.mxu1 }
 0x124   : > { %v923_v61 = vmax.f32 %v899_v57, 0.0  ;;  %v800_v62 = vadd.f32 %v799_v52, %v760_v59 }
 0x125   : > { %v900_v5 = vadd.f32 %v1819_v49, %v870_v1 }
 0x126   : > { %v939_v2 = vpack.c.bf16 %v923_v61, %v922_v60  ;;  %v839_v3 = vadd.f32 %v838_v26, %v800_v62 }
 0x127   : > { %v924_v11 = vmax.f32 %v900_v5, 0.0 }
 0x128   : > { %951 = vst [vmem:[%s1833_s7 + $0x38] sm:$0xff] %v939_v2  ;;  %v871_v30 = vmul.f32 %v1821_v51, %v839_v3  ;;  %v723_v6 = vpop.f32.mrf.mxu2 }
 0x129   : > { %v724_v24 = vadd.f32 %v723_v6, %v1797_v29 }
 0x12a   : > { %v901_v63 = vadd.f32 %v1824_v56, %v871_v30  ;;  %v804_v18 = vpop.f32.mrf.mxu0 }
 0x12b   : > { %v762_v10 = vpop.f32.mrf.mxu3  ;;  %v872_v14 = vmul.f32 %v1814_v44, %v724_v24  ;;  %v843_v36 = vpop.f32.mrf.mxu1 }
 0x12c   : > { %v925_v12 = vmax.f32 %v901_v63, 0.0  ;;  %v802_v13 = vadd.f32 %v801_v8, %v762_v10 }
 0x12d   : > { %v902_v9 = vadd.f32 %v1819_v49, %v872_v14 }
 0x12e   : > { %v940_v15 = vpack.c.bf16 %v925_v12, %v924_v11  ;;  %v841_v4 = vadd.f32 %v840_v31, %v802_v13 }
 0x12f   : > { %v926_v22 = vmax.f32 %v902_v9, 0.0 }
 0x130   : > { %952 = vst [vmem:[%s1833_s7 + $0x40] sm:$0xff] %v940_v15  ;;  %v873_v17 = vmul.f32 %v1821_v51, %v841_v4  ;;  %v726_v35 = vpop.f32.mrf.mxu2 }
 0x131   : > { %v727_v29 = vadd.f32 %v726_v35, %v1803_v34 }
 0x132   : > { %v903_v19 = vadd.f32 %v1824_v56, %v873_v17  ;;  %v806_v40 = vpop.f32.mrf.mxu0 }
 0x133   : > { %v765_v7 = vpop.f32.mrf.mxu3  ;;  %v874_v28 = vmul.f32 %v1814_v44, %v727_v29  ;;  %v845_v45 = vpop.f32.mrf.mxu1 }
 0x134   : > { %v927_v23 = vmax.f32 %v903_v19, 0.0  ;;  %v805_v27 = vadd.f32 %v804_v18, %v765_v7 }
 0x135   : > { %v904_v0 = vadd.f32 %v1819_v49, %v874_v28 }
 0x136   : > { %v941_v32 = vpack.c.bf16 %v927_v23, %v926_v22  ;;  %v844_v33 = vadd.f32 %v843_v36, %v805_v27 }
 0x137   : > { %v928_v42 = vmax.f32 %v904_v0, 0.0 }
 0x138   : > { %953 = vst [vmem:[%s1833_s7 + $0x48] sm:$0xff] %v941_v32  ;;  %v875_v21 = vmul.f32 %v1821_v51, %v844_v33  ;;  %v728_v38 = vpop.f32.mrf.mxu2 }
 0x139   : > { %v729_v34 = vadd.f32 %v728_v38, %v1809_v39 }
 0x13a   : > { %v905_v37 = vadd.f32 %v1824_v56, %v875_v21 }
 0x13b   : > { %v767_v41 = vpop.f32.mrf.mxu3  ;;  %v876_v46 = vmul.f32 %v1814_v44, %v729_v34 }
 0x13c   : > { %v929_v43 = vmax.f32 %v905_v37, 0.0  ;;  %v807_v16 = vadd.f32 %v806_v40, %v767_v41 }
 0x13d   : > { %v906_v50 = vadd.f32 %v1819_v49, %v876_v46 }
 0x13e   : > { %v942_v47 = vpack.c.bf16 %v929_v43, %v928_v42  ;;  %v846_v48 = vadd.f32 %v845_v45, %v807_v16 }
 0x13f   : > { %v930_v25 = vmax.f32 %v906_v50, 0.0 }
 0x140   : > { %954 = vst [vmem:[%s1833_s7 + $0x50] sm:$0xff] %v942_v47  ;;  %v877_v52 = vmul.f32 %v1821_v51, %v846_v48 }
 0x142   : > { %v907_v53 = vadd.f32 %v1824_v56, %v877_v52 }
 0x144   : > { %v931_v26 = vmax.f32 %v907_v53, 0.0 }
 0x146   : > { %v943_v39 = vpack.c.bf16 %v931_v26, %v930_v25 }
 0x148   : > { %955 = vst [vmem:[%s1833_s7 + $0x58] sm:$0xff] %v943_v39 }
 0x149 PF: > { %s14_s15 = sadd.s32 1, %s1386_s15  }
 0x14a   : > { %p11_p4 = scmp.ge.s32.totalorder %s14_s15, 4  }
 0x14c   :  { %13 = sbr.rel (!%p11_p4) target bundleno = 1 (0x1), region = 66 }

// kernel: acgan_generator_forward.7
= control target key start
LH: loop header
LB: loop body
LE: loop exit
PB: predicated region body
PF: predicated region fallthrough
CT: control target
= control target key end

     0   :  { %s1400_s15 = smov 0   ;;  %s1682_s0 = inlined_call_operand.vmem [shape: bf16[608,256], index: 0, kind: input, shape index: {}]   ;;  %s1683_s1 = inlined_call_operand.vmem [shape: bf16[256,128], index: 1, kind: input, shape index: {}]   ;;  %s1684_s2 = inlined_call_operand.vmem [shape: f32[1,128], index: 2, kind: input, shape index: {}]   ;;  %s1685_s3 = inlined_call_operand.vmem [shape: f32[1,128], index: 3, kind: input, shape index: {}]   ;;  %s1686_s4 = inlined_call_operand.vmem [shape: f32[608,128], index: 4, kind: output, shape index: {}]  }
   0x1 LB: > { %s984_s16 = sadd.s32 4294967295, %s1373_s15   ;;  %p988_p0 = scmp.ge.s32.totalorder %s1373_s15, 1  ;;  %s1373_s15 = sphi %s1400_s15, %s14_s15  }
   0x2   : > { %p164_p1 = scmp.lt.s32.totalorder %s1373_s15, 3 }
   0x4   : > { %p165_p2 = pnand %p988_p0, %p164_p1 }
   0x5   : > { %s191_s29 = smul.u32 (!%p165_p2), 38, %s984_s16 }
   0x6   : > { %168 = sbr.rel (%p165_p2) target bundleno = 341 (0x155), region = 36 }
   0x7   : > { %p192_p3 = scmp.lt.s32.totalorder (!%p165_p2), %s191_s29, 75 }
   0xb   : > { %v1256_v0 = vld [vmem:[%s1683_s1 + $0x38] sm:$0xff]  ;;  %v1255_v2 = vld [vmem:[%s1683_s1 + $0x30] sm:$0xff]  ;;  %v1254_v4 = vld [vmem:[%s1683_s1 + $0x28] sm:$0xff]  ;;  %s1688_s29 = smov (!%p192_p3, %s191_s29), 75 }
   0xc   : > { %v1264_v1 = vld [vmem:[%s1683_s1 + $0x78] sm:$0xff]  ;;  %560 = vmatpush.bf16.msra.mxu0 %v1256_v0  ;;  %1265 = vmatpush.bf16.msra.mxu2 %v1256_v0  ;;  %v1263_v3 = vld [vmem:[%s1683_s1 + $0x70] sm:$0xff]  ;;  %v1262_v5 = vld [vmem:[%s1683_s1 + $0x68] sm:$0xff]  ;;  %s1210_s17 = sshll.u32 %s1688_s29, 3 }
   0xd   : > { %664 = vmatpush.bf16.msra.mxu1 %v1264_v1  ;;  %1273 = vmatpush.bf16.msra.mxu3 %v1264_v1  ;;  %v1253_v6 = vld [vmem:[%s1683_s1 + $0x20] sm:$0xff]  ;;  %v1252_v8 = vld [vmem:[%s1683_s1 + $0x18] sm:$0xff]  ;;  %v1251_v10 = vld [vmem:[%s1683_s1 + $0x10] sm:$0xff]  ;;  %s1455_s22 = scalar_lea.vmem %s1682_s0, %s1210_s17  ;;  %s1557_s10 = scalar_lea.vmem %s1686_s4, %s1210_s17 }
   0xe   : > { %v1261_v7 = vld [vmem:[%s1683_s1 + $0x60] sm:$0xff]  ;;  %v1260_v9 = vld [vmem:[%s1683_s1 + $0x58] sm:$0xff]  ;;  %v1259_v11 = vld [vmem:[%s1683_s1 + $0x50] sm:$0xff] }
   0xf   : > { %v1250_v12 = vld [vmem:[%s1683_s1 + $0x8] sm:$0xff]  ;;  %v1249_v14 = vld [vmem:[%s1683_s1] sm:$0xff]  ;;  %v1066_v18 = vld [vmem:[%s1455_s22 + $0x90] sm:$0xf] }
  0x10   : > { %561 = vmatpush.bf16.msra.mxu0 %v1255_v2  ;;  %1266 = vmatpush.bf16.msra.mxu2 %v1255_v2  ;;  %v1258_v13 = vld [vmem:[%s1683_s1 + $0x48] sm:$0xff]  ;;  %v1257_v15 = vld [vmem:[%s1683_s1 + $0x40] sm:$0xff]  ;;  %v1230_v19 = vld [vmem:[%s1455_s22 + $0x94] sm:$0xf0] }
  0x11   : > { %665 = vmatpush.bf16.msra.mxu1 %v1263_v3  ;;  %1274 = vmatpush.bf16.msra.mxu3 %v1263_v3  ;;  %v994_v16 = vld [vmem:[%s1455_s22] sm:$0xf]  ;;  %v1212_v17 = vld [vmem:[%s1455_s22 + $0x4] sm:$0xf0]  ;;  %v1211_v20 = vld [vmem:[%s1455_s22 + $0x4] sm:$0xf]  ;;  %v1067_v25 = vor.u32 %v1230_v19, %v1066_v18 }
  0x12   : > { %v996_v21 = vld [vmem:[%s1455_s22 + $0x8] sm:$0xf0]  ;;  %v1231_v22 = vld [vmem:[%s1455_s22 + $0xa4] sm:$0xf]  ;;  %v995_v24 = vor.u32 %v1212_v17, %v994_v16  ;;  %v1002_v28 = vld [vmem:[%s1455_s22 + $0x10] sm:$0xf] }
  0x13   : > { %v1076_v23 = vld [vmem:[%s1455_s22 + $0xa8] sm:$0xf0]  ;;  %v999_v26 = vor.u32 %v1211_v20, %v996_v21  ;;  %v1214_v29 = vld [vmem:[%s1455_s22 + $0x14] sm:$0xf0]  ;;  %v1074_v30 = vld [vmem:[%s1455_s22 + $0xa0] sm:$0xf] }
  0x14   : > { %562 = vmatpush.bf16.msra.mxu0 %v1254_v4  ;;  %1267 = vmatpush.bf16.msra.mxu2 %v1254_v4  ;;  %v1079_v27 = vor.u32 %v1231_v22, %v1076_v23  ;;  %v1232_v31 = vld [vmem:[%s1455_s22 + $0xa4] sm:$0xf0]  ;;  %v1213_v32 = vld [vmem:[%s1455_s22 + $0x14] sm:$0xf]  ;;  %v1004_v33 = vld [vmem:[%s1455_s22 + $0x18] sm:$0xf0]  ;;  %v1003_v36 = vor.u32 %v1214_v29, %v1002_v28 }
  0x15   : > { %666 = vmatpush.bf16.msra.mxu1 %v1262_v5  ;;  %1275 = vmatpush.bf16.msra.mxu3 %v1262_v5  ;;  %v1233_v34 = vld [vmem:[%s1455_s22 + $0xb4] sm:$0xf]  ;;  %v1084_v35 = vld [vmem:[%s1455_s22 + $0xb8] sm:$0xf0]  ;;  %v1075_v37 = vor.u32 %v1232_v31, %v1074_v30  ;;  %v1007_v38 = vor.u32 %v1213_v32, %v1004_v33  ;;  %v1010_v40 = vld [vmem:[%s1455_s22 + $0x20] sm:$0xf] }
  0x16   : > { %v1087_v39 = vor.u32 %v1233_v34, %v1084_v35  ;;  %v1216_v41 = vld [vmem:[%s1455_s22 + $0x24] sm:$0xf0]  ;;  %v1082_v42 = vld [vmem:[%s1455_s22 + $0xb0] sm:$0xf]  ;;  %v1234_v43 = vld [vmem:[%s1455_s22 + $0xb4] sm:$0xf0] }
  0x17   : > { %v1215_v44 = vld [vmem:[%s1455_s22 + $0x24] sm:$0xf]  ;;  %v1012_v45 = vld [vmem:[%s1455_s22 + $0x28] sm:$0xf0]  ;;  %v1011_v48 = vor.u32 %v1216_v41, %v1010_v40  ;;  %v1083_v49 = vor.u32 %v1234_v43, %v1082_v42  ;;  %v1018_v52 = vld [vmem:[%s1455_s22 + $0x30] sm:$0xf] }
  0x18   : > { %563 = vmatpush.bf16.msra.mxu0 %v1253_v6  ;;  %1268 = vmatpush.bf16.msra.mxu2 %v1253_v6  ;;  %v1235_v46 = vld [vmem:[%s1455_s22 + $0xc4] sm:$0xf]  ;;  %v1092_v47 = vld [vmem:[%s1455_s22 + $0xc8] sm:$0xf0]  ;;  %v1015_v50 = vor.u32 %v1215_v44, %v1012_v45  ;;  %v1218_v53 = vld [vmem:[%s1455_s22 + $0x34] sm:$0xf0] }
  0x19   : > { %667 = vmatpush.bf16.msra.mxu1 %v1261_v7  ;;  %1276 = vmatpush.bf16.msra.mxu3 %v1261_v7  ;;  %v1095_v51 = vor.u32 %v1235_v46, %v1092_v47  ;;  %v1090_v54 = vld [vmem:[%s1455_s22 + $0xc0] sm:$0xf]  ;;  %v1236_v55 = vld [vmem:[%s1455_s22 + $0xc4] sm:$0xf0]  ;;  %v1217_v56 = vld [vmem:[%s1455_s22 + $0x34] sm:$0xf]  ;;  %v1019_v60 = vor.u32 %v1218_v53, %v1018_v52 }
  0x1a   : > { %v1020_v57 = vld [vmem:[%s1455_s22 + $0x38] sm:$0xf0]  ;;  %v1237_v58 = vld [vmem:[%s1455_s22 + $0xd4] sm:$0xf]  ;;  %v1091_v61 = vor.u32 %v1236_v55, %v1090_v54  ;;  %v1026_v0 = vld [vmem:[%s1455_s22 + $0x40] sm:$0xf] }
  0x1b   : > { %v1100_v59 = vld [vmem:[%s1455_s22 + $0xd8] sm:$0xf0]  ;;  %v1023_v62 = vor.u32 %v1217_v56, %v1020_v57  ;;  %v1220_v1 = vld [vmem:[%s1455_s22 + $0x44] sm:$0xf0]  ;;  %v1098_v2 = vld [vmem:[%s1455_s22 + $0xd0] sm:$0xf] }
  0x1c   : > { %564 = vmatpush.bf16.msra.mxu0 %v1252_v8  ;;  %1269 = vmatpush.bf16.msra.mxu2 %v1252_v8  ;;  %v1103_v63 = vor.u32 %v1237_v58, %v1100_v59  ;;  %v1238_v3 = vld [vmem:[%s1455_s22 + $0xd4] sm:$0xf0]  ;;  %v1219_v4 = vld [vmem:[%s1455_s22 + $0x44] sm:$0xf]  ;;  %v1028_v5 = vld [vmem:[%s1455_s22 + $0x48] sm:$0xf0]  ;;  %v1027_v8 = vor.u32 %v1220_v1, %v1026_v0 }
  0x1d   : > { %668 = vmatpush.bf16.msra.mxu1 %v1260_v9  ;;  %1277 = vmatpush.bf16.msra.mxu3 %v1260_v9  ;;  %v1239_v6 = vld [vmem:[%s1455_s22 + $0xe4] sm:$0xf]  ;;  %v1108_v7 = vld [vmem:[%s1455_s22 + $0xe8] sm:$0xf0]  ;;  %v1099_v9 = vor.u32 %v1238_v3, %v1098_v2  ;;  %v1221_v16 = vld [vmem:[%s1455_s22 + $0x54] sm:$0xf] }
  0x1e   : > { %v1036_v17 = vld [vmem:[%s1455_s22 + $0x58] sm:$0xf0]  ;;  %v1241_v18 = vld [vmem:[%s1455_s22 + $0xf4] sm:$0xf]  ;;  %v1223_v28 = vld [vmem:[%s1455_s22 + $0x64] sm:$0xf] }
  0x1f   : > { %v1116_v19 = vld [vmem:[%s1455_s22 + $0xf8] sm:$0xf0]  ;;  %v1039_v22 = vor.u32 %v1221_v16, %v1036_v17  ;;  %v1044_v29 = vld [vmem:[%s1455_s22 + $0x68] sm:$0xf0]  ;;  %v1243_v30 = vld [vmem:[%s1455_s22 + $0x104] sm:$0xf] }
  0x20   : > { %565 = vmatpush.bf16.msra.mxu0 %v1251_v10  ;;  %1270 = vmatpush.bf16.msra.mxu2 %v1251_v10  ;;  %v1031_v10 = vor.u32 %v1219_v4, %v1028_v5  ;;  %v1119_v23 = vor.u32 %v1241_v18, %v1116_v19  ;;  %v1124_v31 = vld [vmem:[%s1455_s22 + $0x108] sm:$0xf0]  ;;  %v1047_v34 = vor.u32 %v1223_v28, %v1044_v29  ;;  %v1225_v40 = vld [vmem:[%s1455_s22 + $0x74] sm:$0xf]  ;;  %v1052_v41 = vld [vmem:[%s1455_s22 + $0x78] sm:$0xf0] }
  0x21   : > { %669 = vmatpush.bf16.msra.mxu1 %v1259_v11  ;;  %1278 = vmatpush.bf16.msra.mxu3 %v1259_v11  ;;  %v1111_v11 = vor.u32 %v1239_v6, %v1108_v7  ;;  %v1127_v35 = vor.u32 %v1243_v30, %v1124_v31  ;;  %v1245_v42 = vld [vmem:[%s1455_s22 + $0x114] sm:$0xf]  ;;  %v1132_v43 = vld [vmem:[%s1455_s22 + $0x118] sm:$0xf0]  ;;  %v1055_v46 = vor.u32 %v1225_v40, %v1052_v41  ;;  %v1227_v52 = vld [vmem:[%s1455_s22 + $0x84] sm:$0xf] }
  0x22   : > { %v1135_v47 = vor.u32 %v1245_v42, %v1132_v43  ;;  %v1060_v53 = vld [vmem:[%s1455_s22 + $0x88] sm:$0xf0]  ;;  %v1247_v54 = vld [vmem:[%s1455_s22 + $0x124] sm:$0xf]  ;;  %v1541_v59 = vld [vmem:[%s1684_s2] ss:$0 sm:$0xff] }
  0x23   : > { %v1140_v55 = vld [vmem:[%s1455_s22 + $0x128] sm:$0xf0]  ;;  %v1546_v0 = vld [vmem:[%s1685_s3] ss:$0 sm:$0xff] }
  0x24   : > { %566 = vmatpush.bf16.msra.mxu0 %v1250_v12  ;;  %1271 = vmatpush.bf16.msra.mxu2 %v1250_v12  ;;  %v1034_v12 = vld [vmem:[%s1455_s22 + $0x50] sm:$0xf] }
  0x25   : > { %670 = vmatpush.bf16.msra.mxu1 %v1258_v13  ;;  %1279 = vmatpush.bf16.msra.mxu3 %v1258_v13  ;;  %v1222_v13 = vld [vmem:[%s1455_s22 + $0x54] sm:$0xf0] }
  0x26   : > { %v1035_v20 = vor.u32 %v1222_v13, %v1034_v12  ;;  %v1068_v12 = vld [vmem:[%s1455_s22 + $0x98] sm:$0xf0] }
  0x28   : > { %567 = vmatpush.bf16.msra.mxu0 %v1249_v14  ;;  %1272 = vmatpush.bf16.msra.mxu2 %v1249_v14  ;;  %v1106_v14 = vld [vmem:[%s1455_s22 + $0xe0] sm:$0xf] }
  0x29   : > { %671 = vmatpush.bf16.msra.mxu1 %v1257_v15  ;;  %1280 = vmatpush.bf16.msra.mxu3 %v1257_v15  ;;  %v1240_v15 = vld [vmem:[%s1455_s22 + $0xe4] sm:$0xf0] }
  0x2a   : > { %v1107_v21 = vor.u32 %v1240_v15, %v1106_v14 }
  0x2b   : > { %568 = vmatmul.bf16.vlgmr.msra.gmra.mxu0 %v995_v24  ;;  %613 = vmatmul.bf16.vlgmr.msra.gmra.mxu2 %v1067_v25  ;;  %v1042_v24 = vld [vmem:[%s1455_s22 + $0x60] sm:$0xf]  ;;  %v1224_v25 = vld [vmem:[%s1455_s22 + $0x64] sm:$0xf0] }
  0x2c   : > { %672 = vmatmul.bf16.vlgmr.msra.gmra.mxu1 %v999_v26  ;;  %722 = vmatmul.bf16.vlgmr.msra.gmra.mxu3 %v1079_v27  ;;  %v1114_v26 = vld [vmem:[%s1455_s22 + $0xf0] sm:$0xf]  ;;  %v1242_v27 = vld [vmem:[%s1455_s22 + $0xf4] sm:$0xf0]  ;;  %v1043_v32 = vor.u32 %v1224_v25, %v1042_v24 }
  0x2d   : > { %v1115_v33 = vor.u32 %v1242_v27, %v1114_v26 }
  0x3b   : > { %573 = vmatmul.bf16.gmra.mxu0 %v1003_v36  ;;  %618 = vmatmul.bf16.gmra.mxu2 %v1075_v37  ;;  %v1050_v36 = vld [vmem:[%s1455_s22 + $0x70] sm:$0xf]  ;;  %v1226_v37 = vld [vmem:[%s1455_s22 + $0x74] sm:$0xf0] }
  0x3c   : > { %677 = vmatmul.bf16.gmra.mxu1 %v1007_v38  ;;  %727 = vmatmul.bf16.gmra.mxu3 %v1087_v39  ;;  %v1122_v38 = vld [vmem:[%s1455_s22 + $0x100] sm:$0xf]  ;;  %v1244_v39 = vld [vmem:[%s1455_s22 + $0x104] sm:$0xf0]  ;;  %v1051_v44 = vor.u32 %v1226_v37, %v1050_v36 }
  0x3d   : > { %v1123_v45 = vor.u32 %v1244_v39, %v1122_v38 }
  0x4b   : > { %578 = vmatmul.bf16.gmra.mxu0 %v1011_v48  ;;  %623 = vmatmul.bf16.gmra.mxu2 %v1083_v49  ;;  %v1058_v48 = vld [vmem:[%s1455_s22 + $0x80] sm:$0xf]  ;;  %v1228_v49 = vld [vmem:[%s1455_s22 + $0x84] sm:$0xf0] }
  0x4c   : > { %682 = vmatmul.bf16.gmra.mxu1 %v1015_v50  ;;  %732 = vmatmul.bf16.gmra.mxu3 %v1095_v51  ;;  %v1130_v50 = vld [vmem:[%s1455_s22 + $0x110] sm:$0xf]  ;;  %v1246_v51 = vld [vmem:[%s1455_s22 + $0x114] sm:$0xf0]  ;;  %v1059_v56 = vor.u32 %v1228_v49, %v1058_v48 }
  0x4d   : > { %v1131_v57 = vor.u32 %v1246_v51, %v1130_v50 }
  0x5b   : > { %583 = vmatmul.bf16.gmra.mxu0 %v1019_v60  ;;  %628 = vmatmul.bf16.gmra.mxu2 %v1091_v61  ;;  %v1063_v60 = vor.u32 %v1227_v52, %v1060_v53  ;;  %v1143_v61 = vor.u32 %v1247_v54, %v1140_v55 }
  0x5c   : > { %687 = vmatmul.bf16.gmra.mxu1 %v1023_v62  ;;  %737 = vmatmul.bf16.gmra.mxu3 %v1103_v63 }
  0x6b   : > { %588 = vmatmul.bf16.gmra.mxu0 %v1027_v8  ;;  %633 = vmatmul.bf16.gmra.mxu2 %v1099_v9  ;;  %v1138_v9 = vld [vmem:[%s1455_s22 + $0x120] sm:$0xf] }
  0x6c   : > { %692 = vmatmul.bf16.gmra.mxu1 %v1031_v10  ;;  %742 = vmatmul.bf16.gmra.mxu3 %v1111_v11  ;;  %v1248_v10 = vld [vmem:[%s1455_s22 + $0x124] sm:$0xf0]  ;;  %v1229_v11 = vld [vmem:[%s1455_s22 + $0x94] sm:$0xf] }
  0x6d   : > { %v1139_v16 = vor.u32 %v1248_v10, %v1138_v9  ;;  %v1071_v19 = vor.u32 %v1229_v11, %v1068_v12 }
  0x7b   : > { %593 = vmatmul.bf16.gmra.mxu0 %v1035_v20  ;;  %638 = vmatmul.bf16.gmra.mxu2 %v1107_v21 }
  0x7c   : > { %697 = vmatmul.bf16.gmra.mxu1 %v1039_v22  ;;  %747 = vmatmul.bf16.gmra.mxu3 %v1119_v23 }
  0x8b   : > { %598 = vmatmul.bf16.gmra.mxu0 %v1043_v32  ;;  %643 = vmatmul.bf16.gmra.mxu2 %v1115_v33 }
  0x8c   : > { %702 = vmatmul.bf16.gmra.mxu1 %v1047_v34  ;;  %752 = vmatmul.bf16.gmra.mxu3 %v1127_v35 }
  0x9b   : > { %603 = vmatmul.bf16.gmra.mxu0 %v1051_v44  ;;  %648 = vmatmul.bf16.gmra.mxu2 %v1123_v45 }
  0x9c   : > { %707 = vmatmul.bf16.gmra.mxu1 %v1055_v46  ;;  %757 = vmatmul.bf16.gmra.mxu3 %v1135_v47 }
  0xa8   : > { %v569_v58 = vpop.f32.mrf.mxu0 }
  0xa9   : > { %v673_v62 = vpop.f32.mrf.mxu1 }
  0xaa   : > { %v674_v63 = vadd.f32 %v673_v62, %v569_v58 }
  0xab   : > { %608 = vmatmul.bf16.gmra.mxu0 %v1059_v56  ;;  %653 = vmatmul.bf16.gmra.mxu2 %v1131_v57 }
  0xac   : > { %v772_v1 = vmul.f32 %v1541_v59, %v674_v63  ;;  %712 = vmatmul.bf16.gmra.mxu1 %v1063_v60  ;;  %762 = vmatmul.bf16.gmra.mxu3 %v1143_v61 }
  0xae   : > { %v814_v2 = vadd.f32 %v1546_v0, %v772_v1  ;;  %v1550_v3 = vpop.f32.mrf.mxu2 }
  0xaf   : > { %v723_v4 = vpop.f32.mrf.mxu3 }
  0xb0   : > { %1291 = vtanh.f32 %v814_v2  ;;  %v571_v5 = vpop.f32.mrf.mxu0 }
  0xb1   : > { %v675_v6 = vpop.f32.mrf.mxu1 }
  0xb2   : > { %v676_v7 = vadd.f32 %v675_v6, %v571_v5 }
  0xb4   : > { %v773_v8 = vmul.f32 %v1541_v59, %v676_v7 }
  0xb6   : > { %v1292_v13 = vpop.eup %1291  ;;  %v815_v14 = vadd.f32 %v1546_v0, %v773_v8  ;;  %v1565_v15 = vpop.f32.mrf.mxu2 }
  0xb7   : > { %890 = vst [vmem:[%s1557_s10] sm:$0xff] %v1292_v13  ;;  %v725_v17 = vpop.f32.mrf.mxu3 }
  0xb8   : > { %1293 = vtanh.f32 %v815_v14  ;;  %v574_v18 = vpop.f32.mrf.mxu0 }
  0xb9   : > { %v678_v20 = vpop.f32.mrf.mxu1 }
  0xba   : > { %v679_v21 = vadd.f32 %v678_v20, %v574_v18 }
  0xbb   : > { %658 = vmatmul.bf16.gmra.mxu2 %v1139_v16 }
  0xbc   : > { %v774_v22 = vmul.f32 %v1541_v59, %v679_v21  ;;  %717 = vmatmul.bf16.gmra.mxu1 %v1071_v19 }
  0xbe   : > { %v1294_v23 = vpop.eup %1293  ;;  %v816_v24 = vadd.f32 %v1546_v0, %v774_v22  ;;  %v619_v25 = vpop.f32.mrf.mxu2 }
  0xbf   : > { %891 = vst [vmem:[%s1557_s10 + $0x8] sm:$0xff] %v1294_v23  ;;  %v724_v26 = vadd.f32 %v723_v4, %v619_v25  ;;  %v728_v27 = vpop.f32.mrf.mxu3 }
  0xc0   : > { %1295 = vtanh.f32 %v816_v24  ;;  %v576_v28 = vpop.f32.mrf.mxu0 }
  0xc1   : > { %v792_v29 = vmul.f32 %v1541_v59, %v724_v26  ;;  %v680_v30 = vpop.f32.mrf.mxu1 }
  0xc2   : > { %v681_v31 = vadd.f32 %v680_v30, %v576_v28 }
  0xc3   : > { %v834_v32 = vadd.f32 %v1546_v0, %v792_v29 }
  0xc4   : > { %v775_v33 = vmul.f32 %v1541_v59, %v681_v31 }
  0xc5   : > { %1297 = vtanh.f32 %v834_v32 }
  0xc6   : > { %v1296_v34 = vpop.eup %1295  ;;  %v817_v35 = vadd.f32 %v1546_v0, %v775_v33  ;;  %v621_v36 = vpop.f32.mrf.mxu2 }
  0xc7   : > { %892 = vst [vmem:[%s1557_s10 + $0x10] sm:$0xff] %v1296_v34  ;;  %v726_v37 = vadd.f32 %v725_v17, %v621_v36  ;;  %v730_v38 = vpop.f32.mrf.mxu3 }
  0xc8   : > { %1299 = vtanh.f32 %v817_v35  ;;  %v579_v39 = vpop.f32.mrf.mxu0 }
  0xc9   : > { %v793_v40 = vmul.f32 %v1541_v59, %v726_v37  ;;  %v683_v41 = vpop.f32.mrf.mxu1 }
  0xca   : > { %v684_v42 = vadd.f32 %v683_v41, %v579_v39 }
  0xcb   : > { %v1298_v43 = vpop.eup %1297  ;;  %v835_v44 = vadd.f32 %v1546_v0, %v793_v40 }
  0xcc   : > { %910 = vst [vmem:[%s1557_s10 + $0xa0] sm:$0xff] %v1298_v43  ;;  %v776_v45 = vmul.f32 %v1541_v59, %v684_v42 }
  0xcd   : > { %1301 = vtanh.f32 %v835_v44 }
  0xce   : > { %v1300_v46 = vpop.eup %1299  ;;  %v818_v47 = vadd.f32 %v1546_v0, %v776_v45  ;;  %v624_v48 = vpop.f32.mrf.mxu2 }
  0xcf   : > { %893 = vst [vmem:[%s1557_s10 + $0x18] sm:$0xff] %v1300_v46  ;;  %v729_v49 = vadd.f32 %v728_v27, %v624_v48  ;;  %v733_v50 = vpop.f32.mrf.mxu3 }
  0xd0   : > { %1303 = vtanh.f32 %v818_v47  ;;  %v581_v51 = vpop.f32.mrf.mxu0 }
  0xd1   : > { %v794_v52 = vmul.f32 %v1541_v59, %v729_v49  ;;  %v685_v53 = vpop.f32.mrf.mxu1 }
  0xd2   : > { %v686_v54 = vadd.f32 %v685_v53, %v581_v51 }
  0xd3   : > { %v1302_v55 = vpop.eup %1301  ;;  %v836_v56 = vadd.f32 %v1546_v0, %v794_v52 }
  0xd4   : > { %911 = vst [vmem:[%s1557_s10 + $0xa8] sm:$0xff] %v1302_v55  ;;  %v777_v57 = vmul.f32 %v1541_v59, %v686_v54 }
  0xd5   : > { %1305 = vtanh.f32 %v836_v56 }
  0xd6   : > { %v1304_v58 = vpop.eup %1303  ;;  %v819_v60 = vadd.f32 %v1546_v0, %v777_v57  ;;  %v626_v61 = vpop.f32.mrf.mxu2 }
  0xd7   : > { %894 = vst [vmem:[%s1557_s10 + $0x20] sm:$0xff] %v1304_v58  ;;  %v731_v62 = vadd.f32 %v730_v38, %v626_v61  ;;  %v735_v63 = vpop.f32.mrf.mxu3 }
  0xd8   : > { %1307 = vtanh.f32 %v819_v60  ;;  %v584_v1 = vpop.f32.mrf.mxu0 }
  0xd9   : > { %v795_v2 = vmul.f32 %v1541_v59, %v731_v62  ;;  %v688_v4 = vpop.f32.mrf.mxu1 }
  0xda   : > { %v689_v5 = vadd.f32 %v688_v4, %v584_v1 }
  0xdb   : > { %v1306_v6 = vpop.eup %1305  ;;  %v837_v7 = vadd.f32 %v1546_v0, %v795_v2 }
  0xdc   : > { %912 = vst [vmem:[%s1557_s10 + $0xb0] sm:$0xff] %v1306_v6  ;;  %v778_v8 = vmul.f32 %v1541_v59, %v689_v5 }
  0xdd   : > { %1309 = vtanh.f32 %v837_v7 }
  0xde   : > { %v1308_v9 = vpop.eup %1307  ;;  %v820_v10 = vadd.f32 %v1546_v0, %v778_v8  ;;  %v629_v11 = vpop.f32.mrf.mxu2 }
  0xdf   : > { %895 = vst [vmem:[%s1557_s10 + $0x28] sm:$0xff] %v1308_v9  ;;  %v734_v12 = vadd.f32 %v733_v50, %v629_v11  ;;  %v738_v13 = vpop.f32.mrf.mxu3 }
  0xe0   : > { %1311 = vtanh.f32 %v820_v10  ;;  %v586_v14 = vpop.f32.mrf.mxu0 }
  0xe1   : > { %v796_v16 = vmul.f32 %v1541_v59, %v734_v12  ;;  %v690_v17 = vpop.f32.mrf.mxu1 }
  0xe2   : > { %v691_v18 = vadd.f32 %v690_v17, %v586_v14 }
  0xe3   : > { %v1310_v19 = vpop.eup %1309  ;;  %v838_v20 = vadd.f32 %v1546_v0, %v796_v16 }
  0xe4   : > { %913 = vst [vmem:[%s1557_s10 + $0xb8] sm:$0xff] %v1310_v19  ;;  %v779_v21 = vmul.f32 %v1541_v59, %v691_v18 }
  0xe5   : > { %1313 = vtanh.f32 %v838_v20 }
  0xe6   : > { %v1312_v22 = vpop.eup %1311  ;;  %v821_v23 = vadd.f32 %v1546_v0, %v779_v21  ;;  %v631_v24 = vpop.f32.mrf.mxu2 }
  0xe7   : > { %896 = vst [vmem:[%s1557_s10 + $0x30] sm:$0xff] %v1312_v22  ;;  %v736_v25 = vadd.f32 %v735_v63, %v631_v24  ;;  %v740_v26 = vpop.f32.mrf.mxu3 }
  0xe8   : > { %1315 = vtanh.f32 %v821_v23  ;;  %v589_v27 = vpop.f32.mrf.mxu0 }
  0xe9   : > { %v797_v28 = vmul.f32 %v1541_v59, %v736_v25  ;;  %v693_v29 = vpop.f32.mrf.mxu1 }
  0xea   : > { %v694_v30 = vadd.f32 %v693_v29, %v589_v27 }
  0xeb   : > { %v1314_v31 = vpop.eup %1313  ;;  %v839_v32 = vadd.f32 %v1546_v0, %v797_v28 }
  0xec   : > { %914 = vst [vmem:[%s1557_s10 + $0xc0] sm:$0xff] %v1314_v31  ;;  %v780_v33 = vmul.f32 %v1541_v59, %v694_v30 }
  0xed   : > { %1317 = vtanh.f32 %v839_v32 }
  0xee   : > { %v1316_v34 = vpop.eup %1315  ;;  %v822_v35 = vadd.f32 %v1546_v0, %v780_v33  ;;  %v634_v36 = vpop.f32.mrf.mxu2 }
  0xef   : > { %897 = vst [vmem:[%s1557_s10 + $0x38] sm:$0xff] %v1316_v34  ;;  %v739_v37 = vadd.f32 %v738_v13, %v634_v36  ;;  %v743_v38 = vpop.f32.mrf.mxu3 }
  0xf0   : > { %1319 = vtanh.f32 %v822_v35  ;;  %v591_v39 = vpop.f32.mrf.mxu0 }
  0xf1   : > { %v798_v40 = vmul.f32 %v1541_v59, %v739_v37  ;;  %v695_v41 = vpop.f32.mrf.mxu1 }
  0xf2   : > { %v696_v42 = vadd.f32 %v695_v41, %v591_v39 }
  0xf3   : > { %v1318_v43 = vpop.eup %1317  ;;  %v840_v44 = vadd.f32 %v1546_v0, %v798_v40 }
  0xf4   : > { %915 = vst [vmem:[%s1557_s10 + $0xc8] sm:$0xff] %v1318_v43  ;;  %v781_v45 = vmul.f32 %v1541_v59, %v696_v42 }
  0xf5   : > { %1321 = vtanh.f32 %v840_v44 }
  0xf6   : > { %v1320_v46 = vpop.eup %1319  ;;  %v823_v47 = vadd.f32 %v1546_v0, %v781_v45  ;;  %v636_v48 = vpop.f32.mrf.mxu2 }
  0xf7   : > { %898 = vst [vmem:[%s1557_s10 + $0x40] sm:$0xff] %v1320_v46  ;;  %v741_v49 = vadd.f32 %v740_v26, %v636_v48  ;;  %v745_v50 = vpop.f32.mrf.mxu3 }
  0xf8   : > { %1323 = vtanh.f32 %v823_v47  ;;  %v594_v51 = vpop.f32.mrf.mxu0 }
  0xf9   : > { %v799_v52 = vmul.f32 %v1541_v59, %v741_v49  ;;  %v698_v53 = vpop.f32.mrf.mxu1 }
  0xfa   : > { %v699_v54 = vadd.f32 %v698_v53, %v594_v51 }
  0xfb   : > { %v1322_v55 = vpop.eup %1321  ;;  %v841_v56 = vadd.f32 %v1546_v0, %v799_v52 }
  0xfc   : > { %916 = vst [vmem:[%s1557_s10 + $0xd0] sm:$0xff] %v1322_v55  ;;  %v782_v57 = vmul.f32 %v1541_v59, %v699_v54 }
  0xfd   : > { %1325 = vtanh.f32 %v841_v56 }
  0xfe   : > { %v1324_v58 = vpop.eup %1323  ;;  %v824_v60 = vadd.f32 %v1546_v0, %v782_v57  ;;  %v639_v61 = vpop.f32.mrf.mxu2 }
  0xff   : > { %899 = vst [vmem:[%s1557_s10 + $0x48] sm:$0xff] %v1324_v58  ;;  %v744_v62 = vadd.f32 %v743_v38, %v639_v61  ;;  %v748_v1 = vpop.f32.mrf.mxu3 }
 0x100   : > { %1327 = vtanh.f32 %v824_v60  ;;  %v596_v63 = vpop.f32.mrf.mxu0 }
 0x101   : > { %v800_v2 = vmul.f32 %v1541_v59, %v744_v62  ;;  %v700_v4 = vpop.f32.mrf.mxu1 }
 0x102   : > { %v701_v5 = vadd.f32 %v700_v4, %v596_v63 }
 0x103   : > { %v1326_v6 = vpop.eup %1325  ;;  %v842_v7 = vadd.f32 %v1546_v0, %v800_v2 }
 0x104   : > { %917 = vst [vmem:[%s1557_s10 + $0xd8] sm:$0xff] %v1326_v6  ;;  %v783_v8 = vmul.f32 %v1541_v59, %v701_v5 }
 0x105   : > { %1329 = vtanh.f32 %v842_v7 }
 0x106   : > { %v1328_v9 = vpop.eup %1327  ;;  %v825_v10 = vadd.f32 %v1546_v0, %v783_v8  ;;  %v641_v11 = vpop.f32.mrf.mxu2 }
 0x107   : > { %900 = vst [vmem:[%s1557_s10 + $0x50] sm:$0xff] %v1328_v9  ;;  %v746_v12 = vadd.f32 %v745_v50, %v641_v11  ;;  %v750_v18 = vpop.f32.mrf.mxu3 }
 0x108   : > { %1331 = vtanh.f32 %v825_v10  ;;  %v599_v13 = vpop.f32.mrf.mxu0 }
 0x109   : > { %v801_v14 = vmul.f32 %v1541_v59, %v746_v12  ;;  %v703_v16 = vpop.f32.mrf.mxu1 }
 0x10a   : > { %v704_v17 = vadd.f32 %v703_v16, %v599_v13 }
 0x10b   : > { %v1330_v19 = vpop.eup %1329  ;;  %v843_v20 = vadd.f32 %v1546_v0, %v801_v14 }
 0x10c   : > { %918 = vst [vmem:[%s1557_s10 + $0xe0] sm:$0xff] %v1330_v19  ;;  %v784_v21 = vmul.f32 %v1541_v59, %v704_v17 }
 0x10d   : > { %1333 = vtanh.f32 %v843_v20 }
 0x10e   : > { %v1332_v22 = vpop.eup %1331  ;;  %v826_v23 = vadd.f32 %v1546_v0, %v784_v21  ;;  %v644_v24 = vpop.f32.mrf.mxu2 }
 0x10f   : > { %901 = vst [vmem:[%s1557_s10 + $0x58] sm:$0xff] %v1332_v22  ;;  %v749_v25 = vadd.f32 %v748_v1, %v644_v24  ;;  %v753_v33 = vpop.f32.mrf.mxu3 }
 0x110   : > { %1335 = vtanh.f32 %v826_v23  ;;  %v601_v26 = vpop.f32.mrf.mxu0 }
 0x111   : > { %v802_v27 = vmul.f32 %v1541_v59, %v749_v25  ;;  %v705_v28 = vpop.f32.mrf.mxu1 }
 0x112   : > { %v706_v29 = vadd.f32 %v705_v28, %v601_v26 }
 0x113   : > { %v1334_v30 = vpop.eup %1333  ;;  %v844_v31 = vadd.f32 %v1546_v0, %v802_v27 }
 0x114   : > { %919 = vst [vmem:[%s1557_s10 + $0xe8] sm:$0xff] %v1334_v30  ;;  %v785_v32 = vmul.f32 %v1541_v59, %v706_v29 }
 0x115   : > { %1337 = vtanh.f32 %v844_v31 }
 0x116   : > { %v1336_v34 = vpop.eup %1335  ;;  %v827_v35 = vadd.f32 %v1546_v0, %v785_v32  ;;  %v646_v36 = vpop.f32.mrf.mxu2 }
 0x117   : > { %902 = vst [vmem:[%s1557_s10 + $0x60] sm:$0xff] %v1336_v34  ;;  %v751_v37 = vadd.f32 %v750_v18, %v646_v36  ;;  %v755_v48 = vpop.f32.mrf.mxu3 }
 0x118   : > { %1339 = vtanh.f32 %v827_v35  ;;  %v604_v38 = vpop.f32.mrf.mxu0 }
 0x119   : > { %v803_v39 = vmul.f32 %v1541_v59, %v751_v37  ;;  %v708_v40 = vpop.f32.mrf.mxu1 }
 0x11a   : > { %v709_v41 = vadd.f32 %v708_v40, %v604_v38 }
 0x11b   : > { %v1338_v42 = vpop.eup %1337  ;;  %v845_v43 = vadd.f32 %v1546_v0, %v803_v39 }
 0x11c   : > { %920 = vst [vmem:[%s1557_s10 + $0xf0] sm:$0xff] %v1338_v42  ;;  %v786_v44 = vmul.f32 %v1541_v59, %v709_v41 }
 0x11d   : > { %1341 = vtanh.f32 %v845_v43 }
 0x11e   : > { %v1340_v45 = vpop.eup %1339  ;;  %v828_v46 = vadd.f32 %v1546_v0, %v786_v44  ;;  %v649_v47 = vpop.f32.mrf.mxu2 }
 0x11f   : > { %903 = vst [vmem:[%s1557_s10 + $0x68] sm:$0xff] %v1340_v45  ;;  %v754_v49 = vadd.f32 %v753_v33, %v649_v47  ;;  %v758_v62 = vpop.f32.mrf.mxu3 }
 0x120   : > { %1343 = vtanh.f32 %v828_v46  ;;  %v606_v50 = vpop.f32.mrf.mxu0 }
 0x121   : > { %v804_v51 = vmul.f32 %v1541_v59, %v754_v49  ;;  %v710_v52 = vpop.f32.mrf.mxu1 }
 0x122   : > { %v711_v53 = vadd.f32 %v710_v52, %v606_v50 }
 0x123   : > { %v1342_v54 = vpop.eup %1341  ;;  %v846_v55 = vadd.f32 %v1546_v0, %v804_v51 }
 0x124   : > { %921 = vst [vmem:[%s1557_s10 + $0xf8] sm:$0xff] %v1342_v54  ;;  %v787_v56 = vmul.f32 %v1541_v59, %v711_v53 }
 0x125   : > { %1345 = vtanh.f32 %v846_v55 }
 0x126   : > { %v1344_v57 = vpop.eup %1343  ;;  %v829_v58 = vadd.f32 %v1546_v0, %v787_v56  ;;  %v651_v60 = vpop.f32.mrf.mxu2 }
 0x127   : > { %904 = vst [vmem:[%s1557_s10 + $0x70] sm:$0xff] %v1344_v57  ;;  %v756_v61 = vadd.f32 %v755_v48, %v651_v60  ;;  %v760_v16 = vpop.f32.mrf.mxu3 }
 0x128   : > { %1347 = vtanh.f32 %v829_v58  ;;  %v609_v63 = vpop.f32.mrf.mxu0 }
 0x129   : > { %v805_v1 = vmul.f32 %v1541_v59, %v756_v61  ;;  %v713_v2 = vpop.f32.mrf.mxu1 }
 0x12a   : > { %v714_v4 = vadd.f32 %v713_v2, %v609_v63 }
 0x12b   : > { %v1346_v5 = vpop.eup %1345  ;;  %v847_v6 = vadd.f32 %v1546_v0, %v805_v1 }
 0x12c   : > { %922 = vst [vmem:[%s1557_s10 + $0x100] sm:$0xff] %v1346_v5  ;;  %v788_v7 = vmul.f32 %v1541_v59, %v714_v4 }
 0x12d   : > { %1349 = vtanh.f32 %v847_v6 }
 0x12e   : > { %v1348_v8 = vpop.eup %1347  ;;  %v830_v9 = vadd.f32 %v1546_v0, %v788_v7  ;;  %v654_v10 = vpop.f32.mrf.mxu2 }
 0x12f   : > { %905 = vst [vmem:[%s1557_s10 + $0x78] sm:$0xff] %v1348_v8  ;;  %v759_v11 = vadd.f32 %v758_v62, %v654_v10  ;;  %v763_v30 = vpop.f32.mrf.mxu3 }
 0x130   : > { %1351 = vtanh.f32 %v830_v9  ;;  %v611_v12 = vpop.f32.mrf.mxu0 }
 0x131   : > { %v806_v13 = vmul.f32 %v1541_v59, %v759_v11  ;;  %v715_v14 = vpop.f32.mrf.mxu1 }
 0x132   : > { %v716_v17 = vadd.f32 %v715_v14, %v611_v12 }
 0x133   : > { %v1350_v18 = vpop.eup %1349  ;;  %v848_v19 = vadd.f32 %v1546_v0, %v806_v13 }
 0x134   : > { %923 = vst [vmem:[%s1557_s10 + $0x108] sm:$0xff] %v1350_v18  ;;  %v789_v20 = vmul.f32 %v1541_v59, %v716_v17 }
 0x135   : > { %1353 = vtanh.f32 %v848_v19 }
 0x136   : > { %v1352_v21 = vpop.eup %1351  ;;  %v831_v22 = vadd.f32 %v1546_v0, %v789_v20  ;;  %v656_v23 = vpop.f32.mrf.mxu2 }
 0x137   : > { %906 = vst [vmem:[%s1557_s10 + $0x80] sm:$0xff] %v1352_v21  ;;  %v761_v24 = vadd.f32 %v760_v16, %v656_v23  ;;  %v765_v42 = vpop.f32.mrf.mxu3 }
 0x138   : > { %1355 = vtanh.f32 %v831_v22 }
 0x139   : > { %v807_v25 = vmul.f32 %v1541_v59, %v761_v24  ;;  %v718_v26 = vpop.f32.mrf.mxu1 }
 0x13a   : > { %v719_v27 = vadd.f32 %v718_v26, %v1550_v3 }
 0x13b   : > { %v1354_v28 = vpop.eup %1353  ;;  %v849_v29 = vadd.f32 %v1546_v0, %v807_v25 }
 0x13c   : > { %924 = vst [vmem:[%s1557_s10 + $0x110] sm:$0xff] %v1354_v28  ;;  %v790_v31 = vmul.f32 %v1541_v59, %v719_v27 }
 0x13d   : > { %1357 = vtanh.f32 %v849_v29 }
 0x13e   : > { %v1356_v32 = vpop.eup %1355  ;;  %v832_v33 = vadd.f32 %v1546_v0, %v790_v31  ;;  %v659_v34 = vpop.f32.mrf.mxu2 }
 0x13f   : > { %907 = vst [vmem:[%s1557_s10 + $0x88] sm:$0xff] %v1356_v32  ;;  %v764_v35 = vadd.f32 %v763_v30, %v659_v34 }
 0x140   : > { %1359 = vtanh.f32 %v832_v33 }
 0x141   : > { %v808_v36 = vmul.f32 %v1541_v59, %v764_v35  ;;  %v720_v3 = vpop.f32.mrf.mxu1 }
 0x142   : > { %v721_v37 = vadd.f32 %v720_v3, %v1565_v15 }
 0x143   : > { %v1358_v38 = vpop.eup %1357  ;;  %v850_v39 = vadd.f32 %v1546_v0, %v808_v36 }
 0x144   : > { %925 = vst [vmem:[%s1557_s10 + $0x118] sm:$0xff] %v1358_v38  ;;  %v791_v40 = vmul.f32 %v1541_v59, %v721_v37 }
 0x145   : > { %1361 = vtanh.f32 %v850_v39 }
 0x146   : > { %v1360_v41 = vpop.eup %1359  ;;  %v833_v43 = vadd.f32 %v1546_v0, %v791_v40  ;;  %v661_v44 = vpop.f32.mrf.mxu2 }
 0x147   : > { %908 = vst [vmem:[%s1557_s10 + $0x90] sm:$0xff] %v1360_v41  ;;  %v766_v45 = vadd.f32 %v765_v42, %v661_v44 }
 0x148   : > { %1363 = vtanh.f32 %v833_v43 }
 0x149   : > { %v809_v15 = vmul.f32 %v1541_v59, %v766_v45 }
 0x14b   : > { %v1362_v46 = vpop.eup %1361  ;;  %v851_v47 = vadd.f32 %v1546_v0, %v809_v15 }
 0x14c   : > { %926 = vst [vmem:[%s1557_s10 + $0x120] sm:$0xff] %v1362_v46 }
 0x14d   : > { %1365 = vtanh.f32 %v851_v47 }
 0x14e   : > { %v1364_v48 = vpop.eup %1363 }
 0x14f   : > { %909 = vst [vmem:[%s1557_s10 + $0x98] sm:$0xff] %v1364_v48 }
 0x153   : > { %v1366_v49 = vpop.eup %1365 }
 0x154   : > { %927 = vst [vmem:[%s1557_s10 + $0x128] sm:$0xff] %v1366_v49 }
 0x155 PF: > { %s14_s15 = sadd.s32 1, %s1373_s15  }
 0x156   : > { %p11_p4 = scmp.ge.s32.totalorder %s14_s15, 4  }
 0x158   :  { %13 = sbr.rel (!%p11_p4) target bundleno = 1 (0x1), region = 66 }

</bundles_post_ra>
